<compile_context>
chip_gen: v7x
topology: tpu7x:2x2x1
jax: 0.10.0
libtpu: 0.0.40
codegen_flags: <defaults>
</compile_context>

<pallas_src>
import functools

import jax
import jax.numpy as jnp
from jax import lax
from jax.experimental import pallas as pl
from jax.experimental.pallas import tpu as pltpu


def _conv_stats_kernel(x_ref, w_ref, y_ref, stats_ref, *,
                       kh, kw, sh, sw, row_tile, Wo, Cout):
    """Fused im2col + conv matmul + partial BN statistics for one row tile.

    x_ref:     (Hp, Wp, Cin)        bf16  whole padded image (resident per n)
    w_ref:     (kh*kw, Cin, Coutp)  bf16  weights, Cout zero-padded to 128-mult
    y_ref:     (Cout, row_tile*Wo)  bf16  conv output tile (lanes = spatial)
    stats_ref: (2, Coutp)           f32   [sum(y); sum(y*y)], accumulated over
                                          the row-tile grid axis
    """
    cin = x_ref.shape[-1]
    coutp = w_ref.shape[-1]
    mt = row_tile * Wo
    m = pl.program_id(1)
    row0 = pl.multiple_of(m * (row_tile * sh), row_tile * sh)

    # TODO(synk): fuse the kh*kw dots into a single K = kh*kw*Cin matmul once
    # minor-dim bf16 concatenation is verified to lower cleanly on all gens.
    acc = jnp.zeros((mt, coutp), jnp.float32)
    for idx in range(kh * kw):                         # unrolled at trace time
        ki, kj = idx // kw, idx % kw
        # TODO(synk): verify strided-read lowering for stride > 1 on all
        # generations; the stride-1 path uses plain contiguous dynamic slices.
        rs = (pl.ds(row0 + ki, row_tile) if sh == 1
              else pl.ds(row0 + ki, row_tile, stride=sh))
        cs = pl.ds(kj, Wo) if sw == 1 else pl.ds(kj, Wo, stride=sw)
        patch = x_ref[rs, cs, :]                       # (row_tile, Wo, Cin) bf16
        acc = acc + jnp.dot(patch.reshape(mt, cin), w_ref[idx],
                            preferred_element_type=jnp.float32)

    # Partial BN sums in f32 (taken before the bf16 downcast of y).
    s = jnp.sum(acc, axis=0, keepdims=True)            # (1, Coutp)
    ss = jnp.sum(acc * acc, axis=0, keepdims=True)     # (1, Coutp)
    part = jnp.concatenate([s, ss], axis=0)            # (2, Coutp)

    @pl.when(m == 0)
    def _():
        stats_ref[...] = jnp.zeros_like(stats_ref)
    stats_ref[...] += part

    # Channel-cropped, lane-dense (spatial-major) bf16 store: (Cout, mt).
    y_ref[...] = acc.T[:Cout, :].astype(y_ref.dtype)


def _bn_relu_kernel(y_ref, scale_ref, bias_ref, o_ref):
    # y_ref: (Cout, mt) bf16; scale/bias: (Cout, 1) f32; o_ref: (Cout, mt) f32.
    y = y_ref[...].astype(jnp.float32)
    o_ref[...] = jnp.maximum(y * scale_ref[...] + bias_ref[...],
                             0.0).astype(o_ref.dtype)


def _pick_row_tile(Ho, Wo, Coutp, budget_bytes=4 << 20):
    """Largest row tile TH with TH | Ho, lane-dense output tiles
    (TH*Wo % 128 == 0, or TH == Ho) and an f32 accumulator under the budget."""
    candidates = [th for th in range(1, Ho + 1)
                  if Ho % th == 0 and ((th * Wo) % 128 == 0 or th == Ho)]
    fitting = [th for th in candidates if th * Wo * Coutp * 4 <= budget_bytes]
    if fitting:
        return max(fitting)
    # TODO(synk): for huge images also halo-tile the input DMA instead of
    # keeping the whole padded image resident in VMEM.
    return min(candidates)


def conv_block_forward(x_nchw, conv_w, gamma, beta, *,
                       stride=(1, 1), padding=(0, 0), eps=1e-5, row_tile=None):
    """Conv2d(bias=False, groups=1) + BatchNorm2d (batch stats) + ReLU, NCHW io."""
    # TODO(synk): groups > 1 (grouped / depthwise conv) not implemented here.
    Cout, Cin_w, kh, kw = conv_w.shape
    N, Cin, H, W = x_nchw.shape
    assert Cin == Cin_w, "groups != 1 not supported"
    sh, sw = stride
    ph, pw = padding
    Ho = (H + 2 * ph - kh) // sh + 1
    Wo = (W + 2 * pw - kw) // sw + 1
    Hp, Wp = H + 2 * ph, W + 2 * pw
    M = N * Ho * Wo
    Coutp = ((Cout + 127) // 128) * 128      # lane-dense weights / stats only

    if row_tile is None:
        row_tile = _pick_row_tile(Ho, Wo, Coutp)
    assert Ho % row_tile == 0, (Ho, row_tile)
    assert (row_tile * Wo) % 128 == 0 or row_tile == Ho, (row_tile, Wo)
    n_m = Ho // row_tile
    mt = row_tile * Wo

    # NHWC + spatial pre-pad; bf16 halves HBM traffic and feeds the MXU natively.
    x_nhwc = jnp.transpose(x_nchw, (0, 2, 3, 1))
    x_pad = jnp.pad(x_nhwc, ((0, 0), (ph, ph), (pw, pw), (0, 0))).astype(jnp.bfloat16)
    # TODO(synk): for tiny Cin the channels-last VMEM layout wastes lanes; a
    # lane-dense (N, Hp, Wp*Cin) packing would shrink the resident image.

    # PyTorch (Cout, Cin, kh, kw) -> (kh*kw, Cin, Coutp); zero columns for the
    # padded output channels keep the partial stats exactly zero there.
    w_r = jnp.transpose(conv_w, (2, 3, 1, 0)).reshape(kh * kw, Cin, Cout)
    w_r = jnp.pad(w_r, ((0, 0), (0, 0), (0, Coutp - Cout))).astype(jnp.bfloat16)

    vmem_limit = 32 * 1024 * 1024            # safe scoped limit on v5e/v6e/v7x

    kern1 = functools.partial(_conv_stats_kernel, kh=kh, kw=kw, sh=sh, sw=sw,
                              row_tile=row_tile, Wo=Wo, Cout=Cout)

    # --- Kernel 1: fused im2col + conv matmul + partial BN stats ------------
    y_conv, stats = pl.pallas_call(
        kern1,
        out_shape=(jax.ShapeDtypeStruct((N, Cout, Ho * Wo), jnp.bfloat16),
                   jax.ShapeDtypeStruct((N, 2, Coutp), jnp.float32)),
        grid_spec=pltpu.PrefetchScalarGridSpec(
            num_scalar_prefetch=0,
            grid=(N, n_m),
            in_specs=[pl.BlockSpec((None, Hp, Wp, Cin), lambda n, m: (n, 0, 0, 0)),
                      pl.BlockSpec((kh * kw, Cin, Coutp), lambda n, m: (0, 0, 0))],
            out_specs=(pl.BlockSpec((None, Cout, mt), lambda n, m: (n, 0, m)),
                       pl.BlockSpec((None, 2, Coutp), lambda n, m: (n, 0, 0)))),
        compiler_params=pltpu.CompilerParams(
            dimension_semantics=("parallel", "arbitrary"),
            vmem_limit_bytes=vmem_limit),
        cost_estimate=pl.CostEstimate(
            flops=2 * M * kh * kw * Cin * Coutp,
            transcendentals=0,
            bytes_accessed=(x_pad.size * 2 + w_r.size * 2
                            + M * Cout * 2 + N * 2 * Coutp * 4)),
    )(x_pad, w_r)

    # BatchNorm2d training-mode statistics from the fused partial sums
    # (biased variance over N*Ho*Wo, as PyTorch uses for normalization).
    # Note: E[y^2] - mean^2 in f32 can lose accuracy for very large M / means.
    tot = jnp.sum(stats, axis=0)                         # (2, Coutp)
    mean = tot[0, :Cout] / M
    var = jnp.maximum(tot[1, :Cout] / M - mean * mean, 0.0)
    scale = gamma.astype(jnp.float32) / jnp.sqrt(var + eps)
    bias = beta.astype(jnp.float32) - mean * scale
    scale_col = scale.reshape(Cout, 1)
    bias_col = bias.reshape(Cout, 1)

    # --- Kernel 2: fused BN affine + ReLU, bf16 in -> f32 NCHW-layout out ---
    out_flat = pl.pallas_call(
        _bn_relu_kernel,
        out_shape=jax.ShapeDtypeStruct((N, Cout, Ho * Wo), x_nchw.dtype),
        grid_spec=pltpu.PrefetchScalarGridSpec(
            num_scalar_prefetch=0,
            grid=(N, n_m),
            in_specs=[pl.BlockSpec((None, Cout, mt), lambda n, m: (n, 0, m)),
                      pl.BlockSpec((Cout, 1), lambda n, m: (0, 0)),
                      pl.BlockSpec((Cout, 1), lambda n, m: (0, 0))],
            out_specs=pl.BlockSpec((None, Cout, mt), lambda n, m: (n, 0, m))),
        compiler_params=pltpu.CompilerParams(
            dimension_semantics=("parallel", "parallel"),
            vmem_limit_bytes=vmem_limit),
        cost_estimate=pl.CostEstimate(
            flops=2 * M * Cout,
            transcendentals=0,
            bytes_accessed=M * Cout * (2 + 4)),
    )(y_conv, scale_col, bias_col)

    # Already channel-major: just split the flat spatial dim (no transpose).
    return out_flat.reshape(N, Cout, Ho, Wo)


def _reference(x, w, gamma, beta, stride, padding, eps=1e-5):
    y = lax.conv_general_dilated(
        x, w, window_strides=stride,
        padding=[(padding[0], padding[0]), (padding[1], padding[1])],
        dimension_numbers=('NCHW', 'OIHW', 'NCHW'),
        precision=lax.Precision.HIGHEST)
    mean = jnp.mean(y, axis=(0, 2, 3), keepdims=True)
    var = jnp.mean(jnp.square(y - mean), axis=(0, 2, 3), keepdims=True)
    yn = (y - mean) / jnp.sqrt(var + eps)
    yn = yn * gamma.reshape(1, -1, 1, 1) + beta.reshape(1, -1, 1, 1)
    return jnp.maximum(yn, 0.0)


if __name__ == "__main__":
    # Conv_block(in_c=4, out_c=8, kernel=(3,3), stride=(1,1), padding=(1,1))
    # on NCHW input (2, 4, 16, 16).
    N, Cin, H, W = 2, 4, 16, 16
    Cout, kh, kw = 8, 3, 3
    stride, padding = (1, 1), (1, 1)

    key = jax.random.PRNGKey(0)
    kx, kw_, kg, kb = jax.random.split(key, 4)
    x = jax.random.normal(kx, (N, Cin, H, W), dtype=jnp.float32)
    conv_w = 0.1 * jax.random.normal(kw_, (Cout, Cin, kh, kw), dtype=jnp.float32)
    gamma = 1.0 + 0.1 * jax.random.normal(kg, (Cout,), dtype=jnp.float32)
    beta = 0.1 * jax.random.normal(kb, (Cout,), dtype=jnp.float32)

    ref = _reference(x, conv_w, gamma, beta, stride, padding)

    # Default (auto row tile: one tile per image here).
    fwd = jax.jit(functools.partial(conv_block_forward,
                                    stride=stride, padding=padding))
    out = jax.block_until_ready(fwd(x, conv_w, gamma, beta))
    assert out.shape == ref.shape, (out.shape, ref.shape)
    # bf16 MXU inputs + bf16 conv intermediate (f32 accumulation) vs f32 ref.
    err = float(jnp.max(jnp.abs(out - ref)))
    assert err < 6e-2, err

    # Also exercise the multi-row-tile path (stats accumulation across m).
    fwd_tiled = jax.jit(functools.partial(conv_block_forward, stride=stride,
                                          padding=padding, row_tile=8))
    out_t = jax.block_until_ready(fwd_tiled(x, conv_w, gamma, beta))
    err_t = float(jnp.max(jnp.abs(out_t - ref)))
    assert err_t < 6e-2, err_t

    print("KERNEL_OK")
</pallas_src>

<mosaic_0001>
module attributes {stable_mosaic.version = 11 : i64} {
  func.func @_conv_stats_kernel(%arg0: i32, %arg1: i32, %arg2: memref<1x18x18x4xbf16, #tpu.memory_space<vmem>>, %arg3: memref<9x4x128xbf16, #tpu.memory_space<vmem>>, %arg4: memref<1x8x256xbf16, #tpu.memory_space<vmem>>, %arg5: memref<1x2x128xf32, #tpu.memory_space<vmem>>) attributes {dimension_semantics = [#tpu.dimension_semantics<parallel>, #tpu.dimension_semantics<arbitrary>], iteration_bounds = array<i64: 2, 1>, scalar_prefetch = 0 : i64, scratch_operands = 0 : i64, tpu.core_type = #tpu.core_type<tc>, window_params = [{transform_indices = @transform_0, window_bounds = array<i64: 1, 18, 18, 4>}, {pipeline_mode = #tpu.pipeline_mode<synchronous>, transform_indices = @transform_1, window_bounds = array<i64: 9, 4, 128>}, {transform_indices = @transform_2, window_bounds = array<i64: 1, 8, 256>}, {transform_indices = @transform_3, window_bounds = array<i64: 1, 2, 128>}]} {
    %c16_i32 = arith.constant 16 : i32
    %0 = arith.muli %arg1, %c16_i32 : i32
    %1 = tpu.assume_multiple %0, 16 : i32
    %cst = arith.constant 0.000000e+00 : f32
    %2 = vector.broadcast %cst : f32 to vector<256x128xf32>
    %c0_i32 = arith.constant 0 : i32
    %3 = arith.addi %1, %c0_i32 : i32
    %c0 = arith.constant 0 : index
    %4 = arith.index_cast %3 : i32 to index
    %c0_0 = arith.constant 0 : index
    %c0_1 = arith.constant 0 : index
    %5 = vector.load %arg2[%c0, %4, %c0_0, %c0_1] : memref<1x18x18x4xbf16, #tpu.memory_space<vmem>>, vector<1x16x16x4xbf16>
    %6 = vector.shape_cast %5 : vector<1x16x16x4xbf16> to vector<16x16x4xbf16>
    %7 = vector.shape_cast %6 : vector<16x16x4xbf16> to vector<256x4xbf16>
    %c0_2 = arith.constant 0 : index
    %c0_3 = arith.constant 0 : index
    %c0_4 = arith.constant 0 : index
    %8 = vector.load %arg3[%c0_2, %c0_3, %c0_4] : memref<9x4x128xbf16, #tpu.memory_space<vmem>>, vector<1x4x128xbf16>
    %9 = vector.shape_cast %8 : vector<1x4x128xbf16> to vector<4x128xbf16>
    %cst_5 = arith.constant dense<0.000000e+00> : vector<256x128xf32>
    %10 = tpu.matmul %7, %9, %cst_5 {dimension_numbers = #tpu.dot_dimension_numbers<[1], [0], [0], [1], [0, 0, 1, 1], [], []>} : vector<256x4xbf16>, vector<4x128xbf16>, vector<256x128xf32> -> vector<256x128xf32>
    %11 = arith.addf %2, %10 : vector<256x128xf32>
    %c0_i32_6 = arith.constant 0 : i32
    %12 = arith.addi %1, %c0_i32_6 : i32
    %c0_7 = arith.constant 0 : index
    %13 = arith.index_cast %12 : i32 to index
    %c1 = arith.constant 1 : index
    %c0_8 = arith.constant 0 : index
    %14 = vector.load %arg2[%c0_7, %13, %c1, %c0_8] : memref<1x18x18x4xbf16, #tpu.memory_space<vmem>>, vector<1x16x16x4xbf16>
    %15 = vector.shape_cast %14 : vector<1x16x16x4xbf16> to vector<16x16x4xbf16>
    %16 = vector.shape_cast %15 : vector<16x16x4xbf16> to vector<256x4xbf16>
    %c1_9 = arith.constant 1 : index
    %c0_10 = arith.constant 0 : index
    %c0_11 = arith.constant 0 : index
    %17 = vector.load %arg3[%c1_9, %c0_10, %c0_11] : memref<9x4x128xbf16, #tpu.memory_space<vmem>>, vector<1x4x128xbf16>
    %18 = vector.shape_cast %17 : vector<1x4x128xbf16> to vector<4x128xbf16>
    %cst_12 = arith.constant dense<0.000000e+00> : vector<256x128xf32>
    %19 = tpu.matmul %16, %18, %cst_12 {dimension_numbers = #tpu.dot_dimension_numbers<[1], [0], [0], [1], [0, 0, 1, 1], [], []>} : vector<256x4xbf16>, vector<4x128xbf16>, vector<256x128xf32> -> vector<256x128xf32>
    %20 = arith.addf %11, %19 : vector<256x128xf32>
    %c0_i32_13 = arith.constant 0 : i32
    %21 = arith.addi %1, %c0_i32_13 : i32
    %c0_14 = arith.constant 0 : index
    %22 = arith.index_cast %21 : i32 to index
    %c2 = arith.constant 2 : index
    %c0_15 = arith.constant 0 : index
    %23 = vector.load %arg2[%c0_14, %22, %c2, %c0_15] : memref<1x18x18x4xbf16, #tpu.memory_space<vmem>>, vector<1x16x16x4xbf16>
    %24 = vector.shape_cast %23 : vector<1x16x16x4xbf16> to vector<16x16x4xbf16>
    %25 = vector.shape_cast %24 : vector<16x16x4xbf16> to vector<256x4xbf16>
    %c2_16 = arith.constant 2 : index
    %c0_17 = arith.constant 0 : index
    %c0_18 = arith.constant 0 : index
    %26 = vector.load %arg3[%c2_16, %c0_17, %c0_18] : memref<9x4x128xbf16, #tpu.memory_space<vmem>>, vector<1x4x128xbf16>
    %27 = vector.shape_cast %26 : vector<1x4x128xbf16> to vector<4x128xbf16>
    %cst_19 = arith.constant dense<0.000000e+00> : vector<256x128xf32>
    %28 = tpu.matmul %25, %27, %cst_19 {dimension_numbers = #tpu.dot_dimension_numbers<[1], [0], [0], [1], [0, 0, 1, 1], [], []>} : vector<256x4xbf16>, vector<4x128xbf16>, vector<256x128xf32> -> vector<256x128xf32>
    %29 = arith.addf %20, %28 : vector<256x128xf32>
    %c1_i32 = arith.constant 1 : i32
    %30 = arith.addi %1, %c1_i32 : i32
    %c0_20 = arith.constant 0 : index
    %31 = arith.index_cast %30 : i32 to index
    %c0_21 = arith.constant 0 : index
    %c0_22 = arith.constant 0 : index
    %32 = vector.load %arg2[%c0_20, %31, %c0_21, %c0_22] : memref<1x18x18x4xbf16, #tpu.memory_space<vmem>>, vector<1x16x16x4xbf16>
    %33 = vector.shape_cast %32 : vector<1x16x16x4xbf16> to vector<16x16x4xbf16>
    %34 = vector.shape_cast %33 : vector<16x16x4xbf16> to vector<256x4xbf16>
    %c3 = arith.constant 3 : index
    %c0_23 = arith.constant 0 : index
    %c0_24 = arith.constant 0 : index
    %35 = vector.load %arg3[%c3, %c0_23, %c0_24] : memref<9x4x128xbf16, #tpu.memory_space<vmem>>, vector<1x4x128xbf16>
    %36 = vector.shape_cast %35 : vector<1x4x128xbf16> to vector<4x128xbf16>
    %cst_25 = arith.constant dense<0.000000e+00> : vector<256x128xf32>
    %37 = tpu.matmul %34, %36, %cst_25 {dimension_numbers = #tpu.dot_dimension_numbers<[1], [0], [0], [1], [0, 0, 1, 1], [], []>} : vector<256x4xbf16>, vector<4x128xbf16>, vector<256x128xf32> -> vector<256x128xf32>
    %38 = arith.addf %29, %37 : vector<256x128xf32>
    %c1_i32_26 = arith.constant 1 : i32
    %39 = arith.addi %1, %c1_i32_26 : i32
    %c0_27 = arith.constant 0 : index
    %40 = arith.index_cast %39 : i32 to index
    %c1_28 = arith.constant 1 : index
    %c0_29 = arith.constant 0 : index
    %41 = vector.load %arg2[%c0_27, %40, %c1_28, %c0_29] : memref<1x18x18x4xbf16, #tpu.memory_space<vmem>>, vector<1x16x16x4xbf16>
    %42 = vector.shape_cast %41 : vector<1x16x16x4xbf16> to vector<16x16x4xbf16>
    %43 = vector.shape_cast %42 : vector<16x16x4xbf16> to vector<256x4xbf16>
    %c4 = arith.constant 4 : index
    %c0_30 = arith.constant 0 : index
    %c0_31 = arith.constant 0 : index
    %44 = vector.load %arg3[%c4, %c0_30, %c0_31] : memref<9x4x128xbf16, #tpu.memory_space<vmem>>, vector<1x4x128xbf16>
    %45 = vector.shape_cast %44 : vector<1x4x128xbf16> to vector<4x128xbf16>
    %cst_32 = arith.constant dense<0.000000e+00> : vector<256x128xf32>
    %46 = tpu.matmul %43, %45, %cst_32 {dimension_numbers = #tpu.dot_dimension_numbers<[1], [0], [0], [1], [0, 0, 1, 1], [], []>} : vector<256x4xbf16>, vector<4x128xbf16>, vector<256x128xf32> -> vector<256x128xf32>
    %47 = arith.addf %38, %46 : vector<256x128xf32>
    %c1_i32_33 = arith.constant 1 : i32
    %48 = arith.addi %1, %c1_i32_33 : i32
    %c0_34 = arith.constant 0 : index
    %49 = arith.index_cast %48 : i32 to index
    %c2_35 = arith.constant 2 : index
    %c0_36 = arith.constant 0 : index
    %50 = vector.load %arg2[%c0_34, %49, %c2_35, %c0_36] : memref<1x18x18x4xbf16, #tpu.memory_space<vmem>>, vector<1x16x16x4xbf16>
    %51 = vector.shape_cast %50 : vector<1x16x16x4xbf16> to vector<16x16x4xbf16>
    %52 = vector.shape_cast %51 : vector<16x16x4xbf16> to vector<256x4xbf16>
    %c5 = arith.constant 5 : index
    %c0_37 = arith.constant 0 : index
    %c0_38 = arith.constant 0 : index
    %53 = vector.load %arg3[%c5, %c0_37, %c0_38] : memref<9x4x128xbf16, #tpu.memory_space<vmem>>, vector<1x4x128xbf16>
    %54 = vector.shape_cast %53 : vector<1x4x128xbf16> to vector<4x128xbf16>
    %cst_39 = arith.constant dense<0.000000e+00> : vector<256x128xf32>
    %55 = tpu.matmul %52, %54, %cst_39 {dimension_numbers = #tpu.dot_dimension_numbers<[1], [0], [0], [1], [0, 0, 1, 1], [], []>} : vector<256x4xbf16>, vector<4x128xbf16>, vector<256x128xf32> -> vector<256x128xf32>
    %56 = arith.addf %47, %55 : vector<256x128xf32>
    %c2_i32 = arith.constant 2 : i32
    %57 = arith.addi %1, %c2_i32 : i32
    %c0_40 = arith.constant 0 : index
    %58 = arith.index_cast %57 : i32 to index
    %c0_41 = arith.constant 0 : index
    %c0_42 = arith.constant 0 : index
    %59 = vector.load %arg2[%c0_40, %58, %c0_41, %c0_42] : memref<1x18x18x4xbf16, #tpu.memory_space<vmem>>, vector<1x16x16x4xbf16>
    %60 = vector.shape_cast %59 : vector<1x16x16x4xbf16> to vector<16x16x4xbf16>
    %61 = vector.shape_cast %60 : vector<16x16x4xbf16> to vector<256x4xbf16>
    %c6 = arith.constant 6 : index
    %c0_43 = arith.constant 0 : index
    %c0_44 = arith.constant 0 : index
    %62 = vector.load %arg3[%c6, %c0_43, %c0_44] : memref<9x4x128xbf16, #tpu.memory_space<vmem>>, vector<1x4x128xbf16>
    %63 = vector.shape_cast %62 : vector<1x4x128xbf16> to vector<4x128xbf16>
    %cst_45 = arith.constant dense<0.000000e+00> : vector<256x128xf32>
    %64 = tpu.matmul %61, %63, %cst_45 {dimension_numbers = #tpu.dot_dimension_numbers<[1], [0], [0], [1], [0, 0, 1, 1], [], []>} : vector<256x4xbf16>, vector<4x128xbf16>, vector<256x128xf32> -> vector<256x128xf32>
    %65 = arith.addf %56, %64 : vector<256x128xf32>
    %c2_i32_46 = arith.constant 2 : i32
    %66 = arith.addi %1, %c2_i32_46 : i32
    %c0_47 = arith.constant 0 : index
    %67 = arith.index_cast %66 : i32 to index
    %c1_48 = arith.constant 1 : index
    %c0_49 = arith.constant 0 : index
    %68 = vector.load %arg2[%c0_47, %67, %c1_48, %c0_49] : memref<1x18x18x4xbf16, #tpu.memory_space<vmem>>, vector<1x16x16x4xbf16>
    %69 = vector.shape_cast %68 : vector<1x16x16x4xbf16> to vector<16x16x4xbf16>
    %70 = vector.shape_cast %69 : vector<16x16x4xbf16> to vector<256x4xbf16>
    %c7 = arith.constant 7 : index
    %c0_50 = arith.constant 0 : index
    %c0_51 = arith.constant 0 : index
    %71 = vector.load %arg3[%c7, %c0_50, %c0_51] : memref<9x4x128xbf16, #tpu.memory_space<vmem>>, vector<1x4x128xbf16>
    %72 = vector.shape_cast %71 : vector<1x4x128xbf16> to vector<4x128xbf16>
    %cst_52 = arith.constant dense<0.000000e+00> : vector<256x128xf32>
    %73 = tpu.matmul %70, %72, %cst_52 {dimension_numbers = #tpu.dot_dimension_numbers<[1], [0], [0], [1], [0, 0, 1, 1], [], []>} : vector<256x4xbf16>, vector<4x128xbf16>, vector<256x128xf32> -> vector<256x128xf32>
    %74 = arith.addf %65, %73 : vector<256x128xf32>
    %c2_i32_53 = arith.constant 2 : i32
    %75 = arith.addi %1, %c2_i32_53 : i32
    %c0_54 = arith.constant 0 : index
    %76 = arith.index_cast %75 : i32 to index
    %c2_55 = arith.constant 2 : index
    %c0_56 = arith.constant 0 : index
    %77 = vector.load %arg2[%c0_54, %76, %c2_55, %c0_56] : memref<1x18x18x4xbf16, #tpu.memory_space<vmem>>, vector<1x16x16x4xbf16>
    %78 = vector.shape_cast %77 : vector<1x16x16x4xbf16> to vector<16x16x4xbf16>
    %79 = vector.shape_cast %78 : vector<16x16x4xbf16> to vector<256x4xbf16>
    %c8 = arith.constant 8 : index
    %c0_57 = arith.constant 0 : index
    %c0_58 = arith.constant 0 : index
    %80 = vector.load %arg3[%c8, %c0_57, %c0_58] : memref<9x4x128xbf16, #tpu.memory_space<vmem>>, vector<1x4x128xbf16>
    %81 = vector.shape_cast %80 : vector<1x4x128xbf16> to vector<4x128xbf16>
    %cst_59 = arith.constant dense<0.000000e+00> : vector<256x128xf32>
    %82 = tpu.matmul %79, %81, %cst_59 {dimension_numbers = #tpu.dot_dimension_numbers<[1], [0], [0], [1], [0, 0, 1, 1], [], []>} : vector<256x4xbf16>, vector<4x128xbf16>, vector<256x128xf32> -> vector<256x128xf32>
    %83 = arith.addf %74, %82 : vector<256x128xf32>
    %cst_60 = arith.constant dense<0.000000e+00> : vector<128xf32>
    %84 = vector.multi_reduction <add>, %83, %cst_60 [0] : vector<256x128xf32> to vector<128xf32>
    %85 = vector.shape_cast %84 : vector<128xf32> to vector<1x128xf32>
    %86 = arith.mulf %83, %83 : vector<256x128xf32>
    %cst_61 = arith.constant dense<0.000000e+00> : vector<128xf32>
    %87 = vector.multi_reduction <add>, %86, %cst_61 [0] : vector<256x128xf32> to vector<128xf32>
    %88 = vector.shape_cast %87 : vector<128xf32> to vector<1x128xf32>
    %89 = tpu.concatenate %85, %88 in 0 : vector<1x128xf32>, vector<1x128xf32> -> vector<2x128xf32>
    %c0_i32_62 = arith.constant 0 : i32
    %90 = arith.cmpi eq, %arg1, %c0_i32_62 : i32
    %91 = arith.extui %90 : i1 to i32
    %c0_i32_63 = arith.constant 0 : i32
    %92 = arith.cmpi ne, %91, %c0_i32_63 : i32
    scf.if %92 {
      %cst_73 = arith.constant 0.000000e+00 : f32
      %105 = vector.broadcast %cst_73 : f32 to vector<2x128xf32>
      %c0_74 = arith.constant 0 : index
      %c0_75 = arith.constant 0 : index
      %c0_76 = arith.constant 0 : index
      %106 = vector.load %arg5[%c0_74, %c0_75, %c0_76] : memref<1x2x128xf32, #tpu.memory_space<vmem>>, vector<1x2x128xf32>
      %107 = vector.shape_cast %106 : vector<1x2x128xf32> to vector<2x128xf32>
      %108 = vector.shape_cast %105 : vector<2x128xf32> to vector<1x2x128xf32>
      tpu.vector_store %arg5[%c0_74, %c0_75, %c0_76], %108 {strides = array<i32>} : memref<1x2x128xf32, #tpu.memory_space<vmem>>, vector<1x2x128xf32>,
    } else {
    }
    %c0_64 = arith.constant 0 : index
    %c0_65 = arith.constant 0 : index
    %c0_66 = arith.constant 0 : index
    %93 = vector.load %arg5[%c0_64, %c0_65, %c0_66] : memref<1x2x128xf32, #tpu.memory_space<vmem>>, vector<1x2x128xf32>
    %94 = vector.shape_cast %93 : vector<1x2x128xf32> to vector<2x128xf32>
    %95 = arith.addf %94, %89 : vector<2x128xf32>
    %c0_67 = arith.constant 0 : index
    %c0_68 = arith.constant 0 : index
    %c0_69 = arith.constant 0 : index
    %96 = vector.load %arg5[%c0_67, %c0_68, %c0_69] : memref<1x2x128xf32, #tpu.memory_space<vmem>>, vector<1x2x128xf32>
    %97 = vector.shape_cast %96 : vector<1x2x128xf32> to vector<2x128xf32>
    %98 = vector.shape_cast %95 : vector<2x128xf32> to vector<1x2x128xf32>
    tpu.vector_store %arg5[%c0_67, %c0_68, %c0_69], %98 {strides = array<i32>} : memref<1x2x128xf32, #tpu.memory_space<vmem>>, vector<1x2x128xf32>,
    %99 = tpu.transpose %83, [1, 0] : vector<256x128xf32> -> vector<128x256xf32>
    %100 = vector.extract_strided_slice %99 {offsets = [0, 0], sizes = [8, 256], strides = [1, 1]} : vector<128x256xf32> to vector<8x256xf32>
    %101 = arith.truncf %100 : vector<8x256xf32> to vector<8x256xbf16>
    %c0_70 = arith.constant 0 : index
    %c0_71 = arith.constant 0 : index
    %c0_72 = arith.constant 0 : index
    %102 = vector.load %arg4[%c0_70, %c0_71, %c0_72] : memref<1x8x256xbf16, #tpu.memory_space<vmem>>, vector<1x8x256xbf16>
    %103 = vector.shape_cast %102 : vector<1x8x256xbf16> to vector<8x256xbf16>
    %104 = vector.shape_cast %101 : vector<8x256xbf16> to vector<1x8x256xbf16>
    tpu.vector_store %arg4[%c0_70, %c0_71, %c0_72], %104 {strides = array<i32>} : memref<1x8x256xbf16, #tpu.memory_space<vmem>>, vector<1x8x256xbf16>,
    return
  }
  func.func @transform_0(%arg0: i32, %arg1: i32) -> (i32, i32, i32, i32) {
    %c0_i32 = arith.constant 0 : i32
    %c0_i32_0 = arith.constant 0 : i32
    %c0_i32_1 = arith.constant 0 : i32
    %c0_i32_2 = arith.constant 0 : i32
    return %arg0, %c0_i32, %c0_i32_0, %c0_i32_1 : i32, i32, i32, i32
  }
  func.func @transform_1(%arg0: i32, %arg1: i32) -> (i32, i32, i32) {
    %c0_i32 = arith.constant 0 : i32
    %c0_i32_0 = arith.constant 0 : i32
    %c0_i32_1 = arith.constant 0 : i32
    %c0_i32_2 = arith.constant 0 : i32
    return %c0_i32, %c0_i32_0, %c0_i32_1 : i32, i32, i32
  }
  func.func @transform_2(%arg0: i32, %arg1: i32) -> (i32, i32, i32) {
    %c0_i32 = arith.constant 0 : i32
    %c0_i32_0 = arith.constant 0 : i32
    return %arg0, %c0_i32, %arg1 : i32, i32, i32
  }
  func.func @transform_3(%arg0: i32, %arg1: i32) -> (i32, i32, i32) {
    %c0_i32 = arith.constant 0 : i32
    %c0_i32_0 = arith.constant 0 : i32
    %c0_i32_1 = arith.constant 0 : i32
    return %arg0, %c0_i32, %c0_i32_0 : i32, i32, i32
  }
}

module attributes {stable_mosaic.version = 11 : i64} {
  func.func @_bn_relu_kernel(%arg0: i32, %arg1: i32, %arg2: memref<1x8x256xbf16, #tpu.memory_space<vmem>>, %arg3: memref<8x1xf32, #tpu.memory_space<vmem>>, %arg4: memref<8x1xf32, #tpu.memory_space<vmem>>, %arg5: memref<1x8x256xf32, #tpu.memory_space<vmem>>) attributes {dimension_semantics = [#tpu.dimension_semantics<parallel>, #tpu.dimension_semantics<parallel>], iteration_bounds = array<i64: 2, 1>, scalar_prefetch = 0 : i64, scratch_operands = 0 : i64, tpu.core_type = #tpu.core_type<tc>, window_params = [{transform_indices = @transform_0, window_bounds = array<i64: 1, 8, 256>}, {pipeline_mode = #tpu.pipeline_mode<synchronous>, transform_indices = @transform_1, window_bounds = array<i64: 8, 1>}, {pipeline_mode = #tpu.pipeline_mode<synchronous>, transform_indices = @transform_2, window_bounds = array<i64: 8, 1>}, {transform_indices = @transform_3, window_bounds = array<i64: 1, 8, 256>}]} {
    %c0 = arith.constant 0 : index
    %c0_0 = arith.constant 0 : index
    %c0_1 = arith.constant 0 : index
    %0 = vector.load %arg2[%c0, %c0_0, %c0_1] : memref<1x8x256xbf16, #tpu.memory_space<vmem>>, vector<1x8x256xbf16>
    %1 = vector.shape_cast %0 : vector<1x8x256xbf16> to vector<8x256xbf16>
    %2 = arith.extf %1 : vector<8x256xbf16> to vector<8x256xf32>
    %c0_2 = arith.constant 0 : index
    %c0_3 = arith.constant 0 : index
    %3 = vector.load %arg3[%c0_2, %c0_3] : memref<8x1xf32, #tpu.memory_space<vmem>>, vector<8x1xf32>
    %4 = vector.broadcast %3 : vector<8x1xf32> to vector<8x256xf32>
    %5 = arith.mulf %2, %4 : vector<8x256xf32>
    %c0_4 = arith.constant 0 : index
    %c0_5 = arith.constant 0 : index
    %6 = vector.load %arg4[%c0_4, %c0_5] : memref<8x1xf32, #tpu.memory_space<vmem>>, vector<8x1xf32>
    %7 = vector.broadcast %6 : vector<8x1xf32> to vector<8x256xf32>
    %8 = arith.addf %5, %7 : vector<8x256xf32>
    %cst = arith.constant 0.000000e+00 : f32
    %9 = vector.broadcast %cst : f32 to vector<8x256xf32>
    %10 = arith.maximumf %8, %9 : vector<8x256xf32>
    %c0_6 = arith.constant 0 : index
    %c0_7 = arith.constant 0 : index
    %c0_8 = arith.constant 0 : index
    %11 = vector.load %arg5[%c0_6, %c0_7, %c0_8] : memref<1x8x256xf32, #tpu.memory_space<vmem>>, vector<1x8x256xf32>
    %12 = vector.shape_cast %11 : vector<1x8x256xf32> to vector<8x256xf32>
    %13 = vector.shape_cast %10 : vector<8x256xf32> to vector<1x8x256xf32>
    tpu.vector_store %arg5[%c0_6, %c0_7, %c0_8], %13 {strides = array<i32>} : memref<1x8x256xf32, #tpu.memory_space<vmem>>, vector<1x8x256xf32>,
    return
  }
  func.func @transform_0(%arg0: i32, %arg1: i32) -> (i32, i32, i32) {
    %c0_i32 = arith.constant 0 : i32
    %c0_i32_0 = arith.constant 0 : i32
    return %arg0, %c0_i32, %arg1 : i32, i32, i32
  }
  func.func @transform_1(%arg0: i32, %arg1: i32) -> (i32, i32) {
    %c0_i32 = arith.constant 0 : i32
    %c0_i32_0 = arith.constant 0 : i32
    %c0_i32_1 = arith.constant 0 : i32
    return %c0_i32, %c0_i32_0 : i32, i32
  }
  func.func @transform_2(%arg0: i32, %arg1: i32) -> (i32, i32) {
    %c0_i32 = arith.constant 0 : i32
    %c0_i32_0 = arith.constant 0 : i32
    %c0_i32_1 = arith.constant 0 : i32
    return %c0_i32, %c0_i32_0 : i32, i32
  }
  func.func @transform_3(%arg0: i32, %arg1: i32) -> (i32, i32, i32) {
    %c0_i32 = arith.constant 0 : i32
    %c0_i32_0 = arith.constant 0 : i32
    return %arg0, %c0_i32, %arg1 : i32, i32, i32
  }
}

</mosaic_0001>

<bundles_post_ra>
// kernel: conv_block_forward.3
= control target key start
LH: loop header
LB: loop body
LE: loop exit
PB: predicated region body
PF: predicated region fallthrough
CT: control target
= control target key end

     0   :  { %s404_s12 = smov 0   ;;  %s406_s13 = smov 0   ;;  %s443_s0 = inlined_call_operand.vmem [shape: bf16[2,8,256], index: 0, kind: input, shape index: {}]   ;;  %s444_s1 = inlined_call_operand.vmem [shape: f32[8,1], index: 1, kind: input, shape index: {}]   ;;  %s445_s2 = inlined_call_operand.vmem [shape: f32[8,1], index: 2, kind: input, shape index: {}]   ;;  %s446_s3 = inlined_call_operand.vmem [shape: f32[2,8,256], index: 3, kind: output, shape index: {}]  }
   0x1   :  { %s408_s14 = smov 0  }
   0x2 LB: > { %s25_s15 = sadd.s32 1, %s377_s13  ;;  %p324_p0 = scmp.ge.s32.totalorder %s381_s14, 1  ;;  %s381_s14 = sphi %s408_s14, %s13_s14   ;;  %s377_s13 = sphi %s406_s13, %s448_s13   ;;  %s373_s12 = sphi %s404_s12, %s447_s12  }
   0x3   : > { %p27_p1 = scmp.ge.s32.totalorder %s25_s15, 2  ;;  %p158_p2 = scmp.lt.s32.totalorder %s381_s14, 3 }
   0x5   : > { %s450_s15 = smov (%p27_p1, %s25_s15), 0  ;;  %p159_p3 = pnand %p324_p0, %p158_p2 }
   0x6   : > { %v213_v0 = vld [vmem:[%s444_s1] sm:$0xff] (!%p159_p3)  ;;  %v383_v1 = vmov (!%p159_p3), 0   ;;  %p191_p4 = scmp.lt.s32.totalorder (!%p159_p3), %s373_s12, 1 }
   0x7   : > { %162 = sbr.rel (%p159_p3) target bundleno = 145 (0x91), region = 32  ;;  %358 = vset.pattern.permute.xlu0 (!%p159_p3), %v383_v1  ;;  %v221_v2 = vld [vmem:[%s445_s2] sm:$0xff] (!%p159_p3) }
   0x8   : > { %216 = vperm.xlu0 (!%p159_p3), %358, %v213_v0  }
   0xc   : > { %224 = vperm.xlu0 (!%p159_p3), %358, %v221_v2  }
   0xe   : > { %s452_s12 = smov (!%p191_p4, %s373_s12), 1 }
   0xf   : > { %s331_s20 = sshll.u32 %s452_s12, 3  ;;  %s332_s24 = sshll.u32 %s452_s12, 4 }
  0x10   : > { %s198_s23 = scalar_lea.vmem %s443_s0, %s331_s20  ;;  %s208_s27 = scalar_lea.vmem %s446_s3, %s332_s24 }
  0x11   : > { %v210_v3 = vld [vmem:[%s198_s23] sm:$0xff] }
  0x12   : > { %v211_v4 = vunpack.c.l.bf16 %v210_v3  ;;  %v212_v5 = vunpack.c.h.bf16 %v210_v3 }
  0x87   : > { %v217_v6 = vpop.permute.xlu0 %216 }
  0x88   : > { %v219_v7 = vmul.f32 %v217_v6, %v211_v4  ;;  %v220_v8 = vmul.f32 %v217_v6, %v212_v5 }
  0x8b   : > { %v225_v9 = vpop.permute.xlu0 %224 }
  0x8c   : > { %v227_v10 = vadd.f32 %v225_v9, %v219_v7  ;;  %v228_v11 = vadd.f32 %v225_v9, %v220_v8 }
  0x8e   : > { %v229_v12 = vmax.f32 %v227_v10, 0.0  ;;  %v230_v13 = vmax.f32 %v228_v11, 0.0 }
  0x90   : > { %231 = vst [vmem:[%s208_s27] sm:$0xff] %v229_v12  ;;  %232 = vst [vmem:[%s208_s27 + $0x8] sm:$0xff] %v230_v13 }
  0x91 PF: > { %s13_s14 = sadd.s32 1, %s381_s14   ;;  %s447_s12 = smov %s377_s13 }
  0x92   : > { %p10_p5 = scmp.ge.s32.totalorder %s13_s14, 4   ;;  %s448_s13 = smov %s450_s15 }
  0x94   :  { %12 = sbr.rel (!%p10_p5) target bundleno = 2 (0x2), region = 62 }

// kernel: conv_block_forward.2
= control target key start
LH: loop header
LB: loop body
LE: loop exit
PB: predicated region body
PF: predicated region fallthrough
CT: control target
= control target key end

     0   :  { %s6576_s12 = smov 0   ;;  %s6578_s13 = smov 0   ;;  %s8454_s0 = inlined_call_operand.vmem [shape: bf16[2,18,18,4], index: 0, kind: input, shape index: {}]   ;;  %s8455_s1 = inlined_call_operand.vmem [shape: bf16[9,4,128], index: 1, kind: input, shape index: {}]   ;;  %s8456_s2 = inlined_call_operand.vmem [shape: bf16[2,8,256], index: 2, kind: output, shape index: {0}]   ;;  %s8457_s3 = inlined_call_operand.vmem [shape: f32[2,2,128], index: 3, kind: output, shape index: {1}]  }
   0x1   :  { %s6580_s14 = smov 0  }
   0x2 LB: > { %s26_s15 = sadd.s32 1, %s6549_s13  ;;  %p5090_p0 = scmp.ge.s32.totalorder %s6553_s14, 1  ;;  %s6553_s14 = sphi %s6580_s14, %s14_s14   ;;  %s6549_s13 = sphi %s6578_s13, %s8526_s13   ;;  %s6545_s12 = sphi %s6576_s12, %s8525_s12  }
   0x3   : > { %p28_p1 = scmp.ge.s32.totalorder %s26_s15, 2  ;;  %p154_p2 = scmp.lt.s32.totalorder %s6553_s14, 3 }
   0x5   : > { %s8528_s15 = smov (%p28_p1, %s26_s15), 0  ;;  %p155_p3 = pnand %p5090_p0, %p154_p2 }
   0x7   : > { %158 = sbr.rel (%p155_p3) target bundleno = 693 (0x2b5), region = 28 }
   0xe   : > { %v5095_v0 = vld [vmem:[%s8455_s1 + $0x2] sm:$0x3]  ;;  %vm745_vm0 = vcmask 1041408   ;;  %v5322_v1 = vld [vmem:[%s8455_s1 + $0x8] sm:$0x3]  ;;  %p186_p4 = scmp.lt.s32.totalorder %s6545_s12, 1 }
   0xf   : > { %6353 = vmatprep.subr.msk.bf16.mxu1 %vm745_vm0, %v5095_v0  ;;  %6357 = vmatprep.subr.msk.bf16.mxu0 %vm745_vm0, %v5322_v1  ;;  %v747_v2 = vsel %vm745_vm0, %v5095_v0, 0  ;;  %v6604_v3 = vsel %vm745_vm0, %v5322_v1, 0  ;;  %v242_v4 = vld [vmem:[%s8455_s1] sm:$0x3]  ;;  %v5387_v5 = vld [vmem:[%s8455_s1 + $0xa] sm:$0x3] }
  0x10   : > { %8471 = vst [vmem:[#allocation2_spill] sm:$0xff] %v6604_v3  ;;  %5790 = vmatpush3.bf16.msra.mxu1 %v747_v2  ;;  %5926 = vmatpush3.bf16.msra.mxu0 %v6604_v3  ;;  %s8530_s12 = smov (!%p186_p4, %s6545_s12), 1  ;;  %vm259_vm1 = vsmask.f32 3328  ;;  %vm260_vm2 = vsmask.f32 7440 }
  0x11   : > { %6354 = vmatprep.subr.msk.bf16.mxu1 %vm745_vm0, %v242_v4  ;;  %6359 = vmatprep.subr.msk.bf16.mxu0 %vm745_vm0, %v5387_v5  ;;  %s6363_s24 = smul.u32 216, %s8530_s12  ;;  %vm696_vm3 = vcmask 31744   ;;  %v6634_v17 = vsel %vm745_vm0, %v242_v4, 0  ;;  %v6640_v26 = vld [vmem:[%s8455_s1 + $0xc] sm:$0x3]  ;;  %vm6647_vm4 = vmor %vm259_vm1, %vm260_vm2  ;;  %v6653_v37 = vsel %vm745_vm0, %v5387_v5, 0 }
  0x12   : > { %v6657_v41 = vsel %vm745_vm0, %v6640_v26, 0  ;;  %vm1250_vm5 = vcmask 1042432   ;;  %vm1251_vm6 = vcmask 1046532   ;;  %s5094_s19 = sshll.u32 %s8530_s12, 1  ;;  %vm4881_vm8 = vcmask 1040384   ;;  %s5634_s23 = sshll.u32 %s8530_s12, 3 }
  0x13   : > { %s6621_s27 = scalar_lea.vmem %s8454_s0, %s6363_s24  ;;  %vm6873_vm7 = vmor %vm1250_vm5, %vm1251_vm6  ;;  %s8301_s22 = scalar_lea.vmem %s8457_s3, %s5094_s19 }
  0x14   : > { %v210_v6 = vld [vmem:[%s6621_s27] sm:$0xf]  ;;  %v211_v7 = vld [vmem:[%s6621_s27 + $0x4] sm:$0xf]  ;;  %v243_v8 = vld [vmem:[%s6621_s27 + $0x8] sm:$0x1]  ;;  %s199_s26 = scalar_lea.vmem %s8456_s2, %s5634_s23 }
  0x15   : > { %v263_v9 = vshrl.u32 %v210_v6, 16  ;;  %v266_v10 = vshll.u32 %v210_v6, 16  ;;  %v272_v11 = vshll.u32 %v211_v7, 16  ;;  %v276_v12 = vshrl.u32 %v211_v7, 16  ;;  %v5274_v13 = vld [vmem:[%s6621_s27 + $0xc] sm:$0xf] }
  0x16   : > { %v282_v14 = vshll.u32 %v243_v8, 16  ;;  %v6628_v15 = vld [vmem:[%s6621_s27 + $0x10] sm:$0xf]  ;;  %v6631_v16 = vld [vmem:[%s6621_s27 + $0x14] sm:$0x1]  ;;  %v2070_v23 = vshrl.u32 %v5274_v13, 16 }
  0x17   : > { %v265_v18 = vrot.slane %v263_v9, 4  ;;  %v268_v19 = vrot.slane %v266_v10, 5  ;;  %v274_v20 = vrot.slane %v272_v11, 5  ;;  %v278_v21 = vrot.slane %v276_v12, 4  ;;  %v212_v31 = vld [vmem:[%s6621_s27 + $0xc] sm:$0xf] }
  0x18   : > { %v284_v22 = vrot.slane %v282_v14, 5  ;;  %v2073_v24 = vshll.u32 %v5274_v13, 16  ;;  %v2079_v25 = vshll.u32 %v6628_v15, 16  ;;  %v2083_v29 = vshrl.u32 %v6628_v15, 16  ;;  %v213_v36 = vld [vmem:[%s6621_s27 + $0x10] sm:$0xf] }
  0x19   : > { %v269_v27 = vor.u32 %v268_v19, %v265_v18  ;;  %v279_v28 = vor.u32 %v278_v21, %v274_v20  ;;  %v2089_v30 = vshll.u32 %v6631_v16, 16  ;;  %v2072_v33 = vrot.slane %v2070_v23, 4  ;;  %v244_v44 = vld [vmem:[%s6621_s27 + $0x14] sm:$0x1]  ;;  %v5277_v55 = vld [vmem:[%s6621_s27 + $0x18] sm:$0xf] }
  0x1a   : > { %v2075_v34 = vrot.slane %v2073_v24, 5  ;;  %v2081_v35 = vrot.slane %v2079_v25, 5  ;;  %v2085_v40 = vrot.slane %v2083_v29, 4  ;;  %v287_v45 = vshrl.u32 %v212_v31, 16  ;;  %v6666_v60 = vld [vmem:[%s6621_s27 + $0x1c] sm:$0xf] }
  0x1b   : > { %v270_v38 = vrot.slane %v269_v27, 4  ;;  %v280_v39 = vrot.slane %v279_v28, 4  ;;  %v2091_v43 = vrot.slane %v2089_v30, 5  ;;  %v290_v46 = vshll.u32 %v212_v31, 16  ;;  %v6674_v1 = vld [vmem:[%s6621_s27 + $0x20] sm:$0x1] }
  0x1c   : > { %v2076_v42 = vor.u32 %v2075_v34, %v2072_v33  ;;  %v2086_v49 = vor.u32 %v2085_v40, %v2081_v35  ;;  %v296_v50 = vshll.u32 %v213_v36, 16  ;;  %v289_v53 = vrot.slane %v287_v45, 4  ;;  %v214_v18 = vld [vmem:[%s6621_s27 + $0x18] sm:$0xf]  ;;  %v215_v23 = vld [vmem:[%s6621_s27 + $0x1c] sm:$0xf] }
  0x1d   : > { %v275_v47 = vsel %vm6647_vm4, %v270_v38, %v274_v20  ;;  %v285_v48 = vsel %vm6647_vm4, %v280_v39, %v284_v22  ;;  %v292_v54 = vrot.slane %v290_v46, 5  ;;  %v300_v58 = vshrl.u32 %v213_v36, 16  ;;  %v245_v31 = vld [vmem:[%s6621_s27 + $0x20] sm:$0x1]  ;;  %v5280_v40 = vld [vmem:[%s6621_s27 + $0x24] sm:$0xf] }
  0x1e   : > { %v5096_v51 = vcombine.low %v275_v47, %v285_v48  ;;  %v2077_v52 = vrot.slane %v2076_v42, 4  ;;  %v2087_v56 = vrot.slane %v2086_v49, 4  ;;  %v298_v57 = vrot.slane %v296_v50, 5  ;;  %v6697_v46 = vld [vmem:[%s6621_s27 + $0x28] sm:$0xf] }
  0x1f   : > { %v306_v59 = vshll.u32 %v244_v44, 16  ;;  %v2813_v62 = vrot.slane %v6628_v15, 5  ;;  %v2816_v63 = vrot.slane %v6631_v16, 5  ;;  %v293_v0 = vor.u32 %v292_v54, %v289_v53  ;;  %v6706_v54 = vld [vmem:[%s6621_s27 + $0x2c] sm:$0x1] }
  0x20   : > { %5791 = vmatprep.mubr.msk.bf16.mxu1 %vm696_vm3, %v5096_v51  ;;  %v2082_v61 = vsel %vm6647_vm4, %v2077_v52, %v2081_v35  ;;  %v2092_v2 = vsel %vm6647_vm4, %v2087_v56, %v2091_v43  ;;  %v302_v4 = vrot.slane %v300_v58, 4  ;;  %v2094_v6 = vshrl.u32 %v5277_v55, 16  ;;  %v5176_v51 = vld [vmem:[%s8455_s1 + $0x4] sm:$0x3]  ;;  %v6906_v16 = vld [vmem:[%s6621_s27 + $0x7c] sm:$0xf] }
  0x21   : > { %v308_v5 = vrot.slane %v306_v59, 5  ;;  %v5323_v7 = vcombine.low %v2082_v61, %v2092_v2  ;;  %v294_v8 = vrot.slane %v293_v0, 4  ;;  %v2097_v9 = vshll.u32 %v5277_v55, 16  ;;  %v216_v0 = vld [vmem:[%s6621_s27 + $0x24] sm:$0xf] }
  0x22   : > { %v2103_v10 = vshll.u32 %v6666_v60, 16  ;;  %v303_v11 = vor.u32 %v302_v4, %v298_v57  ;;  %v2096_v12 = vrot.slane %v2094_v6, 4  ;;  %v2107_v13 = vshrl.u32 %v6666_v60, 16 }
  0x23   : > { %v2113_v14 = vshll.u32 %v6674_v1, 16  ;;  %5927 = vmatprep.mubr.msk.bf16.mxu0 %vm696_vm3, %v5323_v7  ;;  %v299_v19 = vsel %vm6647_vm4, %v294_v8, %v298_v57  ;;  %v2099_v20 = vrot.slane %v2097_v9, 5  ;;  %v2820_v22 = vrot.slane %v6666_v60, 5  ;;  %v217_v7 = vld [vmem:[%s6621_s27 + $0x28] sm:$0xf] }
  0x24   : > { %v2105_v21 = vrot.slane %v2103_v10, 5  ;;  %v304_v24 = vrot.slane %v303_v11, 4  ;;  %v2109_v25 = vrot.slane %v2107_v13, 4  ;;  %v2823_v28 = vrot.slane %v6674_v1, 5  ;;  %v246_v13 = vld [vmem:[%s6621_s27 + $0x2c] sm:$0x1] }
  0x25   : > { %v2115_v27 = vrot.slane %v2113_v14, 5  ;;  %v2100_v29 = vor.u32 %v2099_v20, %v2096_v12  ;;  %v6690_v30 = vrot.slane %v2820_v22, 4  ;;  %v311_v33 = vshrl.u32 %v214_v18, 16 }
  0x26   : > { %v314_v34 = vshll.u32 %v214_v18, 16  ;;  %v309_v35 = vsel %vm6647_vm4, %v304_v24, %v308_v5  ;;  %v2110_v36 = vor.u32 %v2109_v25, %v2105_v21  ;;  %v320_v38 = vshll.u32 %v215_v23, 16  ;;  %v5283_v24 = vld [vmem:[%s6621_s27 + $0x30] sm:$0xf] }
  0x27   : > { %v324_v39 = vshrl.u32 %v215_v23, 16  ;;  %v5097_v42 = vcombine.low %v299_v19, %v309_v35  ;;  %v2101_v43 = vrot.slane %v2100_v29, 4  ;;  %v313_v44 = vrot.slane %v311_v33, 4  ;;  %v6726_v33 = vld [vmem:[%s6621_s27 + $0x34] sm:$0xf] }
  0x28   : > { %v316_v45 = vrot.slane %v314_v34, 5  ;;  %v2111_v47 = vrot.slane %v2110_v36, 4  ;;  %v322_v48 = vrot.slane %v320_v38, 5  ;;  %v330_v50 = vshll.u32 %v245_v31, 16 }
  0x29   : > { %v326_v49 = vrot.slane %v324_v39, 4  ;;  %5792 = vmatmul.mubr.msk.bf16.vlgmr.msra.gmra.mrb[0].mxu1 %vm696_vm3, %v5097_v42  ;;  %v2106_v52 = vsel %vm6647_vm4, %v2101_v43, %v2105_v21  ;;  %v2118_v55 = vshrl.u32 %v5280_v40, 16  ;;  %v2121_v56 = vshll.u32 %v5280_v40, 16  ;;  %v6734_v40 = vld [vmem:[%s6621_s27 + $0x38] sm:$0x1] }
  0x2a   : > { %v317_v53 = vor.u32 %v316_v45, %v313_v44  ;;  %5824 = vmatpush3.bf16.msra.mxu1 %v6634_v17  ;;  %v2116_v57 = vsel %vm6647_vm4, %v2111_v47, %v2115_v27  ;;  %v332_v59 = vrot.slane %v330_v50, 5  ;;  %v2127_v61 = vshll.u32 %v6697_v46, 16 }
  0x2b   : > { %v327_v58 = vor.u32 %v326_v49, %v322_v48  ;;  %v5324_v2 = vcombine.low %v2106_v52, %v2116_v57  ;;  %v2120_v5 = vrot.slane %v2118_v55, 4  ;;  %v2123_v6 = vrot.slane %v2121_v56, 5  ;;  %6355 = vmatprep.subr.msk.bf16.mxu1 %vm745_vm0, %v5176_v51  ;;  %v218_v52 = vld [vmem:[%s6621_s27 + $0x30] sm:$0xf] }
  0x2c   : > { %v318_v4 = vrot.slane %v317_v53, 4  ;;  %v2129_v9 = vrot.slane %v2127_v61, 5  ;;  %v2131_v17 = vshrl.u32 %v6697_v46, 16  ;;  %v2137_v10 = vshll.u32 %v6706_v54, 16 }
  0x2d   : > { %v328_v8 = vrot.slane %v327_v58, 4  ;;  %5928 = vmatmul.mubr.msk.bf16.vlgmr.msra.gmra.mrb[0].mxu0 %vm696_vm3, %v5324_v2  ;;  %v2124_v12 = vor.u32 %v2123_v6, %v2120_v5  ;;  %v335_v14 = vshrl.u32 %v216_v0, 16  ;;  %v338_v18 = vshll.u32 %v216_v0, 16  ;;  %v219_v58 = vld [vmem:[%s6621_s27 + $0x34] sm:$0xf] }
  0x2e   : > { %v323_v11 = vsel %vm6647_vm4, %v318_v4, %v322_v48  ;;  %5960 = vmatpush3.bf16.msra.mxu0 %v6653_v37  ;;  %v2133_v20 = vrot.slane %v2131_v17, 4  ;;  %v2139_v21 = vrot.slane %v2137_v10, 5  ;;  %v344_v23 = vshll.u32 %v217_v7, 16  ;;  %v247_v4 = vld [vmem:[%s6621_s27 + $0x38] sm:$0x1] }
  0x2f   : > { %v333_v19 = vsel %vm6647_vm4, %v328_v8, %v332_v59  ;;  %v2125_v27 = vrot.slane %v2124_v12, 4  ;;  %v337_v29 = vrot.slane %v335_v14, 4  ;;  %v340_v31 = vrot.slane %v338_v18, 5  ;;  %6360 = vmatprep.subr.msk.bf16.mxu0 %vm745_vm0, %v6640_v26  ;;  %v5286_v12 = vld [vmem:[%s6621_s27 + $0x3c] sm:$0xf] }
  0x30   : > { %v5098_v25 = vcombine.low %v323_v11, %v333_v19  ;;  %v2134_v34 = vor.u32 %v2133_v20, %v2129_v9  ;;  %v346_v35 = vrot.slane %v344_v23, 5  ;;  %v348_v37 = vshrl.u32 %v217_v7, 16  ;;  %v6751_v20 = vld [vmem:[%s6621_s27 + $0x40] sm:$0xf] }
  0x31   : > { %v354_v36 = vshll.u32 %v246_v13, 16  ;;  %v2130_v38 = vsel %vm6647_vm4, %v2125_v27, %v2129_v9  ;;  %v341_v39 = vor.u32 %v340_v31, %v337_v29  ;;  %v2142_v42 = vshrl.u32 %v5283_v24, 16 }
  0x32   : > { %5795 = vmatprep.mubr.msk.bf16.mxu1 %vm696_vm3, %v5098_v25  ;;  %v2145_v43 = vshll.u32 %v5283_v24, 16  ;;  %v2135_v44 = vrot.slane %v2134_v34, 4  ;;  %v350_v45 = vrot.slane %v348_v37, 4  ;;  %v2151_v26 = vshll.u32 %v6726_v33, 16  ;;  %v6756_v34 = vld [vmem:[%s6621_s27 + $0x44] sm:$0x1] }
  0x33   : > { %v356_v47 = vrot.slane %v354_v36, 5  ;;  %v342_v48 = vrot.slane %v341_v39, 4  ;;  %v2144_v49 = vrot.slane %v2142_v42, 4  ;;  %v2155_v51 = vshrl.u32 %v6726_v33, 16  ;;  %v220_v42 = vld [vmem:[%s6621_s27 + $0x3c] sm:$0xf] }
  0x34   : > { %v2147_v50 = vrot.slane %v2145_v43, 5  ;;  %v2140_v53 = vsel %vm6647_vm4, %v2135_v44, %v2139_v21  ;;  %v351_v55 = vor.u32 %v350_v45, %v346_v35  ;;  %v2153_v56 = vrot.slane %v2151_v26, 5  ;;  %v221_v26 = vld [vmem:[%s6621_s27 + $0x40] sm:$0xf] }
  0x35   : > { %v2161_v57 = vshll.u32 %v6734_v40, 16  ;;  %v5325_v59 = vcombine.low %v2130_v38, %v2140_v53  ;;  %v347_v61 = vsel %vm6647_vm4, %v342_v48, %v346_v35  ;;  %v2157_v2 = vrot.slane %v2155_v51, 4 }
  0x36   : > { %v2148_v0 = vor.u32 %v2147_v50, %v2144_v49  ;;  %v352_v5 = vrot.slane %v351_v55, 4  ;;  %v359_v7 = vshrl.u32 %v218_v52, 16  ;;  %v362_v8 = vshll.u32 %v218_v52, 16 }
  0x37   : > { %v2163_v6 = vrot.slane %v2161_v57, 5  ;;  %5931 = vmatprep.mubr.msk.bf16.mxu0 %vm696_vm3, %v5325_v59  ;;  %v2158_v17 = vor.u32 %v2157_v2, %v2153_v56  ;;  %v368_v10 = vshll.u32 %v219_v58, 16  ;;  %v372_v11 = vshrl.u32 %v219_v58, 16  ;;  %v5289_v2 = vld [vmem:[%s6621_s27 + $0x48] sm:$0xf] }
  0x38   : > { %v2149_v9 = vrot.slane %v2148_v0, 4  ;;  %v357_v13 = vsel %vm6647_vm4, %v352_v5, %v356_v47  ;;  %v361_v14 = vrot.slane %v359_v7, 4  ;;  %v364_v18 = vrot.slane %v362_v8, 5  ;;  %v6774_v8 = vld [vmem:[%s6621_s27 + $0x4c] sm:$0xf] }
  0x39   : > { %v378_v19 = vshll.u32 %v247_v4, 16  ;;  %v5099_v21 = vcombine.low %v347_v61, %v357_v13  ;;  %v2159_v24 = vrot.slane %v2158_v17, 4  ;;  %v370_v25 = vrot.slane %v368_v10, 5  ;;  %v248_v61 = vld [vmem:[%s6621_s27 + $0x44] sm:$0x1] }
  0x3a   : > { %v2154_v23 = vsel %vm6647_vm4, %v2149_v9, %v2153_v56  ;;  %v365_v27 = vor.u32 %v364_v18, %v361_v14  ;;  %v374_v29 = vrot.slane %v372_v11, 4  ;;  %v2166_v35 = vshrl.u32 %v5286_v12, 16 }
  0x3b   : > { %v380_v31 = vrot.slane %v378_v19, 5  ;;  %5796 = vmatmul.mubr.msk.bf16.gmra.mrb[4].mxu1 %vm696_vm3, %v5099_v21  ;;  %v2164_v37 = vsel %vm6647_vm4, %v2159_v24, %v2163_v6  ;;  %v2169_v36 = vshll.u32 %v5286_v12, 16  ;;  %v2175_v38 = vshll.u32 %v6751_v20, 16 }
  0x3c   : > { %v2179_v39 = vshrl.u32 %v6751_v20, 16  ;;  %v5326_v43 = vcombine.low %v2154_v23, %v2164_v37  ;;  %v366_v44 = vrot.slane %v365_v27, 4  ;;  %v375_v45 = vor.u32 %v374_v29, %v370_v25  ;;  %v6782_v23 = vld [vmem:[%s6621_s27 + $0x50] sm:$0x1]  ;;  %v6786_v27 = vld [vmem:[%s6621_s27 + $0x48] sm:$0xf] }
  0x3d   : > { %v2168_v47 = vrot.slane %v2166_v35, 4  ;;  %v2171_v48 = vrot.slane %v2169_v36, 5  ;;  %v2177_v49 = vrot.slane %v2175_v38, 5  ;;  %v2185_v51 = vshll.u32 %v6756_v34, 16  ;;  %v6789_v36 = vld [vmem:[%s6621_s27 + $0x4c] sm:$0xf] }
  0x3e   : > { %v2181_v50 = vrot.slane %v2179_v39, 4  ;;  %5932 = vmatmul.mubr.msk.bf16.gmra.mrb[4].mxu0 %vm696_vm3, %v5326_v43  ;;  %v371_v52 = vsel %vm6647_vm4, %v366_v44, %v370_v25  ;;  %v376_v53 = vrot.slane %v375_v45, 4  ;;  %v383_v55 = vshrl.u32 %v220_v42, 16 }
  0x3f   : > { %v386_v56 = vshll.u32 %v220_v42, 16  ;;  %v2172_v57 = vor.u32 %v2171_v48, %v2168_v47  ;;  %v2187_v59 = vrot.slane %v2185_v51, 5  ;;  %v392_v0 = vshll.u32 %v221_v26, 16 }
  0x40   : > { %v2182_v58 = vor.u32 %v2181_v50, %v2177_v49  ;;  %v381_v4 = vsel %vm6647_vm4, %v376_v53, %v380_v31  ;;  %v385_v5 = vrot.slane %v383_v55, 4  ;;  %v396_v7 = vshrl.u32 %v221_v26, 16  ;;  %v249_v26 = vld [vmem:[%s6621_s27 + $0x50] sm:$0x1]  ;;  %v5292_v53 = vld [vmem:[%s6621_s27 + $0x54] sm:$0xf] }
  0x41   : > { %v388_v6 = vrot.slane %v386_v56, 5  ;;  %v5100_v9 = vcombine.low %v371_v52, %v381_v4  ;;  %v2173_v17 = vrot.slane %v2172_v57, 4  ;;  %v394_v11 = vrot.slane %v392_v0, 5  ;;  %v6805_v4 = vld [vmem:[%s6621_s27 + $0x58] sm:$0xf] }
  0x42   : > { %v2183_v10 = vrot.slane %v2182_v58, 4  ;;  %v398_v13 = vrot.slane %v396_v7, 4  ;;  %v402_v14 = vshll.u32 %v248_v61, 16  ;;  %v2190_v18 = vshrl.u32 %v5289_v2, 16 }
  0x43   : > { %v389_v12 = vor.u32 %v388_v6, %v385_v5  ;;  %5799 = vmatprep.mubr.msk.bf16.mxu1 %vm696_vm3, %v5100_v9  ;;  %v2178_v19 = vsel %vm6647_vm4, %v2173_v17, %v2177_v49  ;;  %v2193_v24 = vshll.u32 %v5289_v2, 16  ;;  %v2199_v25 = vshll.u32 %v6774_v8, 16 }
  0x44   : > { %v2188_v21 = vsel %vm6647_vm4, %v2183_v10, %v2187_v59  ;;  %v399_v35 = vor.u32 %v398_v13, %v394_v11  ;;  %v404_v37 = vrot.slane %v402_v14, 5  ;;  %v2192_v38 = vrot.slane %v2190_v18, 4 }
  0x45   : > { %v5327_v29 = vcombine.low %v2178_v19, %v2188_v21  ;;  %v390_v31 = vrot.slane %v389_v12, 4  ;;  %v2195_v39 = vrot.slane %v2193_v24, 5  ;;  %v2201_v42 = vrot.slane %v2199_v25, 5  ;;  %v6811_v12 = vld [vmem:[%s6621_s27 + $0x5c] sm:$0x1] }
  0x46   : > { %v2203_v43 = vshrl.u32 %v6774_v8, 16  ;;  %v400_v45 = vrot.slane %v399_v35, 4  ;;  %v2209_v47 = vshll.u32 %v6782_v23, 16  ;;  %v407_v48 = vshrl.u32 %v6786_v27, 16  ;;  %v6815_v24 = vld [vmem:[%s6621_s27 + $0x54] sm:$0xf] }
  0x47   : > { %5935 = vmatprep.mubr.msk.bf16.mxu0 %vm696_vm3, %v5327_v29  ;;  %v395_v44 = vsel %vm6647_vm4, %v390_v31, %v394_v11  ;;  %v2196_v49 = vor.u32 %v2195_v39, %v2192_v38  ;;  %v410_v51 = vshll.u32 %v6786_v27, 16  ;;  %v416_v52 = vshll.u32 %v6789_v36, 16 }
  0x48   : > { %v2205_v50 = vrot.slane %v2203_v43, 4  ;;  %v405_v55 = vsel %vm6647_vm4, %v400_v45, %v404_v37  ;;  %v2211_v56 = vrot.slane %v2209_v47, 5  ;;  %v409_v57 = vrot.slane %v407_v48, 4  ;;  %v6821_v37 = vld [vmem:[%s6621_s27 + $0x58] sm:$0xf] }
  0x49   : > { %v420_v58 = vshrl.u32 %v6789_v36, 16  ;;  %v5101_v59 = vcombine.low %v395_v44, %v405_v55  ;;  %v2197_v61 = vrot.slane %v2196_v49, 4  ;;  %v412_v2 = vrot.slane %v410_v51, 5 }
  0x4a   : > { %v2206_v0 = vor.u32 %v2205_v50, %v2201_v42  ;;  %v418_v5 = vrot.slane %v416_v52, 5  ;;  %v426_v7 = vshll.u32 %v249_v26, 16  ;;  %v2214_v9 = vshrl.u32 %v5292_v53, 16  ;;  %v250_v26 = vld [vmem:[%s6621_s27 + $0x5c] sm:$0x1] }
  0x4b   : > { %v422_v6 = vrot.slane %v420_v58, 4  ;;  %5800 = vmatmul.mubr.msk.bf16.gmra.mrb[8].mxu1 %vm696_vm3, %v5101_v59  ;;  %v2202_v17 = vsel %vm6647_vm4, %v2197_v61, %v2201_v42  ;;  %v413_v11 = vor.u32 %v412_v2, %v409_v57  ;;  %v2217_v13 = vshll.u32 %v5292_v53, 16  ;;  %v5295_v53 = vld [vmem:[%s6621_s27 + $0x60] sm:$0xf]  ;;  %v6835_v59 = vld [vmem:[%s6621_s27 + $0x64] sm:$0xf] }
  0x4c   : > { %v2207_v10 = vrot.slane %v2206_v0, 4  ;;  %v428_v18 = vrot.slane %v426_v7, 5  ;;  %v2216_v19 = vrot.slane %v2214_v9, 4  ;;  %v2223_v21 = vshll.u32 %v6805_v4, 16  ;;  %v6842_v9 = vld [vmem:[%s6621_s27 + $0x68] sm:$0x1] }
  0x4d   : > { %v423_v14 = vor.u32 %v422_v6, %v418_v5  ;;  %v414_v29 = vrot.slane %v413_v11, 4  ;;  %v2219_v31 = vrot.slane %v2217_v13, 5  ;;  %v2227_v35 = vshrl.u32 %v6805_v4, 16 }
  0x4e   : > { %v2212_v25 = vsel %vm6647_vm4, %v2207_v10, %v2211_v56  ;;  %v2225_v42 = vrot.slane %v2223_v21, 5  ;;  %v2233_v43 = vshll.u32 %v6811_v12, 16  ;;  %v431_v48 = vshrl.u32 %v6815_v24, 16 }
  0x4f   : > { %v5328_v38 = vcombine.low %v2202_v17, %v2212_v25  ;;  %v424_v39 = vrot.slane %v423_v14, 4  ;;  %v419_v44 = vsel %vm6647_vm4, %v414_v29, %v418_v5  ;;  %v2220_v45 = vor.u32 %v2219_v31, %v2216_v19  ;;  %v6846_v19 = vld [vmem:[%s6621_s27 + $0x60] sm:$0xf] }
  0x50   : > { %v2229_v47 = vrot.slane %v2227_v35, 4  ;;  %v2235_v50 = vrot.slane %v2233_v43, 5  ;;  %v434_v51 = vshll.u32 %v6815_v24, 16  ;;  %v440_v52 = vshll.u32 %v6821_v37, 16  ;;  %v6852_v35 = vld [vmem:[%s6621_s27 + $0x64] sm:$0xf] }
  0x51   : > { %5936 = vmatmul.mubr.msk.bf16.gmra.mrb[8].mxu0 %vm696_vm3, %v5328_v38  ;;  %v429_v49 = vsel %vm6647_vm4, %v424_v39, %v428_v18  ;;  %v2221_v56 = vrot.slane %v2220_v45, 4  ;;  %v433_v58 = vrot.slane %v431_v48, 4  ;;  %v444_v2 = vshrl.u32 %v6821_v37, 16 }
  0x52   : > { %v5102_v55 = vcombine.low %v419_v44, %v429_v49  ;;  %v2230_v57 = vor.u32 %v2229_v47, %v2225_v42  ;;  %v436_v61 = vrot.slane %v434_v51, 5  ;;  %v442_v0 = vrot.slane %v440_v52, 5 }
  0x53   : > { %v450_v5 = vshll.u32 %v250_v26, 16  ;;  %v2226_v6 = vsel %vm6647_vm4, %v2221_v56, %v2225_v42  ;;  %v2238_v17 = vshrl.u32 %v5295_v53, 16  ;;  %v2241_v10 = vshll.u32 %v5295_v53, 16 }
  0x54   : > { %5803 = vmatprep.mubr.msk.bf16.mxu1 %vm696_vm3, %v5102_v55  ;;  %v2231_v7 = vrot.slane %v2230_v57, 4  ;;  %v437_v11 = vor.u32 %v436_v61, %v433_v58  ;;  %v446_v13 = vrot.slane %v444_v2, 4  ;;  %v2247_v18 = vshll.u32 %v6835_v59, 16  ;;  %v5355_v58 = vld [vmem:[%s6621_s27 + $0xc] sm:$0xe] }
  0x55   : > { %v452_v14 = vrot.slane %v450_v5, 5  ;;  %v2240_v25 = vrot.slane %v2238_v17, 4  ;;  %v2243_v29 = vrot.slane %v2241_v10, 5  ;;  %v2251_v31 = vshrl.u32 %v6835_v59, 16 }
  0x56   : > { %v2236_v21 = vsel %vm6647_vm4, %v2231_v7, %v2235_v50  ;;  %v438_v39 = vrot.slane %v437_v11, 4  ;;  %v447_v42 = vor.u32 %v446_v13, %v442_v0  ;;  %v2249_v43 = vrot.slane %v2247_v18, 5  ;;  %v251_v50 = vld [vmem:[%s6621_s27 + $0x68] sm:$0x1] }
  0x57   : > { %v5329_v38 = vcombine.low %v2226_v6, %v2236_v21  ;;  %v2244_v44 = vor.u32 %v2243_v29, %v2240_v25  ;;  %v2253_v45 = vrot.slane %v2251_v31, 4  ;;  %v2257_v47 = vshll.u32 %v6842_v9, 16  ;;  %v6880_v29 = vld [vmem:[%s6621_s27 + $0x70] sm:$0xf] }
  0x58   : > { %v455_v26 = vshrl.u32 %v6846_v19, 16  ;;  %v443_v48 = vsel %vm6647_vm4, %v438_v39, %v442_v0  ;;  %v448_v49 = vrot.slane %v447_v42, 4  ;;  %v458_v51 = vshll.u32 %v6846_v19, 16  ;;  %v6867_v0 = vld [vmem:[%s6621_s27 + $0x6c] sm:$0xf] }
  0x59   : > { %5939 = vmatprep.mubr.msk.bf16.mxu0 %vm696_vm3, %v5329_v38  ;;  %v464_v52 = vshll.u32 %v6852_v35, 16  ;;  %v2245_v53 = vrot.slane %v2244_v44, 4  ;;  %v2254_v55 = vor.u32 %v2253_v45, %v2249_v43  ;;  %v2259_v56 = vrot.slane %v2257_v47, 5 }
  0x5a   : > { %v457_v57 = vrot.slane %v455_v26, 4  ;;  %v453_v61 = vsel %vm6647_vm4, %v448_v49, %v452_v14  ;;  %v460_v2 = vrot.slane %v458_v51, 5  ;;  %v468_v6 = vshrl.u32 %v6852_v35, 16  ;;  %v252_v26 = vld [vmem:[%s6621_s27 + $0x74] sm:$0x1] }
  0x5b   : > { %v466_v5 = vrot.slane %v464_v52, 5  ;;  %v5103_v7 = vcombine.low %v443_v48, %v453_v61  ;;  %v2250_v17 = vsel %vm6647_vm4, %v2245_v53, %v2249_v43  ;;  %v2255_v10 = vrot.slane %v2254_v55, 4  ;;  %v5356_v48 = vld [vmem:[%s6621_s27 + $0x18] sm:$0xe] }
  0x5c   : > { %v474_v11 = vshll.u32 %v251_v50, 16  ;;  %v461_v14 = vor.u32 %v460_v2, %v457_v57  ;;  %v470_v18 = vrot.slane %v468_v6, 4  ;;  %v5371_v21 = vrot.slane %v5355_v58, 9  ;;  %v6899_v53 = vld [vmem:[%s6621_s27 + $0x78] sm:$0xf] }
  0x5d   : > { %v2815_v25 = vrot.slane %v2813_v62, 4  ;;  %5804 = vmatmul.mubr.msk.bf16.gmra.mrb[12].mxu1 %vm696_vm3, %v5103_v7  ;;  %v2260_v31 = vsel %vm6647_vm4, %v2255_v10, %v2259_v56  ;;  %v479_v39 = vshrl.u32 %v6867_v0, 16  ;;  %v482_v42 = vshll.u32 %v6867_v0, 16  ;;  %v253_v57 = vld [vmem:[%s6621_s27 + $0x80] sm:$0x1] }
  0x5e   : > { %v476_v38 = vrot.slane %v474_v11, 5  ;;  %v5330_v43 = vcombine.low %v2250_v17, %v2260_v31  ;;  %v462_v44 = vrot.slane %v461_v14, 4  ;;  %v471_v45 = vor.u32 %v470_v18, %v466_v5  ;;  %v5357_v10 = vld [vmem:[%s6621_s27 + $0x24] sm:$0xe] }
  0x5f   : > { %v2814_v47 = vsel %vm6873_vm7, %v5371_v21, %v2813_v62  ;;  %v2817_v49 = vsel %vm6873_vm7, %v2815_v25, %v2816_v63  ;;  %v481_v50 = vrot.slane %v479_v39, 4  ;;  %v484_v51 = vrot.slane %v482_v42, 5  ;;  %v6925_v39 = vld [vmem:[%s6621_s27 + $0x84] sm:$0xf] }
  0x60   : > { %v488_v52 = vshll.u32 %v6880_v29, 16  ;;  %5940 = vmatmul.mubr.msk.bf16.gmra.mrb[12].mxu0 %vm696_vm3, %v5330_v43  ;;  %v467_v15 = vsel %vm6647_vm4, %v462_v44, %v466_v5  ;;  %v472_v62 = vrot.slane %v471_v45, 4  ;;  %v5388_v55 = vcombine.low %v2814_v47, %v2817_v49  ;;  %v6933_v43 = vld [vmem:[%s6621_s27 + $0x88] sm:$0xf] }
  0x61   : > { %v492_v56 = vshrl.u32 %v6880_v29, 16  ;;  %v485_v63 = vor.u32 %v484_v51, %v481_v50  ;;  %v498_v61 = vshll.u32 %v252_v26, 16  ;;  %v5372_v2 = vrot.slane %v5356_v48, 9 }
  0x62   : > { %v490_v58 = vrot.slane %v488_v52, 5  ;;  %v477_v6 = vsel %vm6647_vm4, %v472_v62, %v476_v38  ;;  %5961 = vmatprep.mubr.msk.bf16.mxu0 %vm696_vm3, %v5388_v55  ;;  %v2824_v5 = vsel %vm6873_vm7, %v6690_v30, %v2823_v28  ;;  %v503_v17 = vshrl.u32 %v6899_v53, 16  ;;  %v254_v52 = vld [vmem:[%s6621_s27 + $0x8c] sm:$0x1] }
  0x63   : > { %v494_v7 = vrot.slane %v492_v56, 4  ;;  %v5104_v11 = vcombine.low %v467_v15, %v477_v6  ;;  %v486_v14 = vrot.slane %v485_v63, 4  ;;  %v500_v18 = vrot.slane %v498_v61, 5 }
  0x64   : > { %v2821_v21 = vsel %vm6873_vm7, %v5372_v2, %v2820_v22  ;;  %v505_v38 = vrot.slane %v503_v17, 4  ;;  %v506_v1 = vshll.u32 %v6899_v53, 16  ;;  %v512_v30 = vshll.u32 %v6906_v16, 16  ;;  %v6938_v22 = vld [vmem:[%s8455_s1 + $0xe] sm:$0x3] }
  0x65   : > { %v495_v25 = vor.u32 %v494_v7, %v490_v58  ;;  %v5389_v31 = vcombine.low %v2821_v21, %v2824_v5  ;;  %5807 = vmatprep.mubr.msk.bf16.mxu1 %vm696_vm3, %v5104_v11  ;;  %v491_v28 = vsel %vm6647_vm4, %v486_v14, %v490_v58  ;;  %v516_v60 = vshrl.u32 %v6906_v16, 16  ;;  %v6957_v5 = vld [vmem:[%s6621_s27 + $0x90] sm:$0xf] }
  0x66   : > { %v522_v42 = vshll.u32 %v253_v57, 16  ;;  %v508_v45 = vrot.slane %v506_v1, 5  ;;  %v5373_v47 = vrot.slane %v5357_v10, 9  ;;  %v2827_v26 = vrot.slane %v6697_v46, 5  ;;  %v5358_v57 = vld [vmem:[%s6621_s27 + $0x30] sm:$0xe] }
  0x67   : > { %v496_v44 = vrot.slane %v495_v25, 4  ;;  %v514_v48 = vrot.slane %v512_v30, 5  ;;  %v518_v49 = vrot.slane %v516_v60, 4  ;;  %v2830_v51 = vrot.slane %v6706_v54, 5  ;;  %v6969_v30 = vld [vmem:[%s6621_s27 + $0x94] sm:$0xf] }
  0x68   : > { %v524_v50 = vrot.slane %v522_v42, 5  ;;  %5962 = vmatmul.mubr.msk.bf16.vlgmr.msra.gmra.mrb[0].mxu0 %vm696_vm3, %v5389_v31  ;;  %v509_v62 = vor.u32 %v508_v45, %v505_v38  ;;  %v2828_v55 = vsel %vm6873_vm7, %v5373_v47, %v2827_v26  ;;  %v2829_v56 = vrot.slane %v2827_v26, 4  ;;  %v255_v60 = vld [vmem:[%s6621_s27 + $0x98] sm:$0x1]  ;;  %v5359_v26 = vld [vmem:[%s6621_s27 + $0x3c] sm:$0xe] }
  0x69   : > { %v501_v15 = vsel %vm6647_vm4, %v496_v44, %v500_v18  ;;  %5994 = vmatpush3.bf16.msra.mxu0 %v6657_v41  ;;  %v519_v46 = vor.u32 %v518_v49, %v514_v48  ;;  %v527_v58 = vshrl.u32 %v6925_v39, 16  ;;  %v530_v54 = vshll.u32 %v6925_v39, 16 }
  0x6a   : > { %v5105_v63 = vcombine.low %v491_v28, %v501_v15  ;;  %v510_v61 = vrot.slane %v509_v62, 4  ;;  %v2831_v2 = vsel %vm6873_vm7, %v2829_v56, %v2830_v51  ;;  %v536_v6 = vshll.u32 %v6933_v43, 16  ;;  %6361 = vmatprep.subr.msk.bf16.mxu0 %vm745_vm0, %v6938_v22 }
  0x6b   : > { %v540_v7 = vshrl.u32 %v6933_v43, 16  ;;  %v520_v41 = vrot.slane %v519_v46, 4  ;;  %v5390_v17 = vcombine.low %v2828_v55, %v2831_v2  ;;  %v529_v10 = vrot.slane %v527_v58, 4  ;;  %v6989_v46 = vld [vmem:[%s6621_s27 + $0xa0] sm:$0xf] }
  0x6c   : > { %5808 = vmatmul.mubr.msk.bf16.gmra.mrb[16].mxu1 %vm696_vm3, %v5105_v63  ;;  %v532_v11 = vrot.slane %v530_v54, 5  ;;  %v515_v14 = vsel %vm6647_vm4, %v510_v61, %v514_v48  ;;  %v538_v18 = vrot.slane %v536_v6, 5  ;;  %v546_v25 = vshll.u32 %v254_v52, 16  ;;  %v6978_v52 = vld [vmem:[%s6621_s27 + $0x9c] sm:$0xf] }
  0x6d   : > { %v542_v21 = vrot.slane %v540_v7, 4  ;;  %v525_v31 = vsel %vm6647_vm4, %v520_v41, %v524_v50  ;;  %5965 = vmatprep.mubr.msk.bf16.mxu0 %vm696_vm3, %v5390_v17  ;;  %v5374_v1 = vrot.slane %v5358_v57, 9  ;;  %v2834_v28 = vrot.slane %v6726_v33, 5 }
  0x6e   : > { %v533_v38 = vor.u32 %v532_v11, %v529_v10  ;;  %v5106_v42 = vcombine.low %v515_v14, %v525_v31  ;;  %v548_v45 = vrot.slane %v546_v25, 5  ;;  %v2837_v47 = vrot.slane %v6734_v40, 5  ;;  %v256_v10 = vld [vmem:[%s6621_s27 + $0xa4] sm:$0x1]  ;;  %v5360_v11 = vld [vmem:[%s6621_s27 + $0x48] sm:$0xe] }
  0x6f   : > { %v543_v44 = vor.u32 %v542_v21, %v538_v18  ;;  %v2835_v49 = vsel %vm6873_vm7, %v5374_v1, %v2834_v28  ;;  %v2836_v50 = vrot.slane %v2834_v28, 4  ;;  %v551_v51 = vshrl.u32 %v6957_v5, 16 }
  0x70   : > { %v534_v48 = vrot.slane %v533_v38, 4  ;;  %5811 = vmatprep.mubr.msk.bf16.mxu1 %vm696_vm3, %v5106_v42  ;;  %v554_v15 = vshll.u32 %v6957_v5, 16  ;;  %v560_v62 = vshll.u32 %v6969_v30, 16  ;;  %v564_v40 = vshrl.u32 %v6969_v30, 16 }
  0x71   : > { %v544_v33 = vrot.slane %v543_v44, 4  ;;  %v2838_v56 = vsel %vm6873_vm7, %v2836_v50, %v2837_v47  ;;  %v553_v57 = vrot.slane %v551_v51, 4  ;;  %v570_v63 = vshll.u32 %v255_v60, 16 }
  0x72   : > { %v539_v55 = vsel %vm6647_vm4, %v534_v48, %v538_v18  ;;  %v5391_v54 = vcombine.low %v2835_v49, %v2838_v56  ;;  %v556_v61 = vrot.slane %v554_v15, 5  ;;  %v562_v2 = vrot.slane %v560_v62, 5  ;;  %v7015_v56 = vld [vmem:[%s6621_s27 + $0xac] sm:$0xf] }
  0x73   : > { %v549_v58 = vsel %vm6647_vm4, %v544_v33, %v548_v45  ;;  %v566_v7 = vrot.slane %v564_v40, 4  ;;  %v572_v41 = vrot.slane %v570_v63, 5  ;;  %v5375_v17 = vrot.slane %v5359_v26, 9  ;;  %v7010_v33 = vld [vmem:[%s6621_s27 + $0xa8] sm:$0xf] }
  0x74   : > { %v5107_v6 = vcombine.low %v539_v55, %v549_v58  ;;  %5966 = vmatmul.mubr.msk.bf16.gmra.mrb[4].mxu0 %vm696_vm3, %v5391_v54  ;;  %v557_v14 = vor.u32 %v556_v61, %v553_v57  ;;  %v2841_v18 = vrot.slane %v6751_v20, 5  ;;  %v2844_v21 = vrot.slane %v6756_v34, 5  ;;  %v257_v61 = vld [vmem:[%s6621_s27 + $0xb0] sm:$0x1] }
  0x75   : > { %v575_v25 = vshrl.u32 %v6978_v52, 16  ;;  %v567_v31 = vor.u32 %v566_v7, %v562_v2  ;;  %v578_v38 = vshll.u32 %v6978_v52, 16  ;;  %v584_v1 = vshll.u32 %v6989_v46, 16 }
  0x76   : > { %5812 = vmatmul.mubr.msk.bf16.gmra.mrb[20].mxu1 %vm696_vm3, %v5107_v6  ;;  %v588_v28 = vshrl.u32 %v6989_v46, 16  ;;  %v558_v60 = vrot.slane %v557_v14, 4  ;;  %v2842_v42 = vsel %vm6873_vm7, %v5375_v17, %v2841_v18  ;;  %v2843_v20 = vrot.slane %v2841_v18, 4  ;;  %v7030_v14 = vld [vmem:[%s6621_s27 + $0xb4] sm:$0xf] }
  0x77   : > { %v577_v44 = vrot.slane %v575_v25, 4  ;;  %v568_v34 = vrot.slane %v567_v31, 4  ;;  %v580_v45 = vrot.slane %v578_v38, 5  ;;  %v586_v47 = vrot.slane %v584_v1, 5 }
  0x78   : > { %v590_v26 = vrot.slane %v588_v28, 4  ;;  %v563_v48 = vsel %vm6647_vm4, %v558_v60, %v562_v2  ;;  %v2845_v49 = vsel %vm6873_vm7, %v2843_v20, %v2844_v21  ;;  %v594_v50 = vshll.u32 %v256_v10, 16  ;;  %v5361_v2 = vld [vmem:[%s6621_s27 + $0x54] sm:$0xe] }
  0x79   : > { %v5376_v51 = vrot.slane %v5360_v11, 9  ;;  %v573_v15 = vsel %vm6647_vm4, %v568_v34, %v572_v41  ;;  %v5392_v62 = vcombine.low %v2842_v42, %v2845_v49  ;;  %v581_v40 = vor.u32 %v580_v45, %v577_v44  ;;  %v7039_v42 = vld [vmem:[%s6621_s27 + $0xb8] sm:$0xf]  ;;  %v258_v49 = vld [vmem:[%s6621_s27 + $0xbc] sm:$0x1] }
  0x7a   : > { %v591_v55 = vor.u32 %v590_v26, %v586_v47  ;;  %v5108_v57 = vcombine.low %v563_v48, %v573_v15  ;;  %v596_v63 = vrot.slane %v594_v50, 5  ;;  %v2848_v58 = vrot.slane %v6774_v8, 5 }
  0x7b   : > { %v2851_v54 = vrot.slane %v6782_v23, 5  ;;  %5969 = vmatprep.mubr.msk.bf16.mxu0 %vm696_vm3, %v5392_v62  ;;  %v582_v6 = vrot.slane %v581_v40, 4  ;;  %v599_v41 = vshrl.u32 %v7010_v33, 16  ;;  %v602_v17 = vshll.u32 %v7010_v33, 16 }
  0x7c   : > { %v592_v7 = vrot.slane %v591_v55, 4  ;;  %5815 = vmatprep.mubr.msk.bf16.mxu1 %vm696_vm3, %v5108_v57  ;;  %v2849_v10 = vsel %vm6873_vm7, %v5376_v51, %v2848_v58  ;;  %v2850_v11 = vrot.slane %v2848_v58, 4  ;;  %v608_v8 = vshll.u32 %v7015_v56, 16  ;;  %v5362_v55 = vld [vmem:[%s6621_s27 + $0x60] sm:$0xe] }
  0x7d   : > { %v612_v23 = vshrl.u32 %v7015_v56, 16  ;;  %v587_v18 = vsel %vm6647_vm4, %v582_v6, %v586_v47  ;;  %v601_v25 = vrot.slane %v599_v41, 4  ;;  %v604_v31 = vrot.slane %v602_v17, 5  ;;  %v5363_v6 = vld [vmem:[%s6621_s27 + $0x6c] sm:$0xe] }
  0x7e   : > { %v597_v21 = vsel %vm6647_vm4, %v592_v7, %v596_v63  ;;  %v2852_v1 = vsel %vm6873_vm7, %v2850_v11, %v2851_v54  ;;  %v610_v28 = vrot.slane %v608_v8, 5  ;;  %v618_v34 = vshll.u32 %v257_v61, 16  ;;  %v5299_v11 = vld [vmem:[%s6621_s27 + $0x70] sm:$0xf]  ;;  %v5300_v8 = vld [vmem:[%s6621_s27 + $0x74] sm:$0x1] }
  0x7f   : > { %v5109_v38 = vcombine.low %v587_v18, %v597_v21  ;;  %v614_v60 = vrot.slane %v612_v23, 4  ;;  %v5393_v20 = vcombine.low %v2849_v10, %v2852_v1  ;;  %v605_v44 = vor.u32 %v604_v31, %v601_v25 }
  0x80   : > { %v5377_v45 = vrot.slane %v5361_v2, 9  ;;  %v2855_v26 = vrot.slane %v6805_v4, 5  ;;  %v2858_v48 = vrot.slane %v6811_v12, 5  ;;  %v623_v50 = vshrl.u32 %v7030_v14, 16 }
  0x81   : > { %5816 = vmatmul.mubr.msk.bf16.gmra.mrb[24].mxu1 %vm696_vm3, %v5109_v38  ;;  %v615_v47 = vor.u32 %v614_v60, %v610_v28  ;;  %5970 = vmatmul.mubr.msk.bf16.gmra.mrb[8].mxu0 %vm696_vm3, %v5393_v20  ;;  %v606_v51 = vrot.slane %v605_v44, 4  ;;  %v620_v15 = vrot.slane %v618_v34, 5  ;;  %v626_v62 = vshll.u32 %v7030_v14, 16 }
  0x82   : > { %v632_v40 = vshll.u32 %v7039_v42, 16  ;;  %v2856_v4 = vsel %vm6873_vm7, %v5377_v45, %v2855_v26  ;;  %v2857_v12 = vrot.slane %v2855_v26, 4  ;;  %v625_v63 = vrot.slane %v623_v50, 4 }
  0x83   : > { %v616_v57 = vrot.slane %v615_v47, 4  ;;  %v611_v58 = vsel %vm6647_vm4, %v606_v51, %v610_v28  ;;  %v628_v54 = vrot.slane %v626_v62, 5  ;;  %v636_v2 = vshrl.u32 %v7039_v42, 16  ;;  %v5364_v47 = vld [vmem:[%s6621_s27 + $0x78] sm:$0xe] }
  0x84   : > { %v634_v61 = vrot.slane %v632_v40, 5  ;;  %v2859_v41 = vsel %vm6873_vm7, %v2857_v12, %v2858_v48  ;;  %v642_v17 = vshll.u32 %v258_v49, 16  ;;  %v5378_v10 = vrot.slane %v5362_v55, 9  ;;  %v6474_v51 = vld [vmem:[%s6621_s27] sm:$0xf] }
  0x85   : > { %v621_v7 = vsel %vm6647_vm4, %v616_v57, %v620_v15  ;;  %v5394_v18 = vcombine.low %v2856_v4, %v2859_v41  ;;  %v629_v21 = vor.u32 %v628_v54, %v625_v63  ;;  %v638_v25 = vrot.slane %v636_v2, 4  ;;  %v7077_v15 = vld [vmem:[%s6621_s27 + $0x4] sm:$0xf]  ;;  %v7081_v40 = vld [vmem:[%s6621_s27 + $0x7c] sm:$0xf] }
  0x86   : > { %v5110_v23 = vcombine.low %v611_v58, %v621_v7  ;;  %v644_v31 = vrot.slane %v642_v17, 5  ;;  %v2862_v38 = vrot.slane %v6835_v59, 5  ;;  %v2865_v1 = vrot.slane %v6842_v9, 5  ;;  %v7084_v55 = vld [vmem:[%s6621_s27 + $0x80] sm:$0x1] }
  0x87   : > { %v5379_v28 = vrot.slane %v5363_v6, 9  ;;  %5973 = vmatprep.mubr.msk.bf16.mxu0 %vm696_vm3, %v5394_v18  ;;  %v630_v60 = vrot.slane %v629_v21, 4  ;;  %v639_v20 = vor.u32 %v638_v25, %v634_v61  ;;  %v2869_v44 = vrot.slane %v5299_v11, 5  ;;  %v5305_v57 = vld [vmem:[%s6621_s27 + $0x88] sm:$0xf] }
  0x88   : > { %5819 = vmatprep.mubr.msk.bf16.mxu1 %vm696_vm3, %v5110_v23  ;;  %v2872_v34 = vrot.slane %v5300_v8, 5  ;;  %v2863_v45 = vsel %vm6873_vm7, %v5378_v10, %v2862_v38  ;;  %v2864_v59 = vrot.slane %v2862_v38, 4  ;;  %v5128_v62 = vcombine.low %v6474_v51, %v7077_v15  ;;  %v5306_v54 = vld [vmem:[%s6621_s27 + $0x8c] sm:$0x1]  ;;  %v5308_v17 = vld [vmem:[%s6621_s27 + $0x94] sm:$0xf] }
  0x89   : > { %v635_v9 = vsel %vm6647_vm4, %v630_v60, %v634_v61  ;;  %v640_v26 = vrot.slane %v639_v20, 4  ;;  %v2870_v48 = vsel %vm6873_vm7, %v5379_v28, %v2869_v44  ;;  %v2871_v49 = vrot.slane %v2869_v44, 4  ;;  %v5365_v61 = vld [vmem:[%s6621_s27 + $0x84] sm:$0xe]  ;;  %v5366_v23 = vld [vmem:[%s6621_s27 + $0x90] sm:$0xe] }
  0x8a   : > { %v2866_v50 = vsel %vm6873_vm7, %v2864_v59, %v2865_v1  ;;  %v5380_v58 = vrot.slane %v5364_v47, 9  ;;  %v2876_v7 = vrot.slane %v7081_v40, 5  ;;  %v2879_v41 = vrot.slane %v7084_v55, 5  ;;  %v5309_v25 = vld [vmem:[%s6621_s27 + $0x98] sm:$0x1] }
  0x8b   : > { %v645_v4 = vsel %vm6647_vm4, %v640_v26, %v644_v31  ;;  %v5395_v12 = vcombine.low %v2863_v45, %v2866_v50  ;;  %v2873_v63 = vsel %vm6873_vm7, %v2871_v49, %v2872_v34  ;;  %v5381_v10 = vrot.slane %v5365_v61, 9  ;;  %v5311_v31 = vld [vmem:[%s6621_s27 + $0xa0] sm:$0xf]  ;;  %v5312_v60 = vld [vmem:[%s6621_s27 + $0xa4] sm:$0x1] }
  0x8c   : > { %v5111_v2 = vcombine.low %v635_v9, %v645_v4  ;;  %v5396_v6 = vcombine.low %v2870_v48, %v2873_v63  ;;  %v2883_v11 = vrot.slane %v5305_v57, 5  ;;  %v2886_v8 = vrot.slane %v5306_v54, 5  ;;  %v5367_v20 = vld [vmem:[%s6621_s27 + $0x9c] sm:$0xe]  ;;  %v6476_v44 = vld [vmem:[%s6621_s27 + $0xc] sm:$0xf] }
  0x8d   : > { %5974 = vmatmul.mubr.msk.bf16.gmra.mrb[12].mxu0 %vm696_vm3, %v5395_v12  ;;  %v2877_v18 = vsel %vm6873_vm7, %v5380_v58, %v2876_v7  ;;  %v2878_v21 = vrot.slane %v2876_v7, 4  ;;  %v2890_v28 = vrot.slane %v5308_v17, 5  ;;  %v7111_v34 = vld [vmem:[%s6621_s27 + $0x10] sm:$0xf]  ;;  %v6478_v47 = vld [vmem:[%s6621_s27 + $0x18] sm:$0xf] }
  0x8e   : > { %5820 = vmatmul.mubr.msk.bf16.gmra.mrb[28].mxu1 %vm696_vm3, %v5111_v2  ;;  %5977 = vmatprep.mubr.msk.bf16.mxu0 %vm696_vm3, %v5396_v6  ;;  %v2884_v38 = vsel %vm6873_vm7, %v5381_v10, %v2883_v11  ;;  %v2885_v1 = vrot.slane %v2883_v11, 4  ;;  %v5129_v45 = vcombine.low %v6476_v44, %v7111_v34  ;;  %v7118_v9 = vld [vmem:[%s6621_s27 + $0x1c] sm:$0xf]  ;;  %v5382_v48 = vrot.slane %v5366_v23, 9  ;;  %v5314_v57 = vld [vmem:[%s6621_s27 + $0xac] sm:$0xf] }
  0x8f   : > { %5825 = vmatprep.mubr.msk.bf16.mxu1 %vm696_vm3, %v5128_v62  ;;  %v2880_v59 = vsel %vm6873_vm7, %v2878_v21, %v2879_v41  ;;  %v5130_v26 = vcombine.low %v6478_v47, %v7118_v9  ;;  %v2892_v51 = vrot.slane %v2890_v28, 4  ;;  %v2893_v62 = vrot.slane %v5309_v25, 5  ;;  %v6480_v54 = vld [vmem:[%s8455_s1 + $0x4] sm:$0x3]  ;;  %v5317_v2 = vld [vmem:[%s6621_s27 + $0xb8] sm:$0xf] }
  0x90   : > { %v5397_v49 = vcombine.low %v2877_v18, %v2880_v59  ;;  %v2887_v50 = vsel %vm6873_vm7, %v2885_v1, %v2886_v8  ;;  %v5383_v12 = vrot.slane %v5367_v20, 9  ;;  %v2897_v63 = vrot.slane %v5311_v31, 5  ;;  %v7133_v7 = vld [vmem:[%s8455_s1 + $0x6] sm:$0x3]  ;;  %v5315_v10 = vld [vmem:[%s6621_s27 + $0xb0] sm:$0x1] }
  0x91   : > { %v5398_v4 = vcombine.low %v2884_v38, %v2887_v50  ;;  %v2900_v58 = vrot.slane %v5312_v60, 5  ;;  %v1464_v61 = vsel %vm745_vm0, %v6480_v54, 0  ;;  %v2891_v41 = vsel %vm6873_vm7, %v5382_v48, %v2890_v28  ;;  %v5368_v11 = vld [vmem:[%s6621_s27 + $0xa8] sm:$0xe]  ;;  %v5318_v25 = vld [vmem:[%s6621_s27 + $0xbc] sm:$0x1] }
  0x92   : > { %v2899_v6 = vrot.slane %v2897_v63, 4  ;;  %v2894_v17 = vsel %vm6873_vm7, %v2892_v51, %v2893_v62  ;;  %v2904_v8 = vrot.slane %v5314_v57, 5  ;;  %v2898_v23 = vsel %vm6873_vm7, %v5383_v12, %v2897_v63  ;;  %v5369_v31 = vld [vmem:[%s6621_s27 + $0xb4] sm:$0xe]  ;;  %v6481_v38 = vld [vmem:[%s6621_s27 + $0x24] sm:$0xf] }
  0x93   : > { %v2911_v21 = vrot.slane %v5317_v2, 5  ;;  %v7154_v1 = vld [vmem:[%s6621_s27 + $0x28] sm:$0xf]  ;;  %v5399_v60 = vcombine.low %v2891_v41, %v2894_v17  ;;  %v5384_v44 = vrot.slane %v5368_v11, 9  ;;  %v2907_v59 = vrot.slane %v5315_v10, 5 }
  0x94   : > { %v2901_v18 = vsel %vm6873_vm7, %v2899_v6, %v2900_v58  ;;  %v5131_v28 = vcombine.low %v6481_v38, %v7154_v1  ;;  %v6483_v47 = vld [vmem:[%s6621_s27 + $0x30] sm:$0xf]  ;;  %v2914_v51 = vrot.slane %v5318_v25, 5  ;;  %v5320_v62 = vld [vmem:[%s6621_s27 + $0xc4] sm:$0xf]  ;;  %v2299_v25 = vshrl.u32 %v7081_v40, 16 }
  0x95   : > { %5978 = vmatmul.mubr.msk.bf16.gmra.mrb[16].mxu0 %vm696_vm3, %v5397_v49  ;;  %v5400_v20 = vcombine.low %v2898_v23, %v2901_v18  ;;  %v5385_v49 = vrot.slane %v5369_v31, 9  ;;  %v2913_v50 = vrot.slane %v2911_v21, 4  ;;  %v2905_v57 = vsel %vm6873_vm7, %v5384_v44, %v2904_v8  ;;  %v5370_v12 = vld [vmem:[%s6621_s27 + $0xc0] sm:$0xe]  ;;  %v6485_v41 = vld [vmem:[%s6621_s27 + $0x3c] sm:$0xf] }
  0x96   : > { %5826 = vmatmul.mubr.msk.bf16.vlgmr.msra.gmra.mrb[0].mxu1 %vm696_vm3, %v5129_v45  ;;  %5981 = vmatprep.mubr.msk.bf16.mxu0 %vm696_vm3, %v5398_v4  ;;  %v2906_v45 = vrot.slane %v2904_v8, 4  ;;  %v2918_v63 = vrot.slane %v5320_v62, 5  ;;  %v5386_v6 = vrot.slane %v5370_v12, 9  ;;  %v7179_v17 = vld [vmem:[%s6621_s27 + $0x40] sm:$0xf]  ;;  %v5134_v18 = vcombine.low %v6786_v27, %v6789_v36  ;;  %v6437_v62 = vld [vmem:[%s6621_s27 + $0x24] sm:$0xff]  }
  0x97   : > { %5858 = vmatpush3.bf16.msra.mxu1 %v1464_v61  ;;  %5829 = vmatprep.mubr.msk.bf16.mxu1 %vm696_vm3, %v5130_v26  ;;  %v7159_v26 = vld [vmem:[%s6621_s27 + $0x34] sm:$0xf]  ;;  %v2912_v58 = vsel %vm6873_vm7, %v5385_v49, %v2911_v21  ;;  %v2915_v54 = vsel %vm6873_vm7, %v2913_v50, %v2914_v51  ;;  %v5321_v61 = vld [vmem:[%s6621_s27 + $0xc8] sm:$0x1]  ;;  %v5133_v10 = vcombine.low %v6485_v41, %v7179_v17  ;;  %v2295_v21 = vshll.u32 %v7081_v40, 16 }
  0x98   : > { %6356 = vmatprep.subr.msk.bf16.mxu1 %vm745_vm0, %v7133_v7  ;;  %v5132_v48 = vcombine.low %v6483_v47, %v7159_v26  ;;  %v2908_v4 = vsel %vm6873_vm7, %v2906_v45, %v2907_v59  ;;  %v5402_v11 = vcombine.low %v2912_v58, %v2915_v54  ;;  %v2920_v8 = vrot.slane %v2918_v63, 4  ;;  %v1202_v45 = vld [vmem:[%s6621_s27] sm:$0xe]  ;;  %v1203_v59 = vld [vmem:[%s6621_s27 + $0xc] sm:$0xe] }
  0x99   : > { %v5401_v2 = vcombine.low %v2905_v57, %v2908_v4  ;;  %v2921_v23 = vrot.slane %v5321_v61, 5  ;;  %v2919_v31 = vsel %vm6873_vm7, %v5386_v6, %v2918_v63  ;;  %v7194_v27 = vrot.slane %v2295_v21, 5  ;;  %v1206_v41 = vld [vmem:[%s6621_s27 + $0x30] sm:$0xe] }
  0x9a   : > { %v2301_v36 = vrot.slane %v2299_v25, 4  ;;  %v5136_v44 = vcombine.low %v6846_v19, %v6852_v35  ;;  %v2305_v47 = vshll.u32 %v7084_v55, 16  ;;  %v5160_v19 = vrot.slane %v1202_v45, 9 }
  0x9b   : > { %v2922_v38 = vsel %vm6873_vm7, %v2920_v8, %v2921_v23  ;;  %8476 = vst [vmem:[#allocation3_spill] sm:$0xff] %v7194_v27  ;;  %v5161_v35 = vrot.slane %v1203_v59, 9  ;;  %v1269_v4 = vrot.slane %v7118_v9, 5  ;;  %v1276_v12 = vrot.slane %v7154_v1, 5  ;;  %v1207_v8 = vld [vmem:[%s6621_s27 + $0x3c] sm:$0xe] }
  0x9c   : > { %v5403_v40 = vcombine.low %v2919_v31, %v2922_v38  ;;  %v2302_v49 = vor.u32 %v2301_v36, %v7194_v27  ;;  %v7214_v51 = vrot.slane %v2305_v47, 5  ;;  %v5137_v58 = vcombine.low %v6867_v0, %v6880_v29  ;;  %v1208_v31 = vld [vmem:[%s6621_s27 + $0x48] sm:$0xe]  ;;  %v6491_v59 = vld [vmem:[%s6621_s27 + $0x38] sm:$0x1] }
  0x9d   : > { %5982 = vmatmul.mubr.msk.bf16.gmra.mrb[20].mxu0 %vm696_vm3, %v5399_v60  ;;  %v5135_v60 = vcombine.low %v6815_v24, %v6821_v37  ;;  %v6488_v24 = vld [vmem:[%s6621_s27 + $0x14] sm:$0x1]  ;;  %v4110_v54 = vsel %vm745_vm0, %v6938_v22, 0  ;;  %v5138_v61 = vcombine.low %v6899_v53, %v6906_v16  ;;  %v5139_v6 = vcombine.low %v6925_v39, %v6933_v43  ;;  %v6489_v16 = vld [vmem:[%s6621_s27 + $0x20] sm:$0x1] }
  0x9e   : > { %5830 = vmatmul.mubr.msk.bf16.gmra.mrb[4].mxu1 %vm696_vm3, %v5131_v28  ;;  %5985 = vmatprep.mubr.msk.bf16.mxu0 %vm696_vm3, %v5400_v20  ;;  %v1262_v28 = vrot.slane %v7111_v34, 5  ;;  %v6435_v20 = vld [vmem:[%s6621_s27 + $0x18] sm:$0xff]   ;;  %v6487_v34 = vld [vmem:[%s6621_s27 + $0x8] sm:$0x1]  ;;  %v1265_v37 = vrot.slane %v6488_v24, 5  ;;  %8477 = vst [vmem:[#allocation4_spill] sm:$0xff] %v7214_v51  ;;  %v5140_v9 = vcombine.low %v6957_v5, %v6969_v30 }
  0x9f   : > { %5833 = vmatprep.mubr.msk.bf16.mxu1 %vm696_vm3, %v5132_v48  ;;  %v1255_v48 = vrot.slane %v7077_v15, 5  ;;  %v1258_v50 = vrot.slane %v6487_v34, 5  ;;  %v1204_v15 = vld [vmem:[%s6621_s27 + $0x18] sm:$0xe]  ;;  %v7219_v63 = vrot.slane %v2302_v49, 4  ;;  %v1272_v22 = vrot.slane %v6489_v16, 5 }
  0xa0   : > { %v1264_v55 = vrot.slane %v1262_v28, 4  ;;  %v5162_v1 = vrot.slane %v1204_v15, 9  ;;  %v7241_v29 = vsel %vm6873_vm7, %v5161_v35, %v1262_v28  ;;  %v1278_v25 = vrot.slane %v1276_v12, 4  ;;  %v5485_v24 = vld [vmem:[%s6621_s27 + $0x18] sm:$0xf] }
  0xa1   : > { %v1257_v57 = vrot.slane %v1255_v48, 4  ;;  %8478 = vst [vmem:[#allocation5_spill] sm:$0xff] %v7219_v63  ;;  %v7237_v0 = vsel %vm6873_vm7, %v5160_v19, %v1255_v48  ;;  %v1286_v47 = vrot.slane %v6491_v59, 5  ;;  %v7278_v49 = vsel %vm745_vm0, %v7133_v7, 0  ;;  %v5486_v7 = vld [vmem:[%s6621_s27 + $0x1c] sm:$0xf] }
  0xa2   : > { %v7245_v53 = vsel %vm6873_vm7, %v1264_v55, %v1265_v37  ;;  %v7282_v34 = vsel %vm6873_vm7, %v5162_v1, %v1269_v4  ;;  %v6441_v37 = vld [vmem:[%s6621_s27 + $0x3c] sm:$0xff]   ;;  %v5165_v35 = vrot.slane %v1207_v8, 9  ;;  %v6492_v55 = vld [vmem:[%s6621_s27 + $0x44] sm:$0x1]  ;;  %v3631_v8 = vshll.u32 %v5485_v24, 16 }
  0xa3   : > { %v7256_v23 = vsel %vm6873_vm7, %v1257_v57, %v1258_v50  ;;  %v1209_v50 = vld [vmem:[%s6621_s27 + $0x54] sm:$0xe]  ;;  %v1293_v15 = vrot.slane %v6492_v55, 5  ;;  %v5489_v39 = vld [vmem:[%s6621_s27 + $0x28] sm:$0xf] }
  0xa4   : > { %v6499_v5 = vld [vmem:[%s6621_s27 + $0x70] sm:$0xf] }
  0xa5   : > { %5986 = vmatmul.mubr.msk.bf16.gmra.mrb[24].mxu0 %vm696_vm3, %v5401_v2  ;;  %v1205_v2 = vld [vmem:[%s6621_s27 + $0x24] sm:$0xe]  ;;  %v1318_v30 = vrot.slane %v6499_v5, 5 }
  0xa6   : > { %5834 = vmatmul.mubr.msk.bf16.gmra.mrb[8].mxu1 %vm696_vm3, %v5133_v10  ;;  %5989 = vmatprep.mubr.msk.bf16.mxu0 %vm696_vm3, %v5402_v11  ;;  %v1283_v10 = vrot.slane %v7159_v26, 5  ;;  %v6439_v11 = vld [vmem:[%s6621_s27 + $0x30] sm:$0xff]   ;;  %v5163_v21 = vrot.slane %v1205_v2, 9 }
  0xa7   : > { %5837 = vmatprep.mubr.msk.bf16.mxu1 %vm696_vm3, %v5134_v18  ;;  %v7252_v26 = vld [vmem:[%s8455_s1 + $0x10] sm:$0x3]  ;;  %v1271_v18 = vrot.slane %v1269_v4, 4  ;;  %v1320_v48 = vrot.slane %v1318_v30, 4 }
  0xa8   : > { %v1285_v45 = vrot.slane %v1283_v10, 4  ;;  %v7289_v19 = vsel %vm6873_vm7, %v5163_v21, %v1276_v12  ;;  %v3641_v21 = vshrl.u32 %v5486_v7, 16 }
  0xa9   : > { %v7298_v4 = vsel %vm6873_vm7, %v1271_v18, %v1272_v22  ;;  %v3628_v22 = vshrl.u32 %v5485_v24, 16  ;;  %v3637_v18 = vshll.u32 %v5486_v7, 16  ;;  %v5488_v24 = vld [vmem:[%s6621_s27 + $0x24] sm:$0xf] }
  0xaa   : > { %v7311_v1 = vsel %vm6873_vm7, %v1285_v45, %v1286_v47 }
  0xab   : > { %v3630_v43 = vrot.slane %v3628_v22, 4  ;;  %v7353_v7 = vrot.slane %v3637_v18, 5  ;;  %v3655_v22 = vshll.u32 %v5488_v24, 16  ;;  %v3665_v18 = vshrl.u32 %v5489_v39, 16 }
  0xad   : > { %5990 = vmatmul.mubr.msk.bf16.gmra.mrb[28].mxu0 %vm696_vm3, %v5403_v40  ;;  %v6490_v40 = vld [vmem:[%s6621_s27 + $0x2c] sm:$0x1]  ;;  %v3657_v27 = vrot.slane %v3655_v22, 5 }
  0xae   : > { %5838 = vmatmul.mubr.msk.bf16.gmra.mrb[12].mxu1 %vm696_vm3, %v5135_v60  ;;  %5995 = vmatprep.mubr.msk.bf16.mxu0 %vm696_vm3, %v6435_v20  ;;  %v1279_v28 = vrot.slane %v6490_v40, 5  ;;  %v1290_v60 = vrot.slane %v7179_v17, 5  ;;  %v6495_v40 = vld [vmem:[%s6621_s27 + $0x50] sm:$0x1]  ;;  %v6500_v17 = vld [vmem:[%s6621_s27 + $0x74] sm:$0x1] }
  0xaf   : > { %5841 = vmatprep.mubr.msk.bf16.mxu1 %vm696_vm3, %v5136_v44  ;;  %v5164_v44 = vrot.slane %v1206_v41, 9  ;;  %v5167_v41 = vrot.slane %v1209_v50, 9  ;;  %v1210_v50 = vld [vmem:[%s6621_s27 + $0x60] sm:$0xe]  ;;  %v5490_v20 = vld [vmem:[%s6621_s27 + $0x2c] sm:$0x1] }
  0xb0   : > { %v1292_v12 = vrot.slane %v1290_v60, 4  ;;  %v7324_v45 = vsel %vm6873_vm7, %v5165_v35, %v1290_v60  ;;  %v6496_v35 = vld [vmem:[%s6621_s27 + $0x5c] sm:$0x1] }
  0xb1   : > { %v7307_v2 = vsel %vm6873_vm7, %v5164_v44, %v1283_v10  ;;  %v1307_v55 = vrot.slane %v6496_v35, 5  ;;  %v1211_v35 = vld [vmem:[%s6621_s27 + $0x6c] sm:$0xe] }
  0xb2   : > { %v7328_v59 = vsel %vm6873_vm7, %v1292_v12, %v1293_v15  ;;  %v6497_v15 = vld [vmem:[%s6621_s27 + $0x64] sm:$0xf]  ;;  %v3643_v12 = vrot.slane %v3641_v21, 4  ;;  %v5169_v5 = vrot.slane %v1211_v35, 9 }
  0xb3   : > { %v6447_v21 = vld [vmem:[%s6621_s27 + $0x60] sm:$0xff]  }
  0xb5   : > { %5996 = vmatmul.mubr.msk.bf16.vlgmr.msra.gmra.mrb[0].mxu0 %vm696_vm3, %v6437_v62  ;;  %v6493_v62 = vld [vmem:[%s6621_s27 + $0x4c] sm:$0xf] }
  0xb6   : > { %5842 = vmatmul.mubr.msk.bf16.gmra.mrb[16].mxu1 %vm696_vm3, %v5137_v58  ;;  %6028 = vmatpush3.bf16.msra.mxu0 %v4110_v54  ;;  %v1297_v57 = vrot.slane %v6493_v62, 5  ;;  %v7302_v58 = vsel %vm6873_vm7, %v1278_v25, %v1279_v28  ;;  %v5166_v54 = vrot.slane %v1208_v31, 9  ;;  %v1300_v28 = vrot.slane %v6495_v40, 5 }
  0xb7   : > { %5845 = vmatprep.mubr.msk.bf16.mxu1 %vm696_vm3, %v5138_v61  ;;  %5999 = vmatprep.mubr.msk.bf16.mxu0 %vm696_vm3, %v6439_v11  ;;  %v6443_v61 = vld [vmem:[%s6621_s27 + $0x48] sm:$0xff]   ;;  %v6494_v11 = vld [vmem:[%s6621_s27 + $0x58] sm:$0xf]  ;;  %v1311_v62 = vrot.slane %v6497_v15, 5  ;;  %v5492_v15 = vld [vmem:[%s6621_s27 + $0x34] sm:$0xf] }
  0xb8   : > { %6362 = vmatprep.subr.msk.bf16.mxu0 %vm745_vm0, %v7252_v26  ;;  %v1304_v16 = vrot.slane %v6494_v11, 5  ;;  %v1299_v31 = vrot.slane %v1297_v57, 4  ;;  %v7332_v47 = vsel %vm6873_vm7, %v5166_v54, %v1297_v57  ;;  %v5487_v57 = vld [vmem:[%s6621_s27 + $0x20] sm:$0x1]  ;;  %v5491_v54 = vld [vmem:[%s6621_s27 + $0x30] sm:$0xf] }
  0xb9   : > { %v5168_v11 = vrot.slane %v1210_v50, 9  ;;  %v3679_v50 = vshll.u32 %v5491_v54, 16  ;;  %v3647_v25 = vshll.u32 %v5487_v57, 16  ;;  %v3685_v36 = vshll.u32 %v5492_v15, 16 }
  0xba   : > { %v7343_v60 = vsel %vm6873_vm7, %v5167_v41, %v1304_v16  ;;  %v7359_v41 = vsel %vm6873_vm7, %v1299_v31, %v1300_v28  ;;  %v1313_v31 = vrot.slane %v1311_v62, 4  ;;  %v3676_v28 = vshrl.u32 %v5491_v54, 16 }
  0xbb   : > { %v7401_v35 = vrot.slane %v3685_v36, 5 }
  0xbd   : > { %6000 = vmatmul.mubr.msk.bf16.gmra.mrb[4].mxu0 %vm696_vm3, %v6441_v37  ;;  %v1306_v37 = vrot.slane %v1304_v16, 4  ;;  %v6498_v16 = vld [vmem:[%s6621_s27 + $0x68] sm:$0x1] }
  0xbe   : > { %5846 = vmatmul.mubr.msk.bf16.gmra.mrb[20].mxu1 %vm696_vm3, %v5139_v6  ;;  %6003 = vmatprep.mubr.msk.bf16.mxu0 %vm696_vm3, %v6443_v61  ;;  %v3633_v6 = vrot.slane %v3631_v8, 5  ;;  %v6445_v61 = vld [vmem:[%s6621_s27 + $0x54] sm:$0xff]   ;;  %v1314_v40 = vrot.slane %v6498_v16, 5  ;;  %v3661_v8 = vshll.u32 %v5489_v39, 16  ;;  %v3644_v16 = vor.u32 %v3643_v12, %v7353_v7 }
  0xbf   : > { %5849 = vmatprep.mubr.msk.bf16.mxu1 %vm696_vm3, %v5140_v9  ;;  %v3652_v9 = vshrl.u32 %v5488_v24, 16  ;;  %v7368_v44 = vsel %vm6873_vm7, %v1306_v37, %v1307_v55  ;;  %v1321_v24 = vrot.slane %v6500_v17, 5  ;;  %v3689_v39 = vshrl.u32 %v5492_v15, 16 }
  0xc0   : > { %v3634_v10 = vor.u32 %v3633_v6, %v3630_v43  ;;  %v7374_v37 = vrot.slane %v3661_v8, 5  ;;  %v3667_v55 = vrot.slane %v3665_v18, 4  ;;  %v8479_v43 = vcombine.low %v6978_v52, %v6989_v46  ;;  %v6501_v8 = vld [vmem:[%s6621_s27 + $0x7c] sm:$0xf]  ;;  %v7410_v18 = vld [vmem:[%s6621_s27 + $0x38] sm:$0x1] }
  0xc1   : > { %v3654_v38 = vrot.slane %v3652_v9, 4  ;;  %v7383_v17 = vsel %vm6873_vm7, %v5168_v11, %v1311_v62  ;;  %v7387_v57 = vsel %vm6873_vm7, %v1313_v31, %v1314_v40  ;;  %v3678_v6 = vrot.slane %v3676_v28, 4  ;;  %8481 = vst [vmem:[#allocation6_spill] sm:$0xff] %v7410_v18 }
  0xc2   : > { %v3681_v12 = vrot.slane %v3679_v50, 5  ;;  %v8480_v52 = vcombine.low %v7010_v33, %v7015_v56  ;;  %v3635_v46 = vrot.slane %v3634_v10, 4  ;;  %v3645_v54 = vrot.slane %v3644_v16, 4  ;;  %v6449_v33 = vld [vmem:[%s6621_s27 + $0x6c] sm:$0xff]   ;;  %v1213_v16 = vld [vmem:[%s6621_s27 + $0x84] sm:$0xe] }
  0xc3   : > { %v3671_v62 = vshll.u32 %v5490_v20, 16  ;;  %v7395_v11 = vsel %vm6873_vm7, %v5169_v5, %v1318_v30  ;;  %v7399_v40 = vsel %vm6873_vm7, %v1320_v48, %v1321_v24  ;;  %v3691_v9 = vrot.slane %v3689_v39, 4  ;;  %v6450_v48 = vld [vmem:[%s6621_s27 + $0x78] sm:$0xff]  }
  0xc4   : > { %v3658_v10 = vor.u32 %v3657_v27, %v3654_v38  ;;  %v3668_v20 = vor.u32 %v3667_v55, %v7374_v37  ;;  %v1325_v30 = vrot.slane %v6501_v8, 5  ;;  %v3682_v38 = vor.u32 %v3681_v12, %v3678_v6  ;;  %v5494_v5 = vld [vmem:[%s6621_s27 + $0x3c] sm:$0xf] }
  0xc5   : > { %6004 = vmatmul.mubr.msk.bf16.gmra.mrb[8].mxu0 %vm696_vm3, %v6445_v61  ;;  %v3649_v61 = vrot.slane %v3647_v25, 5  ;;  %v1212_v25 = vld [vmem:[%s6621_s27 + $0x78] sm:$0xe]  ;;  %v7426_v50 = vrot.slane %v3671_v62, 5  ;;  %v3692_v39 = vor.u32 %v3691_v9, %v7401_v35  ;;  %v3695_v55 = vshll.u32 %v7410_v18, 16 }
  0xc6   : > { %5850 = vmatmul.mubr.msk.bf16.gmra.mrb[24].mxu1 %vm696_vm3, %v8479_v43  ;;  %6007 = vmatprep.mubr.msk.bf16.mxu0 %vm696_vm3, %v6447_v21  ;;  %v3640_v21 = vsel %vm6647_vm4, %v3635_v46, %v7353_v7  ;;  %v5170_v24 = vrot.slane %v1212_v25, 9  ;;  %v6502_v43 = vld [vmem:[%s6621_s27 + $0x88] sm:$0xf]  ;;  %v7434_v7 = vld [vmem:[%s6621_s27 + $0x40] sm:$0xf]  ;;  %v3659_v12 = vrot.slane %v3658_v10, 4  ;;  %v8483_v62 = vcombine.low %v7030_v14, %v7039_v42 }
  0xc7   : > { %5853 = vmatprep.mubr.msk.bf16.mxu1 %vm696_vm3, %v8480_v52  ;;  %v3650_v31 = vsel %vm6647_vm4, %v3645_v54, %v3649_v61  ;;  %v1332_v6 = vrot.slane %v6502_v43, 5  ;;  %8482 = vst [vmem:[#allocation7_spill] sm:$0xff] %v7434_v7  ;;  %v3669_v52 = vrot.slane %v3668_v20, 4  ;;  %v1327_v46 = vrot.slane %v1325_v30, 4  ;;  %v6503_v54 = vld [vmem:[%s6621_s27 + $0x80] sm:$0x1] }
  0xc8   : > { %v1328_v61 = vrot.slane %v6503_v54, 5  ;;  %v3683_v9 = vrot.slane %v3682_v38, 4  ;;  %v5171_v25 = vrot.slane %v1213_v16, 9  ;;  %v3700_v8 = vshrl.u32 %v5494_v5, 16  ;;  %v6451_v10 = vld [vmem:[%s6621_s27 + $0x84] sm:$0xff]  }
  0xc9   : > { %v3703_v43 = vshll.u32 %v5494_v5, 16  ;;  %v7448_v20 = vcombine.low %v3640_v21, %v3650_v31  ;;  %v7452_v14 = vsel %vm745_vm0, %v7252_v26, 0  ;;  %v3713_v38 = vshrl.u32 %v7434_v7, 16  ;;  %v6452_v21 = vld [vmem:[%s6621_s27 + $0x90] sm:$0xff]   ;;  %v6508_v18 = vld [vmem:[%s6621_s27 + $0xa0] sm:$0xf] }
  0xca   : > { %v3693_v16 = vrot.slane %v3692_v39, 4  ;;  %v3697_v5 = vrot.slane %v3695_v55, 5  ;;  %v1334_v54 = vrot.slane %v1332_v6, 4  ;;  %v3664_v31 = vsel %vm6647_vm4, %v3659_v12, %v7374_v37 }
  0xcb   : > { %v3674_v26 = vsel %vm6647_vm4, %v3669_v52, %v7426_v50  ;;  %v7467_v39 = vsel %vm6873_vm7, %v5170_v24, %v1325_v30  ;;  %v7471_v55 = vsel %vm6873_vm7, %v1327_v46, %v1328_v61  ;;  %v3688_v37 = vsel %vm6647_vm4, %v3683_v9, %v7401_v35  ;;  %v5500_v30 = vld [vmem:[%s6621_s27 + $0x54] sm:$0xf]  ;;  %v7488_v24 = vld [vmem:[%s6621_s27 + $0x58] sm:$0xf]  ;;  %v7493_v61 = vld [vmem:[%s6621_s27 + $0x90] sm:$0xe] }
  0xcc   : > { %v7484_v12 = vsel %vm6873_vm7, %v5171_v25, %v1332_v6  ;;  %v3702_v50 = vrot.slane %v3700_v8, 4  ;;  %v3705_v52 = vrot.slane %v3703_v43, 5  ;;  %v3715_v46 = vrot.slane %v3713_v38, 4 }
  0xcd   : > { %6008 = vmatmul.mubr.msk.bf16.gmra.mrb[12].mxu0 %vm696_vm3, %v6449_v33  ;;  %v8484_v33 = vcombine.low %v7237_v0, %v7256_v23  ;;  %v6504_v0 = vld [vmem:[%s6621_s27 + $0x8c] sm:$0x1]  ;;  %v3698_v36 = vsel %vm6647_vm4, %v3693_v16, %v3697_v5  ;;  %v3748_v25 = vshrl.u32 %v5500_v30, 16  ;;  %v3751_v8 = vshll.u32 %v5500_v30, 16 }
  0xce   : > { %5854 = vmatmul.mubr.msk.bf16.gmra.mrb[28].mxu1 %vm696_vm3, %v8483_v62  ;;  %6011 = vmatprep.mubr.msk.bf16.mxu0 %vm696_vm3, %v6450_v48  ;;  %v3709_v48 = vshll.u32 %v7434_v7, 16  ;;  %v1335_v23 = vrot.slane %v6504_v0, 5  ;;  %v5497_v62 = vld [vmem:[%s6621_s27 + $0x48] sm:$0xf]  ;;  %v7477_v0 = vld [vmem:[%s6621_s27 + $0x4c] sm:$0xf]  ;;  %v8486_v38 = vcombine.low %v7241_v29, %v7245_v53  ;;  %v7511_v16 = vcombine.low %v3664_v31, %v3674_v26 }
  0xcf   : > { %5859 = vmatprep.mubr.msk.bf16.mxu1 %vm696_vm3, %v8484_v33  ;;  %v7474_v33 = vld [vmem:[%s6621_s27 + $0x44] sm:$0x1]  ;;  %v3724_v27 = vshrl.u32 %v5497_v62, 16  ;;  %v3727_v15 = vshll.u32 %v5497_v62, 16  ;;  %v3733_v6 = vshll.u32 %v7477_v0, 16  ;;  %v3737_v9 = vshrl.u32 %v7477_v0, 16 }
  0xd0   : > { %8485 = vst [vmem:[#allocation8_spill] sm:$0xff] %v7474_v33  ;;  %v7490_v28 = vrot.slane %v3709_v48, 5  ;;  %v7499_v35 = vsel %vm6873_vm7, %v1334_v54, %v1335_v23  ;;  %v3757_v43 = vshll.u32 %v7488_v24, 16  ;;  %v3761_v48 = vshrl.u32 %v7488_v24, 16  ;;  %v5503_v31 = vld [vmem:[%s6621_s27 + $0x60] sm:$0xf] }
  0xd1   : > { %v3719_v5 = vshll.u32 %v7474_v33, 16  ;;  %v5172_v54 = vrot.slane %v7493_v61, 9  ;;  %v8487_v23 = vcombine.low %v7282_v34, %v7298_v4  ;;  %v7522_v29 = vcombine.low %v3688_v37, %v3698_v36  ;;  %v6453_v26 = vld [vmem:[%s6621_s27 + $0x9c] sm:$0xff]   ;;  %v6454_v30 = vld [vmem:[%s6621_s27 + $0xa8] sm:$0xff]  }
  0xd2   : > { %v3706_v53 = vor.u32 %v3705_v52, %v3702_v50  ;;  %v3726_v62 = vrot.slane %v3724_v27, 4  ;;  %v7533_v34 = vrot.slane %v3733_v6, 5  ;;  %v3739_v4 = vrot.slane %v3737_v9, 4  ;;  %v6505_v36 = vld [vmem:[%s8455_s1 + $0x8] sm:$0x3] }
  0xd3   : > { %v3750_v27 = vrot.slane %v3748_v25, 4  ;;  %v3753_v37 = vrot.slane %v3751_v8, 5  ;;  %v7542_v50 = vrot.slane %v3757_v43, 5  ;;  %v3763_v52 = vrot.slane %v3761_v48, 4  ;;  %v6506_v6 = vld [vmem:[%s6621_s27 + $0x94] sm:$0xf] }
  0xd4   : > { %v7548_v9 = vld [vmem:[%s6621_s27 + $0x64] sm:$0xf]  ;;  %v3772_v61 = vshrl.u32 %v5503_v31, 16  ;;  %v7550_v22 = vrot.slane %v3706_v53, 4  ;;  %v1346_v25 = vrot.slane %v6508_v18, 5  ;;  %v3740_v43 = vor.u32 %v3739_v4, %v7533_v34 }
  0xd5   : > { %6012 = vmatmul.mubr.msk.bf16.gmra.mrb[16].mxu0 %vm696_vm3, %v6451_v10  ;;  %8488 = vst [vmem:[#allocation9_spill] sm:$0xff] %v7548_v9  ;;  %v3775_v10 = vshll.u32 %v5503_v31, 16  ;;  %v3754_v31 = vor.u32 %v3753_v37, %v3750_v27  ;;  %v3764_v53 = vor.u32 %v3763_v52, %v7542_v50  ;;  %v8489_v18 = vcombine.low %v7289_v19, %v7302_v58  ;;  %v6455_v37 = vld [vmem:[%s6621_s27 + $0xb4] sm:$0xff]  }
  0xd6   : > { %5860 = vmatmul.mubr.msk.bf16.vlgmr.msra.gmra.mrb[0].mxu1 %vm696_vm3, %v8486_v38  ;;  %6015 = vmatprep.mubr.msk.bf16.mxu0 %vm696_vm3, %v6452_v21  ;;  %v3729_v21 = vrot.slane %v3727_v15, 5  ;;  %v7531_v38 = vld [vmem:[%s6621_s27 + $0x50] sm:$0x1]  ;;  %v7540_v15 = vld [vmem:[%s6621_s27 + $0x5c] sm:$0x1]  ;;  %v8490_v27 = vcombine.low %v7307_v2, %v7311_v1  ;;  %v1348_v52 = vrot.slane %v1346_v25, 4 }
  0xd7   : > { %5892 = vmatpush3.bf16.msra.mxu1 %v7278_v49  ;;  %5863 = vmatprep.mubr.msk.bf16.mxu1 %vm696_vm3, %v8487_v23  ;;  %v3716_v49 = vor.u32 %v3715_v46, %v7490_v28  ;;  %v7544_v46 = vrot.slane %v3719_v5, 5  ;;  %v1339_v23 = vrot.slane %v6506_v6, 5  ;;  %v3743_v48 = vshll.u32 %v7531_v38, 16  ;;  %v1215_v5 = vld [vmem:[%s6621_s27 + $0x9c] sm:$0xe] }
  0xd8   : > { %6358 = vmatprep.subr.msk.bf16.mxu1 %vm745_vm0, %v6505_v36  ;;  %v6507_v36 = vld [vmem:[%s6621_s27 + $0x98] sm:$0x1]  ;;  %v3730_v7 = vor.u32 %v3729_v21, %v3726_v62  ;;  %v3767_v6 = vshll.u32 %v7540_v15, 16  ;;  %v3785_v62 = vshrl.u32 %v7548_v9, 16  ;;  %v3777_v4 = vrot.slane %v3775_v10, 5 }
  0xd9   : > { %v1342_v33 = vrot.slane %v6507_v36, 5  ;;  %v3717_v8 = vrot.slane %v3716_v49, 4  ;;  %v3781_v36 = vshll.u32 %v7548_v9, 16  ;;  %v7569_v21 = vsel %vm6873_vm7, %v5172_v54, %v1339_v23  ;;  %v7580_v2 = vld [vmem:[%s6621_s27 + $0x68] sm:$0x1] }
  0xda   : > { %v3774_v49 = vrot.slane %v3772_v61, 4  ;;  %v3731_v19 = vrot.slane %v3730_v7, 4  ;;  %v5173_v58 = vrot.slane %v1215_v5, 9  ;;  %v3741_v3 = vrot.slane %v3740_v43, 4  ;;  %8491 = vst [vmem:[#allocation10_spill] sm:$0xff] %v7580_v2  ;;  %v6456_v5 = vld [vmem:[%s6621_s27 + $0xc0] sm:$0xff]  }
  0xdb   : > { %v3745_v54 = vrot.slane %v3743_v48, 5  ;;  %v3769_v63 = vrot.slane %v3767_v6, 5  ;;  %v1353_v61 = vrot.slane %v7015_v56, 5  ;;  %v3755_v10 = vrot.slane %v3754_v31, 4  ;;  %v1217_v31 = vld [vmem:[%s6621_s27 + $0xb4] sm:$0xe] }
  0xdc   : > { %v3765_v51 = vrot.slane %v3764_v53, 4  ;;  %v7582_v1 = vrot.slane %v3781_v36, 5  ;;  %v3787_v7 = vrot.slane %v3785_v62, 4  ;;  %v3712_v43 = vsel %vm6647_vm4, %v7550_v22, %v7490_v28  ;;  %v6510_v62 = vld [vmem:[%s6621_s27 + $0xb0] sm:$0x1] }
  0xdd   : > { %6016 = vmatmul.mubr.msk.bf16.gmra.mrb[20].mxu0 %vm696_vm3, %v6453_v26  ;;  %v1341_v26 = vrot.slane %v1339_v23, 4  ;;  %v1216_v23 = vld [vmem:[%s6621_s27 + $0xa8] sm:$0xe]  ;;  %v3722_v48 = vsel %vm6647_vm4, %v3717_v8, %v7544_v46  ;;  %v3778_v6 = vor.u32 %v3777_v4, %v3774_v49  ;;  %v3736_v53 = vsel %vm6647_vm4, %v3731_v19, %v7533_v34  ;;  %v5506_v46 = vld [vmem:[%s6621_s27 + $0x6c] sm:$0xf] }
  0xde   : > { %5864 = vmatmul.mubr.msk.bf16.gmra.mrb[4].mxu1 %vm696_vm3, %v8489_v18  ;;  %6019 = vmatprep.mubr.msk.bf16.mxu0 %vm696_vm3, %v6454_v30  ;;  %v6509_v18 = vld [vmem:[%s6621_s27 + $0xa4] sm:$0x1]  ;;  %v7602_v36 = vsel %vm6873_vm7, %v5173_v58, %v1346_v25  ;;  %v5174_v28 = vrot.slane %v1216_v23, 9  ;;  %v1355_v8 = vrot.slane %v1353_v61, 4  ;;  %v3791_v49 = vshll.u32 %v7580_v2, 16 }
  0xdf   : > { %5867 = vmatprep.mubr.msk.bf16.mxu1 %vm696_vm3, %v8490_v27  ;;  %v1349_v30 = vrot.slane %v6509_v18, 5  ;;  %v7594_v56 = vsel %vm6873_vm7, %v1341_v26, %v1342_v33  ;;  %v3746_v33 = vsel %vm6647_vm4, %v3741_v3, %v3745_v54  ;;  %v1356_v26 = vrot.slane %v6510_v62, 5  ;;  %v5509_v18 = vld [vmem:[%s6621_s27 + $0x78] sm:$0xf]  ;;  %v7657_v54 = vld [vmem:[%s6621_s27 + $0xbc] sm:$0x1] }
  0xe0   : > { %v3760_v34 = vsel %vm6647_vm4, %v3755_v10, %v7542_v50  ;;  %v3770_v25 = vsel %vm6647_vm4, %v3765_v51, %v3769_v63  ;;  %v3788_v4 = vor.u32 %v3787_v7, %v7582_v1  ;;  %v5175_v27 = vrot.slane %v1217_v31, 9  ;;  %v7631_v51 = vld [vmem:[%s6621_s27 + $0x70] sm:$0xf]  ;;  %v7661_v10 = vld [vmem:[%s6621_s27 + $0x7c] sm:$0xf] }
  0xe1   : > { %v7606_v22 = vsel %vm6873_vm7, %v1348_v52, %v1349_v30  ;;  %v8493_v3 = vcombine.low %v7324_v45, %v7328_v59  ;;  %v7627_v19 = vrot.slane %v3778_v6, 4  ;;  %v1360_v50 = vrot.slane %v7039_v42, 5  ;;  %8494 = vst [vmem:[#allocation12_spill] sm:$0xff] %v7631_v51  ;;  %8496 = vst [vmem:[#allocation13_spill] sm:$0xff] %v7661_v10  ;;  %v5512_v7 = vld [vmem:[%s6621_s27 + $0x84] sm:$0xf] }
  0xe2   : > { %8492 = vst [vmem:[#allocation11_spill] sm:$0xff] %v7606_v22  ;;  %v3796_v63 = vshrl.u32 %v5506_v46, 16  ;;  %v8495_v45 = vcombine.low %v7332_v47, %v7359_v41  ;;  %v7639_v58 = vcombine.low %v3736_v53, %v3746_v33  ;;  %v7645_v42 = vsel %vm6873_vm7, %v5174_v28, %v1353_v61  ;;  %v6457_v61 = vld [vmem:[%s6621_s27 + $0xcc] sm:$0xff]   ;;  %v7673_v31 = vld [vmem:[%s6621_s27 + $0x88] sm:$0xf] }
  0xe3   : > { %v7648_v30 = vcombine.low %v3760_v34, %v3770_v25  ;;  %v7652_v47 = vsel %vm6873_vm7, %v1355_v8, %v1356_v26  ;;  %v7654_v41 = vrot.slane %v3791_v49, 5  ;;  %v3805_v6 = vshll.u32 %v7631_v51, 16  ;;  %8497 = vst [vmem:[#allocation14_spill] sm:$0xff] %v7673_v31  ;;  %v5515_v62 = vld [vmem:[%s6621_s27 + $0x90] sm:$0xf] }
  0xe4   : > { %v7679_v28 = vrot.slane %v1360_v50, 4  ;;  %v7681_v33 = vrot.slane %v3796_v63, 4  ;;  %v3809_v8 = vshrl.u32 %v7631_v51, 16  ;;  %v3820_v26 = vshrl.u32 %v5509_v18, 16  ;;  %v7688_v25 = vld [vmem:[%s6621_s27 + $0x94] sm:$0xf] }
  0xe5   : > { %6020 = vmatmul.mubr.msk.bf16.gmra.mrb[24].mxu0 %vm696_vm3, %v6455_v37  ;;  %v7625_v37 = vcombine.low %v3712_v43, %v3722_v48  ;;  %v7669_v43 = vsel %vm6873_vm7, %v5175_v27, %v1360_v50  ;;  %v3799_v48 = vshll.u32 %v5506_v46, 16  ;;  %v3823_v49 = vshll.u32 %v5509_v18, 16  ;;  %8498 = vst [vmem:[#allocation15_spill] sm:$0xff] %v7688_v25  ;;  %v7726_v2 = vld [vmem:[%s6621_s27 + $0x8c] sm:$0x1] }
  0xe6   : > { %5868 = vmatmul.mubr.msk.bf16.gmra.mrb[8].mxu1 %vm696_vm3, %v8493_v3  ;;  %6023 = vmatprep.mubr.msk.bf16.mxu0 %vm696_vm3, %v6456_v5  ;;  %v7665_v5 = vrot.slane %v3788_v4, 4  ;;  %v3829_v46 = vshll.u32 %v7661_v10, 16  ;;  %v3833_v34 = vshrl.u32 %v7661_v10, 16  ;;  %v3844_v4 = vshrl.u32 %v5512_v7, 16 }
  0xe7   : > { %5871 = vmatprep.mubr.msk.bf16.mxu1 %vm696_vm3, %v8495_v45  ;;  %v3847_v27 = vshll.u32 %v5512_v7, 16  ;;  %v3853_v3 = vshll.u32 %v7673_v31, 16  ;;  %v3857_v50 = vshrl.u32 %v7673_v31, 16  ;;  %v7698_v45 = vld [vmem:[%s6621_s27 + $0x74] sm:$0x1]  ;;  %v3801_v18 = vrot.slane %v3799_v48, 5 }
  0xe8   : > { %v3868_v52 = vshrl.u32 %v5515_v62, 16  ;;  %v3871_v53 = vshll.u32 %v5515_v62, 16  ;;  %v8499_v7 = vcombine.low %v7343_v60, %v7368_v44  ;;  %v3811_v59 = vrot.slane %v3809_v8, 4  ;;  %v5518_v48 = vld [vmem:[%s6621_s27 + $0x9c] sm:$0xf] }
  0xe9   : > { %v3877_v63 = vshll.u32 %v7688_v25, 16  ;;  %v3881_v23 = vshrl.u32 %v7688_v25, 16  ;;  %v8500_v62 = vcombine.low %v7383_v17, %v7387_v57  ;;  %v7716_v44 = vld [vmem:[%s6621_s27 + $0x80] sm:$0x1]  ;;  %v3822_v60 = vrot.slane %v3820_v26, 4 }
  0xea   : > { %8501 = vst [vmem:[#allocation16_spill] sm:$0xff] %v7716_v44  ;;  %v3846_v31 = vrot.slane %v3844_v4, 4  ;;  %v3849_v8 = vrot.slane %v3847_v27, 5  ;;  %v7720_v10 = vrot.slane %v3853_v3, 5  ;;  %v3859_v51 = vrot.slane %v3857_v50, 4 }
  0xeb   : > { %v7723_v25 = vld [vmem:[%s6621_s27 + $0xa0] sm:$0xf]  ;;  %v3870_v17 = vrot.slane %v3868_v52, 4  ;;  %v3873_v57 = vrot.slane %v3871_v53, 5  ;;  %v3895_v9 = vshll.u32 %v5518_v48, 16  ;;  %v3802_v26 = vor.u32 %v3801_v18, %v7681_v33 }
  0xec   : > { %v3839_v27 = vshll.u32 %v7716_v44, 16  ;;  %v7735_v3 = vld [vmem:[%s6621_s27 + $0x98] sm:$0x1]  ;;  %v3901_v50 = vshll.u32 %v7723_v25, 16  ;;  %v3905_v52 = vshrl.u32 %v7723_v25, 16  ;;  %v3850_v22 = vor.u32 %v3849_v8, %v3846_v31 }
  0xed   : > { %6024 = vmatmul.mubr.msk.bf16.gmra.mrb[28].mxu0 %vm696_vm3, %v6457_v61  ;;  %v7706_v61 = vrot.slane %v3805_v6, 5  ;;  %v3835_v6 = vrot.slane %v3833_v34, 4  ;;  %v3883_v34 = vrot.slane %v3881_v23, 4  ;;  %v3863_v33 = vshll.u32 %v7726_v2, 16 }
  0xee   : > { %5872 = vmatmul.mubr.msk.bf16.gmra.mrb[12].mxu1 %vm696_vm3, %v8499_v7  ;;  %6029 = vmatprep.mubr.msk.bf16.mxu0 %vm696_vm3, %v7448_v20  ;;  %v3825_v7 = vrot.slane %v3823_v49, 5  ;;  %v7718_v20 = vrot.slane %v3829_v46, 5  ;;  %v3815_v49 = vshll.u32 %v7698_v45, 16  ;;  %v7730_v46 = vrot.slane %v3877_v63, 5 }
  0xef   : > { %5875 = vmatprep.mubr.msk.bf16.mxu1 %vm696_vm3, %v8500_v62  ;;  %v3892_v62 = vshrl.u32 %v5518_v48, 16  ;;  %v3812_v4 = vor.u32 %v3811_v59, %v7706_v61  ;;  %v3860_v23 = vor.u32 %v3859_v51, %v7720_v10  ;;  %v3874_v59 = vor.u32 %v3873_v57, %v3870_v17  ;;  %v7768_v57 = vld [vmem:[%s6621_s27 + $0xa4] sm:$0x1] }
  0xf0   : > { %v3826_v53 = vor.u32 %v3825_v7, %v3822_v60  ;;  %v3836_v48 = vor.u32 %v3835_v6, %v7718_v20  ;;  %v3897_v18 = vrot.slane %v3895_v9, 5  ;;  %v8502_v44 = vcombine.low %v7395_v11, %v7399_v40 }
  0xf1   : > { %v3894_v63 = vrot.slane %v3892_v62, 4  ;;  %v8503_v31 = vrot.slane %v7657_v54, 5  ;;  %v3817_v51 = vrot.slane %v3815_v49, 5  ;;  %v3884_v60 = vor.u32 %v3883_v34, %v7730_v46  ;;  %v7771_v34 = vld [vmem:[%s6621_s27 + $0xac] sm:$0xf] }
  0xf2   : > { %v3887_v9 = vshll.u32 %v7735_v3, 16  ;;  %v8504_v11 = vcombine.low %v7467_v39, %v7471_v55  ;;  %v3803_v40 = vrot.slane %v3802_v26, 4  ;;  %v7764_v54 = vrot.slane %v3901_v50, 5 }
  0xf3   : > { %v3827_v7 = vrot.slane %v3826_v53, 4  ;;  %v3837_v6 = vrot.slane %v3836_v48, 4  ;;  %v3841_v8 = vrot.slane %v3839_v27, 5  ;;  %v3865_v17 = vrot.slane %v3863_v33, 5  ;;  %v7781_v48 = vld [vmem:[%s6621_s27 + $0xb0] sm:$0x1] }
  0xf4   : > { %v3851_v39 = vrot.slane %v3850_v22, 4  ;;  %v3861_v55 = vrot.slane %v3860_v23, 4  ;;  %v3875_v62 = vrot.slane %v3874_v59, 4  ;;  %v3898_v49 = vor.u32 %v3897_v18, %v3894_v63 }
  0xf5   : > { %6030 = vmatmul.mubr.msk.bf16.vlgmr.msra.gmra.mrb[0].mxu0 %vm696_vm3, %v7511_v16  ;;  %v7754_v16 = vsel %vm6873_vm7, %v7679_v28, %v8503_v31  ;;  %v3907_v28 = vrot.slane %v3905_v52, 4  ;;  %v3889_v26 = vrot.slane %v3887_v9, 5  ;;  %v3808_v52 = vsel %vm6647_vm4, %v3803_v40, %v7706_v61 }
  0xf6   : > { %5876 = vmatmul.mubr.msk.bf16.gmra.mrb[16].mxu1 %vm696_vm3, %v8502_v44  ;;  %6062 = vmatpush3.bf16.msra.mxu0 %v7452_v14  ;;  %v3813_v14 = vrot.slane %v3812_v4, 4  ;;  %v5521_v44 = vld [vmem:[%s6621_s27 + $0xa8] sm:$0xf]  ;;  %v3911_v22 = vshll.u32 %v7768_v57, 16  ;;  %v3832_v33 = vsel %vm6647_vm4, %v3827_v7, %v7718_v20  ;;  %v3842_v23 = vsel %vm6647_vm4, %v3837_v6, %v3841_v8 }
  0xf7   : > { %5879 = vmatprep.mubr.msk.bf16.mxu1 %vm696_vm3, %v8504_v11  ;;  %6033 = vmatprep.mubr.msk.bf16.mxu0 %vm696_vm3, %v7522_v29  ;;  %v3885_v29 = vrot.slane %v3884_v60, 4  ;;  %v3916_v4 = vshrl.u32 %v5521_v44, 16  ;;  %v3919_v50 = vshll.u32 %v5521_v44, 16  ;;  %v3908_v53 = vor.u32 %v3907_v28, %v7764_v54  ;;  %v5570_v11 = vld [vmem:[%s6621_s27 + $0x48] sm:$0xe] }
  0xf8   : > { %v3818_v27 = vsel %vm6647_vm4, %v3813_v14, %v3817_v51  ;;  %v3925_v59 = vshll.u32 %v7771_v34, 16  ;;  %v3929_v61 = vshrl.u32 %v7771_v34, 16  ;;  %v3856_v63 = vsel %vm6647_vm4, %v3851_v39, %v7720_v10  ;;  %v7846_v39 = vld [vmem:[%s6621_s27 + $0xb8] sm:$0xf] }
  0xf9   : > { %v3866_v18 = vsel %vm6647_vm4, %v3861_v55, %v3865_v17  ;;  %v3880_v20 = vsel %vm6647_vm4, %v3875_v62, %v7730_v46  ;;  %v3899_v31 = vrot.slane %v3898_v49, 4  ;;  %v8505_v51 = vcombine.low %v7484_v12, %v7499_v35 }
  0xfa   : > { %v3918_v10 = vrot.slane %v3916_v4, 4  ;;  %v3921_v60 = vrot.slane %v3919_v50, 5  ;;  %v3935_v9 = vshll.u32 %v7781_v48, 16  ;;  %v8506_v46 = vcombine.low %v7569_v21, %v7594_v56  ;;  %v5524_v21 = vld [vmem:[%s6621_s27 + $0xb4] sm:$0xf] }
  0xfb   : > { %v5191_v12 = vcombine.low %v7645_v42, %v7652_v47  ;;  %v8507_v35 = vsel %vm6647_vm4, %v7665_v5, %v7654_v41  ;;  %v3909_v14 = vrot.slane %v3908_v53, 4  ;;  %v3913_v28 = vrot.slane %v3911_v22, 5  ;;  %v5572_v4 = vld [vmem:[%s6621_s27 + $0x60] sm:$0xe]  ;;  %v5573_v53 = vld [vmem:[%s6621_s27 + $0x6c] sm:$0xe] }
  0xfc   : > { %v5192_v56 = vcombine.low %v7669_v43, %v7754_v16  ;;  %v7829_v44 = vcombine.low %v3808_v52, %v3818_v27  ;;  %v7831_v42 = vrot.slane %v3925_v59, 5  ;;  %v3931_v47 = vrot.slane %v3929_v61, 4  ;;  %v8516_v16 = vld [vmem:[#allocation4_spill] sm:$0xff] }
  0xfd   : > { %6034 = vmatmul.mubr.msk.bf16.gmra.mrb[4].mxu0 %vm696_vm3, %v7625_v37  ;;  %v3890_v37 = vsel %vm6647_vm4, %v3885_v29, %v3889_v26  ;;  %v7833_v41 = vcombine.low %v3832_v33, %v3842_v23  ;;  %v7835_v5 = vcombine.low %v3856_v63, %v3866_v18  ;;  %v3904_v6 = vsel %vm6647_vm4, %v3899_v31, %v7764_v54  ;;  %v8509_v23 = vld [vmem:[#allocation11_spill] sm:$0xff]  ;;  %v5527_v63 = vld [vmem:[%s6621_s27 + $0xc0] sm:$0xf]  ;;  %v8511_v18 = vld [vmem:[#allocation9_spill] sm:$0xff] }
  0xfe   : > { %5880 = vmatmul.mubr.msk.bf16.gmra.mrb[20].mxu1 %vm696_vm3, %v8505_v51  ;;  %6037 = vmatprep.mubr.msk.bf16.mxu0 %vm696_vm3, %v7639_v58  ;;  %v8508_v58 = vsel %vm6647_vm4, %v7627_v19, %v7582_v1  ;;  %v7837_v7 = vcombine.low %v3880_v20, %v3890_v37  ;;  %v5586_v1 = vrot.slane %v5570_v11, 9  ;;  %v5571_v19 = vld [vmem:[%s6621_s27 + $0x54] sm:$0xe]  ;;  %v3922_v8 = vor.u32 %v3921_v60, %v3918_v10  ;;  %v8512_v31 = vld [vmem:[#allocation10_spill] sm:$0xff] }
  0xff   : > { %5883 = vmatprep.mubr.msk.bf16.mxu1 %vm696_vm3, %v8506_v46  ;;  %v5540_v40 = vcombine.low %v8508_v58, %v8507_v35  ;;  %v7843_v17 = vrot.slane %v3935_v9, 5  ;;  %v3940_v55 = vshrl.u32 %v5524_v21, 16  ;;  %v3914_v62 = vsel %vm6647_vm4, %v3909_v14, %v3913_v28  ;;  %v8513_v9 = vld [vmem:[#allocation12_spill] sm:$0xff]  ;;  %v7895_v35 = vld [vmem:[%s6621_s27 + $0xbc] sm:$0x1] }
 0x100   : > { %v3943_v49 = vshll.u32 %v5524_v21, 16  ;;  %v4399_v29 = vrot.slane %v7477_v0, 5  ;;  %v4402_v26 = vrot.slane %v7531_v38, 5  ;;  %v3932_v50 = vor.u32 %v3931_v47, %v7831_v42  ;;  %v7898_v58 = vld [vmem:[%s6621_s27 + $0xc4] sm:$0xf] }
 0x101   : > { %v5587_v52 = vrot.slane %v5571_v19, 9  ;;  %v4406_v54 = vrot.slane %v7488_v24, 5  ;;  %v4409_v27 = vrot.slane %v7540_v15, 5  ;;  %v3949_v22 = vshll.u32 %v7846_v39, 16  ;;  %v5574_v19 = vld [vmem:[%s6621_s27 + $0x78] sm:$0xe] }
 0x102   : > { %v3953_v33 = vshrl.u32 %v7846_v39, 16  ;;  %v7863_v0 = vsel %vm6873_vm7, %v5586_v1, %v4399_v29  ;;  %v4401_v38 = vrot.slane %v4399_v29, 4  ;;  %v8510_v59 = vcombine.low %v7602_v36, %v8509_v23  ;;  %v8514_v23 = vld [vmem:[#allocation13_spill] sm:$0xff] }
 0x103   : > { %v7870_v24 = vcombine.low %v3904_v6, %v3914_v62  ;;  %v7874_v15 = vsel %vm6873_vm7, %v5587_v52, %v4406_v54  ;;  %v5588_v61 = vrot.slane %v5572_v4, 9  ;;  %v4413_v20 = vrot.slane %v8511_v18, 5  ;;  %v6458_v6 = vld [vmem:[%s6621_s27 + $0xc] sm:$0xff]  }
 0x104   : > { %v7880_v36 = vsel %vm6873_vm7, %v4401_v38, %v4402_v26  ;;  %v4416_v51 = vrot.slane %v8512_v31, 5  ;;  %v5589_v37 = vrot.slane %v5573_v53, 9  ;;  %v4420_v11 = vrot.slane %v8513_v9, 5 }
 0x105   : > { %6038 = vmatmul.mubr.msk.bf16.gmra.mrb[8].mxu0 %vm696_vm3, %v7648_v30  ;;  %v4408_v30 = vrot.slane %v4406_v54, 4  ;;  %v5603_v10 = vcombine.low %v7863_v0, %v7880_v36  ;;  %v4423_v46 = vrot.slane %v7698_v45, 5  ;;  %v7904_v14 = vsel %vm6873_vm7, %v5588_v61, %v4413_v20 }
 0x106   : > { %5884 = vmatmul.mubr.msk.bf16.gmra.mrb[24].mxu1 %vm696_vm3, %v8510_v59  ;;  %6041 = vmatprep.mubr.msk.bf16.mxu0 %vm696_vm3, %v5540_v40  ;;  %v4415_v28 = vrot.slane %v4413_v20, 4  ;;  %v7906_v21 = vrot.slane %v3940_v55, 4  ;;  %v3964_v47 = vshrl.u32 %v5527_v63, 16  ;;  %v7910_v45 = vsel %vm6873_vm7, %v5589_v37, %v4420_v11  ;;  %v5301_v55 = vld [vmem:[%s6621_s27 + $0x78] sm:$0xf]  ;;  %v8515_v59 = vld [vmem:[#allocation16_spill] sm:$0xff] }
 0x107   : > { %5887 = vmatprep.mubr.msk.bf16.mxu1 %vm696_vm3, %v5191_v12  ;;  %v7888_v60 = vsel %vm6873_vm7, %v4408_v30, %v4409_v27  ;;  %v7892_v12 = vrot.slane %v3922_v8, 4  ;;  %v4422_v1 = vrot.slane %v4420_v11, 4  ;;  %v7914_v8 = vrot.slane %v3932_v50, 4 }
 0x108   : > { %v5604_v40 = vcombine.low %v7874_v15, %v7888_v60  ;;  %v7916_v62 = vrot.slane %v3943_v49, 5  ;;  %v3967_v29 = vshll.u32 %v5527_v63, 16  ;;  %v7920_v26 = vsel %vm6873_vm7, %v4415_v28, %v4416_v51  ;;  %v8518_v28 = vld [vmem:[#allocation14_spill] sm:$0xff] }
 0x109   : > { %v7923_v4 = vrot.slane %v3949_v22, 5  ;;  %v7925_v52 = vrot.slane %v3953_v33, 4  ;;  %v5605_v54 = vcombine.low %v7904_v14, %v7920_v26  ;;  %v7931_v27 = vsel %vm6873_vm7, %v4422_v1, %v4423_v46  ;;  %v5575_v33 = vld [vmem:[%s6621_s27 + $0x84] sm:$0xe]  ;;  %v6459_v1 = vld [vmem:[%s6621_s27 + $0x18] sm:$0xff]  }
 0x10a   : > { %v3959_v49 = vshll.u32 %v7895_v35, 16  ;;  %v3973_v50 = vshll.u32 %v7898_v58, 16  ;;  %v5606_v53 = vcombine.low %v7910_v45, %v7931_v27  ;;  %v5590_v22 = vrot.slane %v5574_v19, 9  ;;  %v6521_v60 = vld [vmem:[%s6621_s27 + $0xa0] sm:$0xf] }
 0x10b   : > { %v3966_v38 = vrot.slane %v3964_v47, 4  ;;  %v4430_v30 = vrot.slane %v8515_v59, 5  ;;  %v2286_v61 = vshrl.u32 %v5301_v55, 16  ;;  %v3969_v63 = vrot.slane %v3967_v29, 5  ;;  %v5530_v29 = vld [vmem:[%s6621_s27 + $0xcc] sm:$0xf] }
 0x10c   : > { %v3977_v18 = vshrl.u32 %v7898_v58, 16  ;;  %v2289_v43 = vshll.u32 %v5301_v55, 16  ;;  %v5591_v37 = vrot.slane %v5575_v33, 9  ;;  %v3928_v9 = vsel %vm6647_vm4, %v7892_v12, %v7831_v42  ;;  %v7974_v55 = vld [vmem:[%s6621_s27 + $0xd0] sm:$0xf] }
 0x10d   : > { %6042 = vmatmul.mubr.msk.bf16.gmra.mrb[12].mxu0 %vm696_vm3, %v7829_v44  ;;  %v4427_v44 = vrot.slane %v8514_v23, 5  ;;  %v2288_v51 = vrot.slane %v2286_v61, 4  ;;  %v3946_v11 = vor.u32 %v7916_v62, %v7906_v21  ;;  %v4434_v47 = vrot.slane %v8518_v28, 5  ;;  %v6460_v21 = vld [vmem:[%s6621_s27 + $0x24] sm:$0xff]   ;;  %v6525_v27 = vld [vmem:[%s6621_s27 + $0xac] sm:$0xf] }
 0x10e   : > { %5888 = vmatmul.mubr.msk.bf16.gmra.mrb[28].mxu1 %vm696_vm3, %v5192_v56  ;;  %6045 = vmatprep.mubr.msk.bf16.mxu0 %vm696_vm3, %v7833_v41  ;;  %v8517_v56 = vld [vmem:[#allocation5_spill] sm:$0xff]  ;;  %v2291_v46 = vrot.slane %v2289_v43, 5  ;;  %v3938_v19 = vsel %vm6647_vm4, %v7914_v8, %v7843_v17  ;;  %v4437_v12 = vrot.slane %v7726_v2, 5  ;;  %v7982_v62 = vrot.slane %v3973_v50, 5  ;;  %v5576_v8 = vld [vmem:[%s6621_s27 + $0x90] sm:$0xe] }
 0x10f   : > { %5893 = vmatprep.mubr.msk.bf16.mxu1 %vm696_vm3, %v6458_v6  ;;  %v2308_v41 = vsel %vm6647_vm4, %v8517_v56, %v8516_v16  ;;  %v7956_v20 = vsel %vm6873_vm7, %v5590_v22, %v4427_v44  ;;  %v4429_v31 = vrot.slane %v4427_v44, 4  ;;  %v3956_v6 = vor.u32 %v7925_v52, %v7923_v4  ;;  %v7988_v52 = vld [vmem:[%s6621_s27 + $0xc8] sm:$0x1]  ;;  %v8520_v16 = vld [vmem:[#allocation2_spill] sm:$0xff] }
 0x110   : > { %v3979_v22 = vrot.slane %v3977_v18, 4  ;;  %v2292_v17 = vor.u32 %v2291_v46, %v2288_v51  ;;  %v3961_v23 = vrot.slane %v3959_v49, 5  ;;  %v3970_v44 = vor.u32 %v3969_v63, %v3966_v38  ;;  %v8521_v51 = vld [vmem:[#allocation3_spill] sm:$0xff] }
 0x111   : > { %v7978_v42 = vsel %vm6873_vm7, %v4429_v31, %v4430_v30  ;;  %v7992_v59 = vsel %vm6873_vm7, %v5591_v37, %v4434_v47  ;;  %v4436_v30 = vrot.slane %v4434_v47, 4  ;;  %v3988_v2 = vshrl.u32 %v5530_v29, 16 }
 0x112   : > { %v5607_v33 = vcombine.low %v7956_v20, %v7978_v42  ;;  %v3991_v50 = vshll.u32 %v5530_v29, 16  ;;  %v3997_v61 = vshll.u32 %v7974_v55, 16  ;;  %v2293_v18 = vrot.slane %v2292_v17, 4  ;;  %v6461_v29 = vld [vmem:[%s6621_s27 + $0x30] sm:$0xff]  }
 0x113   : > { %v4001_v49 = vshrl.u32 %v7974_v55, 16  ;;  %v8003_v38 = vsel %vm6873_vm7, %v4436_v30, %v4437_v12  ;;  %v5592_v63 = vrot.slane %v5576_v8, 9  ;;  %v3980_v56 = vor.u32 %v3979_v22, %v7982_v62 }
 0x114   : > { %v3983_v31 = vshll.u32 %v7988_v52, 16  ;;  %v5608_v37 = vcombine.low %v7992_v59, %v8003_v38  ;;  %v5546_v46 = vcombine.low %v3928_v9, %v3938_v19  ;;  %v3947_v28 = vrot.slane %v3946_v11, 4  ;;  %v5577_v11 = vld [vmem:[%s6621_s27 + $0x9c] sm:$0xe] }
 0x115   : > { %6046 = vmatmul.mubr.msk.bf16.gmra.mrb[16].mxu0 %vm696_vm3, %v7835_v5  ;;  %v8519_v5 = vld [vmem:[#allocation15_spill] sm:$0xff]  ;;  %v3957_v47 = vrot.slane %v3956_v6, 4  ;;  %v3971_v12 = vrot.slane %v3970_v44, 4  ;;  %v4444_v8 = vrot.slane %v7735_v3, 5  ;;  %v3990_v30 = vrot.slane %v3988_v2, 4  ;;  %v6462_v19 = vld [vmem:[%s6621_s27 + $0x3c] sm:$0xff]  }
 0x116   : > { %5894 = vmatmul.mubr.msk.bf16.vlgmr.msra.gmra.mrb[0].mxu1 %vm696_vm3, %v6459_v1  ;;  %6049 = vmatprep.mubr.msk.bf16.mxu0 %vm696_vm3, %v7837_v7  ;;  %v4441_v43 = vrot.slane %v8519_v5, 5  ;;  %v2298_v7 = vsel %vm6647_vm4, %v2293_v18, %v8521_v51  ;;  %v3993_v18 = vrot.slane %v3991_v50, 5  ;;  %v8026_v5 = vrot.slane %v3997_v61, 5 }
 0x117   : > { %6096 = vmatpush3.bf16.msra.mxu1 %v8520_v16  ;;  %5897 = vmatprep.mubr.msk.bf16.mxu1 %vm696_vm3, %v6460_v21  ;;  %v8015_v1 = vcombine.low %v2298_v7, %v2308_v41  ;;  %v8019_v21 = vld [vmem:[%s6621_s27 + $0xd4] sm:$0x1]  ;;  %v4003_v9 = vrot.slane %v4001_v49, 4  ;;  %v3981_v41 = vrot.slane %v3980_v56, 4  ;;  %v3985_v6 = vrot.slane %v3983_v31, 5 }
 0x118   : > { %v8023_v22 = vsel %vm6873_vm7, %v5592_v63, %v4441_v43  ;;  %v4443_v17 = vrot.slane %v4441_v43, 4  ;;  %v3952_v63 = vsel %vm6647_vm4, %v3947_v28, %v7923_v4  ;;  %v3962_v2 = vsel %vm6647_vm4, %v3957_v47, %v3961_v23  ;;  %v6512_v16 = vld [vmem:[%s6621_s27 + $0x1c] sm:$0xf]  ;;  %v5578_v28 = vld [vmem:[%s6621_s27 + $0xa8] sm:$0xe] }
 0x119   : > { %v4007_v50 = vshll.u32 %v8019_v21, 16  ;;  %v5593_v61 = vrot.slane %v5577_v11, 9  ;;  %v4448_v49 = vrot.slane %v7723_v25, 5  ;;  %v3976_v4 = vsel %vm6647_vm4, %v3971_v12, %v7982_v62  ;;  %v5566_v62 = vld [vmem:[%s6621_s27 + $0x18] sm:$0xe]  ;;  %v6463_v47 = vld [vmem:[%s6621_s27 + $0x48] sm:$0xff]  }
 0x11a   : > { %v8032_v44 = vsel %vm6873_vm7, %v4443_v17, %v4444_v8  ;;  %v4004_v43 = vor.u32 %v4003_v9, %v8026_v5  ;;  %v4451_v23 = vrot.slane %v7768_v57, 5  ;;  %v3986_v25 = vsel %vm6647_vm4, %v3981_v41, %v3985_v6  ;;  %v6513_v11 = vld [vmem:[%s6621_s27 + $0x20] sm:$0x1] }
 0x11b   : > { %v5609_v3 = vcombine.low %v8023_v22, %v8032_v44  ;;  %v4371_v56 = vrot.slane %v6512_v16, 5  ;;  %v8058_v31 = vsel %vm6873_vm7, %v5593_v61, %v4448_v49  ;;  %v4450_v51 = vrot.slane %v4448_v49, 4  ;;  %v5579_v49 = vld [vmem:[%s6621_s27 + $0xb4] sm:$0xe] }
 0x11c   : > { %v5547_v7 = vcombine.low %v3952_v63, %v3962_v2  ;;  %v4005_v17 = vrot.slane %v4004_v43, 4  ;;  %v5594_v41 = vrot.slane %v5578_v28, 9  ;;  %v4455_v6 = vrot.slane %v7771_v34, 5  ;;  %v5567_v2 = vld [vmem:[%s6621_s27 + $0x24] sm:$0xe] }
 0x11d   : > { %6050 = vmatmul.mubr.msk.bf16.gmra.mrb[20].mxu0 %vm696_vm3, %v7870_v24  ;;  %v3994_v24 = vor.u32 %v3993_v18, %v3990_v30  ;;  %v8063_v57 = vsel %vm6873_vm7, %v4450_v51, %v4451_v23  ;;  %v6464_v30 = vld [vmem:[%s6621_s27 + $0x54] sm:$0xff]   ;;  %v5582_v18 = vrot.slane %v5566_v62, 9  ;;  %v4373_v9 = vrot.slane %v4371_v56, 4  ;;  %v6516_v28 = vld [vmem:[%s6621_s27 + $0x2c] sm:$0x1] }
 0x11e   : > { %5898 = vmatmul.mubr.msk.bf16.gmra.mrb[4].mxu1 %vm696_vm3, %v6461_v29  ;;  %6053 = vmatprep.mubr.msk.bf16.mxu0 %vm696_vm3, %v5546_v46  ;;  %v4009_v46 = vrot.slane %v4007_v50, 5  ;;  %v5548_v29 = vcombine.low %v3976_v4, %v3986_v25  ;;  %v5610_v8 = vcombine.low %v8058_v31, %v8063_v57  ;;  %v4458_v63 = vrot.slane %v7781_v48, 5  ;;  %v6514_v50 = vld [vmem:[%s6621_s27 + $0x28] sm:$0xf]  ;;  %v5568_v25 = vld [vmem:[%s6621_s27 + $0x30] sm:$0xe] }
 0x11f   : > { %5901 = vmatprep.mubr.msk.bf16.mxu1 %vm696_vm3, %v6462_v19  ;;  %v3995_v12 = vrot.slane %v3994_v24, 4  ;;  %v4374_v19 = vrot.slane %v6513_v11, 5  ;;  %v4378_v61 = vrot.slane %v6514_v50, 5  ;;  %v8086_v48 = vsel %vm6873_vm7, %v5594_v41, %v4455_v6  ;;  %v6466_v11 = vld [vmem:[%s6621_s27 + $0x6c] sm:$0xff]   ;;  %v8522_v41 = vld [vmem:[#allocation6_spill] sm:$0xff] }
 0x120   : > { %v4010_v34 = vsel %vm6647_vm4, %v4005_v17, %v4009_v46  ;;  %v4457_v24 = vrot.slane %v4455_v6, 4  ;;  %v4372_v43 = vsel %vm6873_vm7, %v5582_v18, %v4371_v56  ;;  %v5583_v51 = vrot.slane %v5567_v2, 9  ;;  %v5580_v50 = vld [vmem:[%s6621_s27 + $0xc0] sm:$0xe]  ;;  %v6530_v31 = vld [vmem:[%s6621_s27 + $0xc8] sm:$0x1] }
 0x121   : > { %v4000_v4 = vsel %vm6647_vm4, %v3995_v12, %v8026_v5  ;;  %v4375_v23 = vsel %vm6873_vm7, %v4373_v9, %v4374_v19  ;;  %v6515_v5 = vld [vmem:[%s6621_s27 + $0x34] sm:$0xf]  ;;  %v6465_v12 = vld [vmem:[%s6621_s27 + $0x60] sm:$0xff]   ;;  %v5584_v18 = vrot.slane %v5568_v25, 9  ;;  %v4465_v9 = vrot.slane %v7895_v35, 5 }
 0x122   : > { %v4385_v16 = vrot.slane %v6515_v5, 5  ;;  %v8097_v62 = vsel %vm6873_vm7, %v4457_v24, %v4458_v63  ;;  %v5549_v46 = vcombine.low %v4000_v4, %v4010_v34  ;;  %v5599_v17 = vcombine.low %v4372_v43, %v4375_v23  ;;  %v5569_v24 = vld [vmem:[%s6621_s27 + $0x3c] sm:$0xe] }
 0x123   : > { %v5611_v56 = vcombine.low %v8086_v48, %v8097_v62  ;;  %v4388_v6 = vrot.slane %v8522_v41, 5  ;;  %v4379_v35 = vsel %vm6873_vm7, %v5583_v51, %v4378_v61  ;;  %v5596_v5 = vrot.slane %v5580_v50, 9 }
 0x124   : > { %v4387_v19 = vrot.slane %v4385_v16, 4  ;;  %v4386_v23 = vsel %vm6873_vm7, %v5584_v18, %v4385_v16  ;;  %v4472_v51 = vrot.slane %v7988_v52, 5  ;;  %v2449_v57 = vshll.u32 %v6530_v31, 16 }
 0x125   : > { %6054 = vmatmul.mubr.msk.bf16.gmra.mrb[24].mxu0 %vm696_vm3, %v5547_v7  ;;  %v5595_v7 = vrot.slane %v5579_v49, 9 }
 0x126   : > { %5902 = vmatmul.mubr.msk.bf16.gmra.mrb[8].mxu1 %vm696_vm3, %v6463_v47  ;;  %6057 = vmatprep.mubr.msk.bf16.mxu0 %vm696_vm3, %v5548_v29  ;;  %v4381_v47 = vrot.slane %v6516_v28, 5  ;;  %v4462_v29 = vrot.slane %v7846_v39, 5  ;;  %v8523_v39 = vld [vmem:[#allocation7_spill] sm:$0xff]  ;;  %v4389_v25 = vsel %vm6873_vm7, %v4387_v19, %v4388_v6  ;;  %v5585_v28 = vrot.slane %v5569_v24, 9 }
 0x127   : > { %5905 = vmatprep.mubr.msk.bf16.mxu1 %vm696_vm3, %v6464_v30  ;;  %v4380_v30 = vrot.slane %v4378_v61, 4  ;;  %v4392_v49 = vrot.slane %v8523_v39, 5  ;;  %v4469_v61 = vrot.slane %v7898_v58, 5  ;;  %v6517_v39 = vld [vmem:[%s6621_s27 + $0x70] sm:$0xf]  ;;  %v4476_v24 = vrot.slane %v7974_v55, 5 }
 0x128   : > { %v8109_v63 = vsel %vm6873_vm7, %v5595_v7, %v4462_v29  ;;  %v4464_v2 = vrot.slane %v4462_v29, 4  ;;  %v5298_v7 = vld [vmem:[%s6621_s27 + $0x6c] sm:$0xf]  ;;  %v8524_v29 = vld [vmem:[#allocation8_spill] sm:$0xff] }
 0x129   : > { %v4382_v34 = vsel %vm6873_vm7, %v4380_v30, %v4381_v47  ;;  %v4394_v47 = vrot.slane %v4392_v49, 4  ;;  %v6467_v30 = vld [vmem:[%s6621_s27 + $0x78] sm:$0xff]   ;;  %v8140_v16 = vsel %vm6873_vm7, %v5596_v5, %v4469_v61  ;;  %v4471_v18 = vrot.slane %v4469_v61, 4 }
 0x12a   : > { %v8116_v4 = vsel %vm6873_vm7, %v4464_v2, %v4465_v9  ;;  %v5601_v9 = vcombine.low %v4386_v23, %v4389_v25  ;;  %v2262_v19 = vshrl.u32 %v5298_v7, 16  ;;  %v2265_v41 = vshll.u32 %v5298_v7, 16 }
 0x12b   : > { %v5612_v43 = vcombine.low %v8109_v63, %v8116_v4  ;;  %v8145_v58 = vsel %vm6873_vm7, %v4471_v18, %v4472_v51  ;;  %v4393_v6 = vsel %vm6873_vm7, %v5585_v28, %v4392_v49  ;;  %v4479_v49 = vrot.slane %v8019_v21, 5  ;;  %v6469_v51 = vld [vmem:[%s6621_s27 + $0x90] sm:$0xff]   ;;  %v6470_v21 = vld [vmem:[%s6621_s27 + $0x9c] sm:$0xff]  }
 0x12c   : > { %v5613_v50 = vcombine.low %v8140_v16, %v8145_v58  ;;  %v2264_v23 = vrot.slane %v2262_v19, 4  ;;  %v2267_v25 = vrot.slane %v2265_v41, 5  ;;  %v4478_v7 = vrot.slane %v4476_v24, 4 }
 0x12d   : > { %6058 = vmatmul.mubr.msk.bf16.gmra.mrb[28].mxu0 %vm696_vm3, %v5549_v46  ;;  %v5600_v46 = vcombine.low %v4379_v35, %v4382_v34  ;;  %v2271_v35 = vshll.u32 %v6517_v39, 16  ;;  %v2275_v34 = vshrl.u32 %v6517_v39, 16  ;;  %v6555_v63 = vmov 0.0  }
 0x12e   : > { %5906 = vmatmul.mubr.msk.bf16.gmra.mrb[12].mxu1 %vm696_vm3, %v6465_v12  ;;  %6063 = vmatprep.mubr.msk.bf16.mxu0 %vm696_vm3, %v5599_v17  ;;  %v4395_v12 = vrot.slane %v8524_v29, 5  ;;  %v5581_v17 = vld [vmem:[%s6621_s27 + $0xcc] sm:$0xe]  ;;  %v8167_v55 = vsel %vm6873_vm7, %v4478_v7, %v4479_v49  ;;  %4887 = vst [vmem:[%s8301_s22] sm:$0x3] %v6555_v63 }
 0x12f   : > { %5909 = vmatprep.mubr.msk.bf16.mxu1 %vm696_vm3, %v6466_v11  ;;  %v6468_v11 = vld [vmem:[%s6621_s27 + $0x84] sm:$0xff]   ;;  %v5597_v52 = vrot.slane %v5581_v17, 9  ;;  %v2277_v28 = vrot.slane %v2275_v34, 4  ;;  %v6518_v17 = vld [vmem:[%s6621_s27 + $0x74] sm:$0x1] }
 0x130   : > { %v4396_v2 = vsel %vm6873_vm7, %v4394_v47, %v4395_v12  ;;  %v5304_v47 = vld [vmem:[%s6621_s27 + $0x84] sm:$0xf]  ;;  %v2268_v12 = vor.u32 %v2267_v25, %v2264_v23  ;;  %v6472_v34 = vld [vmem:[%s6621_s27 + $0xb4] sm:$0xff]  }
 0x131   : > { %v8162_v5 = vsel %vm6873_vm7, %v5597_v52, %v4476_v24  ;;  %v5602_v61 = vcombine.low %v4393_v6, %v4396_v2  ;;  %v2313_v18 = vshll.u32 %v5304_v47, 16  ;;  %v5307_v6 = vld [vmem:[%s6621_s27 + $0x90] sm:$0xf]  ;;  %v6471_v2 = vld [vmem:[%s6621_s27 + $0xa8] sm:$0xff]  }
 0x132   : > { %v5614_v29 = vcombine.low %v8162_v5, %v8167_v55  ;;  %v2269_v52 = vrot.slane %v2268_v12, 4  ;;  %v2334_v23 = vshrl.u32 %v5307_v6, 16  ;;  %v2337_v25 = vshll.u32 %v5307_v6, 16 }
 0x133   : > { %v2367_v12 = vshll.u32 %v6521_v60, 16 }
 0x134   : > { %v2339_v14 = vrot.slane %v2337_v25, 5  ;;  %v6524_v25 = vld [vmem:[%s6621_s27 + $0xa4] sm:$0x1] }
 0x135   : > { %6064 = vmatmul.mubr.msk.bf16.vlgmr.msra.gmra.mrb[0].mxu0 %vm696_vm3, %v5600_v46  ;;  %v2273_v46 = vrot.slane %v2271_v35, 5  ;;  %v5310_v35 = vld [vmem:[%s6621_s27 + $0x9c] sm:$0xf]  ;;  %v8209_v6 = vrot.slane %v2367_v12, 5 }
 0x136   : > { %5910 = vmatmul.mubr.msk.bf16.gmra.mrb[16].mxu1 %vm696_vm3, %v6467_v30  ;;  %6067 = vmatprep.mubr.msk.bf16.mxu0 %vm696_vm3, %v5601_v9  ;;  %v2281_v30 = vshll.u32 %v6518_v17, 16  ;;  %v2310_v9 = vshrl.u32 %v5304_v47, 16  ;;  %v2361_v47 = vshll.u32 %v5310_v35, 16  ;;  %v6522_v17 = vld [vmem:[%s6621_s27 + $0x8c] sm:$0x1] }
 0x137   : > { %5913 = vmatprep.mubr.msk.bf16.mxu1 %vm696_vm3, %v6468_v11  ;;  %v2278_v13 = vor.u32 %v2277_v28, %v2273_v46  ;;  %v6519_v11 = vld [vmem:[%s6621_s27 + $0x88] sm:$0xf]  ;;  %v2274_v7 = vsel %vm6647_vm4, %v2269_v52, %v2273_v46 }
 0x138   : > { %v2319_v19 = vshll.u32 %v6519_v11, 16  ;;  %v2323_v41 = vshrl.u32 %v6519_v11, 16  ;;  %v2283_v0 = vrot.slane %v2281_v30, 5  ;;  %v2312_v36 = vrot.slane %v2310_v9, 4 }
 0x139   : > { %v2279_v39 = vrot.slane %v2278_v13, 4  ;;  %v2329_v30 = vshll.u32 %v6522_v17, 16  ;;  %v2336_v9 = vrot.slane %v2334_v23, 4  ;;  %v2363_v11 = vrot.slane %v2361_v47, 5 }
 0x13a   : > { %v8186_v24 = vrot.slane %v2319_v19, 5  ;;  %v2325_v49 = vrot.slane %v2323_v41, 4  ;;  %v6473_v19 = vld [vmem:[%s6621_s27 + $0xc0] sm:$0xff]  }
 0x13b   : > { %v2284_v46 = vsel %vm6647_vm4, %v2279_v39, %v2283_v0  ;;  %v5313_v39 = vld [vmem:[%s6621_s27 + $0xa8] sm:$0xf] }
 0x13c   : > { %v2326_v13 = vor.u32 %v2325_v49, %v8186_v24  ;;  %v5331_v41 = vcombine.low %v2274_v7, %v2284_v46  ;;  %v2377_v7 = vshll.u32 %v6524_v25, 16  ;;  %v2385_v45 = vshll.u32 %v5313_v39, 16 }
 0x13d   : > { %6068 = vmatmul.mubr.msk.bf16.gmra.mrb[4].mxu0 %vm696_vm3, %v5602_v61  ;;  %v6520_v61 = vld [vmem:[%s6621_s27 + $0x94] sm:$0xf] }
 0x13e   : > { %5914 = vmatmul.mubr.msk.bf16.gmra.mrb[20].mxu1 %vm696_vm3, %v6469_v51  ;;  %6071 = vmatprep.mubr.msk.bf16.mxu0 %vm696_vm3, %v5603_v10  ;;  %v2315_v10 = vrot.slane %v2313_v18, 5  ;;  %v2343_v51 = vshll.u32 %v6520_v61, 16  ;;  %v2347_v28 = vshrl.u32 %v6520_v61, 16  ;;  %v2327_v0 = vrot.slane %v2326_v13, 4 }
 0x13f   : > { %5917 = vmatprep.mubr.msk.bf16.mxu1 %vm696_vm3, %v6470_v21  ;;  %v2358_v21 = vshrl.u32 %v5310_v35, 16  ;;  %v6523_v35 = vld [vmem:[%s6621_s27 + $0x98] sm:$0x1]  ;;  %v2382_v61 = vshrl.u32 %v5313_v39, 16  ;;  %v5319_v39 = vld [vmem:[%s6621_s27 + $0xc0] sm:$0xf] }
 0x140   : > { %v2316_v15 = vor.u32 %v2315_v10, %v2312_v36  ;;  %v8206_v26 = vrot.slane %v2343_v51, 5  ;;  %v2331_v36 = vrot.slane %v2329_v30, 5  ;;  %v2340_v10 = vor.u32 %v2339_v14, %v2336_v9  ;;  %v5316_v51 = vld [vmem:[%s6621_s27 + $0xb4] sm:$0xf] }
 0x141   : > { %v2360_v18 = vrot.slane %v2358_v21, 4  ;;  %v2395_v21 = vshrl.u32 %v6525_v27, 16  ;;  %v2406_v20 = vshrl.u32 %v5316_v51, 16  ;;  %v2409_v42 = vshll.u32 %v5316_v51, 16 }
 0x142   : > { %v2317_v52 = vrot.slane %v2316_v15, 4  ;;  %v2332_v46 = vsel %vm6647_vm4, %v2327_v0, %v2331_v36  ;;  %v2341_v15 = vrot.slane %v2340_v10, 4  ;;  %v2379_v30 = vrot.slane %v2377_v7, 5 }
 0x143   : > { %v2364_v23 = vor.u32 %v2363_v11, %v2360_v18  ;;  %v2384_v9 = vrot.slane %v2382_v61, 4  ;;  %v2397_v11 = vrot.slane %v2395_v21, 4  ;;  %v6529_v61 = vld [vmem:[%s6621_s27 + $0xbc] sm:$0x1] }
 0x144   : > { %v2322_v47 = vsel %vm6647_vm4, %v2317_v52, %v8186_v24  ;;  %v2346_v0 = vsel %vm6647_vm4, %v2341_v15, %v8206_v26  ;;  %v2425_v22 = vshll.u32 %v6529_v61, 16 }
 0x145   : > { %6072 = vmatmul.mubr.msk.bf16.gmra.mrb[8].mxu0 %vm696_vm3, %v5604_v40  ;;  %v2371_v40 = vshrl.u32 %v6521_v60, 16  ;;  %v2365_v17 = vrot.slane %v2364_v23, 4  ;;  %v5333_v24 = vcombine.low %v2322_v47, %v2332_v46 }
 0x146   : > { %5918 = vmatmul.mubr.msk.bf16.gmra.mrb[24].mxu1 %vm696_vm3, %v6471_v2  ;;  %6075 = vmatprep.mubr.msk.bf16.mxu0 %vm696_vm3, %v5605_v54  ;;  %v2349_v54 = vrot.slane %v2347_v28, 4 }
 0x147   : > { %5921 = vmatprep.mubr.msk.bf16.mxu1 %vm696_vm3, %v6472_v34  ;;  %v2373_v2 = vrot.slane %v2371_v40, 4  ;;  %v2353_v34 = vshll.u32 %v6523_v35, 16  ;;  %v2370_v10 = vsel %vm6647_vm4, %v2365_v17, %v8209_v6  ;;  %v2451_v17 = vrot.slane %v2449_v57, 5 }
 0x148   : > { %v2350_v49 = vor.u32 %v2349_v54, %v8206_v26  ;;  %v2387_v54 = vrot.slane %v2385_v45, 5  ;;  %v6527_v26 = vld [vmem:[%s6621_s27 + $0xb0] sm:$0x1] }
 0x149   : > { %v2374_v28 = vor.u32 %v2373_v2, %v8209_v6  ;;  %v2355_v60 = vrot.slane %v2353_v34, 5  ;;  %v2401_v35 = vshll.u32 %v6527_v26, 16  ;;  %v2430_v34 = vshrl.u32 %v5319_v39, 16 }
 0x14a   : > { %v2351_v13 = vrot.slane %v2350_v49, 4  ;;  %v2388_v38 = vor.u32 %v2387_v54, %v2384_v9  ;;  %v2433_v6 = vshll.u32 %v5319_v39, 16  ;;  %v6528_v49 = vld [vmem:[%s6621_s27 + $0xc4] sm:$0xf] }
 0x14b   : > { %v2375_v14 = vrot.slane %v2374_v28, 4  ;;  %v2439_v23 = vshll.u32 %v6528_v49, 16  ;;  %v2443_v25 = vshrl.u32 %v6528_v49, 16  ;;  %v2403_v45 = vrot.slane %v2401_v35, 5 }
 0x14c   : > { %v2356_v36 = vsel %vm6647_vm4, %v2351_v13, %v2355_v60  ;;  %v2389_v51 = vrot.slane %v2388_v38, 4  ;;  %v2427_v60 = vrot.slane %v2425_v22, 5 }
 0x14d   : > { %6076 = vmatmul.mubr.msk.bf16.gmra.mrb[12].mxu0 %vm696_vm3, %v5606_v53  ;;  %v2391_v53 = vshll.u32 %v6525_v27, 16  ;;  %v2380_v59 = vsel %vm6647_vm4, %v2375_v14, %v2379_v30  ;;  %v5334_v44 = vcombine.low %v2346_v0, %v2356_v36  ;;  %v2432_v27 = vrot.slane %v2430_v34, 4 }
 0x14e   : > { %5922 = vmatmul.mubr.msk.bf16.gmra.mrb[28].mxu1 %vm696_vm3, %v6473_v19  ;;  %6079 = vmatprep.mubr.msk.bf16.mxu0 %vm696_vm3, %v5607_v33  ;;  %v6526_v33 = vld [vmem:[%s6621_s27 + $0xb8] sm:$0xf]  ;;  %v2408_v19 = vrot.slane %v2406_v20, 4  ;;  %v2441_v21 = vrot.slane %v2439_v23, 5  ;;  %v2445_v47 = vrot.slane %v2443_v25, 4 }
 0x14f   : > { %5943 = vmatprep.mubr.msk.bf16.mxu1 %vm696_vm3, %v5331_v41  ;;  %v2415_v12 = vshll.u32 %v6526_v33, 16  ;;  %v2419_v40 = vshrl.u32 %v6526_v33, 16  ;;  %v2393_v18 = vrot.slane %v2391_v53, 5  ;;  %v2411_v41 = vrot.slane %v2409_v42, 5 }
 0x150   : > { %v2435_v53 = vrot.slane %v2433_v6, 5 }
 0x151   : > { %v2417_v52 = vrot.slane %v2415_v12, 5  ;;  %v2421_v2 = vrot.slane %v2419_v40, 4  ;;  %v2394_v20 = vsel %vm6647_vm4, %v2389_v51, %v2393_v18  ;;  %v2446_v12 = vor.u32 %v2445_v47, %v2441_v21 }
 0x152   : > { %v2436_v33 = vor.u32 %v2435_v53, %v2432_v27 }
 0x153   : > { %v2422_v7 = vor.u32 %v2421_v2, %v2417_v52  ;;  %v2447_v13 = vrot.slane %v2446_v12, 4 }
 0x154   : > { %v2437_v40 = vrot.slane %v2436_v33, 4 }
 0x155   : > { %6080 = vmatmul.mubr.msk.bf16.gmra.mrb[16].mxu0 %vm696_vm3, %v5608_v37  ;;  %v2398_v37 = vor.u32 %v2397_v11, %v2393_v18  ;;  %v2423_v15 = vrot.slane %v2422_v7, 4  ;;  %v2452_v9 = vsel %vm6647_vm4, %v2447_v13, %v2451_v17 }
 0x156   : > { %5944 = vmatmul.mubr.msk.bf16.vlgmr.msra.gmra.mrb[16].mxu1 %vm696_vm3, %v8015_v1  ;;  %6083 = vmatprep.mubr.msk.bf16.mxu0 %vm696_vm3, %v5609_v3  ;;  %v2412_v1 = vor.u32 %v2411_v41, %v2408_v19  ;;  %v5335_v3 = vcombine.low %v2370_v10, %v2380_v59  ;;  %v2442_v30 = vsel %vm6647_vm4, %v2437_v40, %v2441_v21 }
 0x157   : > { %5947 = vmatprep.mubr.msk.bf16.mxu1 %vm696_vm3, %v5333_v24  ;;  %v2399_v28 = vrot.slane %v2398_v37, 4  ;;  %v2428_v48 = vsel %vm6647_vm4, %v2423_v15, %v2427_v60  ;;  %v5338_v14 = vcombine.low %v2442_v30, %v2452_v9 }
 0x158   : > { %v2413_v46 = vrot.slane %v2412_v1, 4 }
 0x159   : > { %v2404_v42 = vsel %vm6647_vm4, %v2399_v28, %v2403_v45 }
 0x15a   : > { %v5336_v62 = vcombine.low %v2394_v20, %v2404_v42 }
 0x15d   : > { %6084 = vmatmul.mubr.msk.bf16.gmra.mrb[20].mxu0 %vm696_vm3, %v5610_v8  ;;  %v2418_v8 = vsel %vm6647_vm4, %v2413_v46, %v2417_v52 }
 0x15e   : > { %5948 = vmatmul.mubr.msk.bf16.gmra.mrb[20].mxu1 %vm696_vm3, %v5334_v44  ;;  %6087 = vmatprep.mubr.msk.bf16.mxu0 %vm696_vm3, %v5611_v56  ;;  %v5337_v56 = vcombine.low %v2418_v8, %v2428_v48 }
 0x15f   : > { %5951 = vmatprep.mubr.msk.bf16.mxu1 %vm696_vm3, %v5335_v3 }
 0x165   : > { %6088 = vmatmul.mubr.msk.bf16.gmra.mrb[24].mxu0 %vm696_vm3, %v5612_v43 }
 0x166   : > { %5952 = vmatmul.mubr.msk.bf16.gmra.mrb[24].mxu1 %vm696_vm3, %v5336_v62  ;;  %6091 = vmatprep.mubr.msk.bf16.mxu0 %vm696_vm3, %v5613_v50 }
 0x167   : > { %5955 = vmatprep.mubr.msk.bf16.mxu1 %vm696_vm3, %v5337_v56 }
 0x16d   : > { %6092 = vmatmul.mubr.msk.bf16.gmra.mrb[28].mxu0 %vm696_vm3, %v5614_v29 }
 0x16e   : > { %5956 = vmatmul.mubr.msk.bf16.gmra.mrb[28].mxu1 %vm696_vm3, %v5338_v14 }
 0x1e9   : > { %v5895_v4 = vpop.f32.mrb[0].mxu1 }
 0x1ea   : > { %v1862_v32 = vpop.f32.mrb[1].mxu1 }
 0x1eb   : > { %v5896_v43 = vpop.f32.mrb[2].mxu1 }
 0x1ec   : > { %v1865_v16 = vpop.f32.mrb[3].mxu1 }
 0x1f1   : > { %v5899_v58 = vpop.f32.mrb[4].mxu1 }
 0x1f2   : > { %v1878_v50 = vpop.f32.mrb[5].mxu1 }
 0x1f3   : > { %v5900_v5 = vpop.f32.mrb[6].mxu1 }
 0x1f4   : > { %v1881_v55 = vpop.f32.mrb[7].mxu1 }
 0x1f9   : > { %v5903_v29 = vpop.f32.mrb[8].mxu1 }
 0x1fa   : > { %v1894_v54 = vpop.f32.mrb[9].mxu1 }
 0x1fb   : > { %v5904_v18 = vpop.f32.mrb[10].mxu1 }
 0x1fc   : > { %v1897_v11 = vpop.f32.mrb[11].mxu1 }
 0x201   : > { %v5907_v24 = vpop.f32.mrb[12].mxu1 }
 0x202   : > { %v1910_v19 = vpop.f32.mrb[13].mxu1 }
 0x203   : > { %v8304_v41 = vpop.f32.mrb[14].mxu1 }
 0x204   : > { %v8306_v52 = vpop.f32.mrb[15].mxu1 }
 0x208   : > { %v6065_v2 = vpop.f32.mrb[0].mxu0 }
 0x209   : > { %v8308_v39 = vadd.f32 %v6065_v2, %v5895_v4  ;;  %v4616_v0 = vpop.f32.mrb[1].mxu0 }
 0x20a   : > { %v8310_v36 = vadd.f32 %v4616_v0, %v1862_v32  ;;  %v6066_v10 = vpop.f32.mrb[2].mxu0 }
 0x20b   : > { %v8312_v59 = vadd.f32 %v6066_v10, %v5896_v43  ;;  %v4619_v38 = vpop.f32.mrb[3].mxu0  ;;  %v4814_v6 = vmul.f32 %v8308_v39, %v8308_v39 }
 0x20c   : > { %v8314_v37 = vadd.f32 %v4619_v38, %v1865_v16  ;;  %v4812_v26 = vmul.f32 %v8310_v36, %v8310_v36 }
 0x20d   : > { %v4815_v61 = vmul.f32 %v8312_v59, %v8312_v59 }
 0x20e   : > { %v4775_v35 = vadd.f32 %v8314_v37, %v8310_v36  ;;  %v4813_v34 = vmul.f32 %v8314_v37, %v8314_v37 }
 0x210   : > { %v4776_v49 = vadd.f32 %v8308_v39, %v4775_v35  ;;  %v4844_v23 = vadd.f32 %v4813_v34, %v4812_v26  ;;  %v6069_v25 = vpop.f32.mrb[4].mxu0 }
 0x211   : > { %v8325_v1 = vadd.f32 %v6069_v25, %v5899_v58  ;;  %v4632_v7 = vpop.f32.mrb[5].mxu0 }
 0x212   : > { %v4845_v22 = vadd.f32 %v4844_v23, %v4814_v6  ;;  %v8329_v44 = vadd.f32 %v4632_v7, %v1878_v50  ;;  %v4777_v3 = vadd.f32 %v8312_v59, %v4776_v49  ;;  %v6070_v51 = vpop.f32.mrb[6].mxu0 }
 0x213   : > { %v8332_v28 = vadd.f32 %v6070_v51, %v5900_v5  ;;  %v4635_v45 = vpop.f32.mrb[7].mxu0  ;;  %v4818_v20 = vmul.f32 %v8325_v1, %v8325_v1 }
 0x214   : > { %v4778_v27 = vadd.f32 %v8329_v44, %v4777_v3  ;;  %v4816_v53 = vmul.f32 %v8329_v44, %v8329_v44  ;;  %v4846_v21 = vadd.f32 %v4845_v22, %v4815_v61  ;;  %v8337_v47 = vadd.f32 %v4635_v45, %v1881_v55 }
 0x215   : > { %v4819_v8 = vmul.f32 %v8332_v28, %v8332_v28 }
 0x216   : > { %v4847_v46 = vadd.f32 %v4846_v21, %v4816_v53  ;;  %v4779_v15 = vadd.f32 %v8337_v47, %v4778_v27  ;;  %v4817_v60 = vmul.f32 %v8337_v47, %v8337_v47 }
 0x218   : > { %v4780_v42 = vadd.f32 %v8325_v1, %v4779_v15  ;;  %v4848_v33 = vadd.f32 %v4847_v46, %v4817_v60  ;;  %v6073_v12 = vpop.f32.mrb[8].mxu0 }
 0x219   : > { %v8345_v31 = vadd.f32 %v6073_v12, %v5903_v29  ;;  %v4648_v57 = vpop.f32.mrb[9].mxu0 }
 0x21a   : > { %v4849_v48 = vadd.f32 %v4848_v33, %v4818_v20  ;;  %v8349_v62 = vadd.f32 %v4648_v57, %v1894_v54  ;;  %v4781_v56 = vadd.f32 %v8332_v28, %v4780_v42  ;;  %v6074_v40 = vpop.f32.mrb[10].mxu0 }
 0x21b   : > { %v8352_v13 = vadd.f32 %v6074_v40, %v5904_v18  ;;  %v4651_v17 = vpop.f32.mrb[11].mxu0  ;;  %v4822_v16 = vmul.f32 %v8345_v31, %v8345_v31 }
 0x21c   : > { %v4782_v30 = vadd.f32 %v8349_v62, %v4781_v56  ;;  %v4820_v9 = vmul.f32 %v8349_v62, %v8349_v62  ;;  %v4850_v14 = vadd.f32 %v4849_v48, %v4819_v8  ;;  %v8357_v63 = vadd.f32 %v4651_v17, %v1897_v11 }
 0x21d   : > { %v4823_v54 = vmul.f32 %v8352_v13, %v8352_v13 }
 0x21e   : > { %v4851_v4 = vadd.f32 %v4850_v14, %v4820_v9  ;;  %v4783_v32 = vadd.f32 %v8357_v63, %v4782_v30  ;;  %v4821_v43 = vmul.f32 %v8357_v63, %v8357_v63 }
 0x220   : > { %v4784_v58 = vadd.f32 %v8345_v31, %v4783_v32  ;;  %v4852_v50 = vadd.f32 %v4851_v4, %v4821_v43  ;;  %v6077_v5 = vpop.f32.mrb[12].mxu0 }
 0x221   : > { %v8365_v55 = vadd.f32 %v6077_v5, %v5907_v24  ;;  %v4664_v29 = vpop.f32.mrb[13].mxu0 }
 0x222   : > { %v4853_v18 = vadd.f32 %v4852_v50, %v4822_v16  ;;  %v8369_v11 = vadd.f32 %v4664_v29, %v1910_v19  ;;  %v4785_v2 = vadd.f32 %v8352_v13, %v4784_v58  ;;  %v6078_v0 = vpop.f32.mrb[14].mxu0 }
 0x223   : > { %v8373_v10 = vadd.f32 %v6078_v0, %v8304_v41  ;;  %v4667_v38 = vpop.f32.mrb[15].mxu0  ;;  %v4826_v41 = vmul.f32 %v8365_v55, %v8365_v55 }
 0x224   : > { %v4786_v26 = vadd.f32 %v8369_v11, %v4785_v2  ;;  %v4824_v24 = vmul.f32 %v8369_v11, %v8369_v11  ;;  %v4854_v35 = vadd.f32 %v4853_v18, %v4823_v54  ;;  %v8379_v34 = vadd.f32 %v4667_v38, %v8306_v52 }
 0x225   : > { %v4827_v3 = vmul.f32 %v8373_v10, %v8373_v10 }
 0x226   : > { %v4855_v6 = vadd.f32 %v4854_v35, %v4824_v24  ;;  %v4787_v19 = vadd.f32 %v8379_v34, %v4786_v26  ;;  %v4825_v49 = vmul.f32 %v8379_v34, %v8379_v34 }
 0x228   : > { %v4788_v23 = vadd.f32 %v8365_v55, %v4787_v19  ;;  %v4856_v25 = vadd.f32 %v4855_v6, %v4825_v49  ;;  %v6081_v7 = vpop.f32.mrb[16].mxu0 }
 0x229   : > { %v5945_v61 = vpop.f32.mrb[16].mxu1  ;;  %v4680_v22 = vpop.f32.mrb[17].mxu0 }
 0x22a   : > { %v4857_v52 = vadd.f32 %v4856_v25, %v4826_v41  ;;  %v6113_v51 = vadd.f32 %v6081_v7, %v5945_v61  ;;  %v2652_v45 = vpop.f32.mrb[17].mxu1  ;;  %v4789_v27 = vadd.f32 %v8373_v10, %v4788_v23  ;;  %v6082_v53 = vpop.f32.mrb[18].mxu0 }
 0x22b   : > { %v6114_v21 = vadd.f32 %v4680_v22, %v2652_v45  ;;  %v5946_v46 = vpop.f32.mrb[18].mxu1  ;;  %v4683_v15 = vpop.f32.mrb[19].mxu0 }
 0x22c   : > { %v4858_v60 = vadd.f32 %v4857_v52, %v4827_v3  ;;  %v6115_v20 = vadd.f32 %v6082_v53, %v5946_v46  ;;  %v2655_v42 = vpop.f32.mrb[19].mxu1  ;;  %v6393_v33 = vpack.i.bf16 %v6113_v51, %v8308_v39  ;;  %v4830_v4 = vmul.f32 %v6113_v51, %v6113_v51 }
 0x22d   : > { %v4790_v12 = vadd.f32 %v6114_v21, %v4789_v27  ;;  %v4828_v57 = vmul.f32 %v6114_v21, %v6114_v21  ;;  %v6116_v8 = vadd.f32 %v4683_v15, %v2655_v42  ;;  %v6389_v48 = vpack.i.bf16 %v6114_v21, %v8310_v36 }
 0x22e   : > { %v6395_v56 = vpack.i.bf16 %v6115_v20, %v8312_v59  ;;  %v4831_v29 = vmul.f32 %v6115_v20, %v6115_v20 }
 0x22f   : > { %v4859_v40 = vadd.f32 %v4858_v60, %v4828_v57  ;;  %v4791_v17 = vadd.f32 %v6116_v8, %v4790_v12  ;;  %v4829_v30 = vmul.f32 %v6116_v8, %v6116_v8  ;;  %6390 = vxpose.xlu0.b32.start [1/16] (narrow) %v6389_v48, 8  ;;  %v6391_v9 = vpack.i.bf16 %v6116_v8, %v8314_v37 }
 0x230   : > { %v6085_v14 = vpop.f32.mrb[20].mxu0 }
 0x231   : > { %v4792_v32 = vadd.f32 %v6113_v51, %v4791_v17  ;;  %v4860_v43 = vadd.f32 %v4859_v40, %v4829_v30  ;;  %v5949_v16 = vpop.f32.mrb[20].mxu1  ;;  %v4696_v58 = vpop.f32.mrb[21].mxu0 }
 0x232   : > { %v8394_v39 = vadd.f32 %v6085_v14, %v5949_v16  ;;  %v2668_v50 = vpop.f32.mrb[21].mxu1  ;;  %v6086_v5 = vpop.f32.mrb[22].mxu0 }
 0x233   : > { %v4861_v36 = vadd.f32 %v4860_v43, %v4830_v4  ;;  %v6118_v54 = vadd.f32 %v4696_v58, %v2668_v50  ;;  %v4793_v59 = vadd.f32 %v6115_v20, %v4792_v32  ;;  %6392 = vxpose.xlu0.b32.cont [2/16] (narrow) %v6391_v9, 8  ;;  %v5950_v18 = vpop.f32.mrb[22].mxu1  ;;  %v4699_v2 = vpop.f32.mrb[23].mxu0 }
 0x234   : > { %v8396_v0 = vadd.f32 %v6086_v5, %v5950_v18  ;;  %v2671_v37 = vpop.f32.mrb[23].mxu1  ;;  %v6401_v38 = vpack.i.bf16 %v8394_v39, %v8325_v1  ;;  %v4834_v22 = vmul.f32 %v8394_v39, %v8394_v39 }
 0x235   : > { %v4794_v26 = vadd.f32 %v6118_v54, %v4793_v59  ;;  %v4832_v24 = vmul.f32 %v6118_v54, %v6118_v54  ;;  %v4862_v35 = vadd.f32 %v4861_v36, %v4831_v29  ;;  %v6120_v6 = vadd.f32 %v4699_v2, %v2671_v37 }
 0x236   : > { %v6397_v19 = vpack.i.bf16 %v6118_v54, %v8329_v44  ;;  %v6403_v49 = vpack.i.bf16 %v8396_v0, %v8332_v28  ;;  %v4835_v21 = vmul.f32 %v8396_v0, %v8396_v0 }
 0x237   : > { %v4863_v41 = vadd.f32 %v4862_v35, %v4832_v24  ;;  %v4795_v23 = vadd.f32 %v6120_v6, %v4794_v26  ;;  %v4833_v25 = vmul.f32 %v6120_v6, %v6120_v6  ;;  %6394 = vxpose.xlu0.b32.cont [3/16] (narrow) %v6393_v33, 8  ;;  %v6399_v7 = vpack.i.bf16 %v6120_v6, %v8337_v47 }
 0x238   : > { %v6089_v61 = vpop.f32.mrb[24].mxu0 }
 0x239   : > { %v4796_v3 = vadd.f32 %v8394_v39, %v4795_v23  ;;  %v4864_v52 = vadd.f32 %v4863_v41, %v4833_v25  ;;  %v5953_v51 = vpop.f32.mrb[24].mxu1  ;;  %v4712_v45 = vpop.f32.mrb[25].mxu0 }
 0x23a   : > { %v8407_v27 = vadd.f32 %v6089_v61, %v5953_v51  ;;  %v2684_v44 = vpop.f32.mrb[25].mxu1  ;;  %v6090_v53 = vpop.f32.mrb[26].mxu0 }
 0x23b   : > { %v4865_v46 = vadd.f32 %v4864_v52, %v4834_v22  ;;  %v6122_v15 = vadd.f32 %v4712_v45, %v2684_v44  ;;  %v4797_v47 = vadd.f32 %v8396_v0, %v4796_v3  ;;  %6396 = vxpose.xlu0.b32.cont [4/16] (narrow) %v6395_v56, 8  ;;  %v5954_v60 = vpop.f32.mrb[26].mxu1  ;;  %v4715_v20 = vpop.f32.mrb[27].mxu0 }
 0x23c   : > { %v8412_v42 = vadd.f32 %v6090_v53, %v5954_v60  ;;  %v2687_v33 = vpop.f32.mrb[27].mxu1  ;;  %v6409_v12 = vpack.i.bf16 %v8407_v27, %v8345_v31  ;;  %v4838_v43 = vmul.f32 %v8407_v27, %v8407_v27 }
 0x23d   : > { %v4798_v57 = vadd.f32 %v6122_v15, %v4797_v47  ;;  %v4836_v8 = vmul.f32 %v6122_v15, %v6122_v15  ;;  %v4866_v48 = vadd.f32 %v4865_v46, %v4835_v21  ;;  %v6124_v40 = vadd.f32 %v4715_v20, %v2687_v33 }
 0x23e   : > { %v6405_v17 = vpack.i.bf16 %v6122_v15, %v8349_v62  ;;  %v6411_v30 = vpack.i.bf16 %v8412_v42, %v8352_v13  ;;  %v4839_v36 = vmul.f32 %v8412_v42, %v8412_v42 }
 0x23f   : > { %v4867_v9 = vadd.f32 %v4866_v48, %v4836_v8  ;;  %v4799_v14 = vadd.f32 %v6124_v40, %v4798_v57  ;;  %v4837_v56 = vmul.f32 %v6124_v40, %v6124_v40  ;;  %6398 = vxpose.xlu0.b32.cont [5/16] (narrow) %v6397_v19, 8  ;;  %v6407_v4 = vpack.i.bf16 %v6124_v40, %v8357_v63 }
 0x240   : > { %v6093_v32 = vpop.f32.mrb[28].mxu0 }
 0x241   : > { %v4800_v31 = vadd.f32 %v8407_v27, %v4799_v14  ;;  %v4868_v16 = vadd.f32 %v4867_v9, %v4837_v56  ;;  %v5957_v58 = vpop.f32.mrb[28].mxu1  ;;  %v4728_v50 = vpop.f32.mrb[29].mxu0 }
 0x242   : > { %v6125_v5 = vadd.f32 %v6093_v32, %v5957_v58  ;;  %v2700_v62 = vpop.f32.mrb[29].mxu1  ;;  %v6094_v29 = vpop.f32.mrb[30].mxu0 }
 0x243   : > { %v4869_v54 = vadd.f32 %v4868_v16, %v4838_v43  ;;  %v6126_v59 = vadd.f32 %v4728_v50, %v2700_v62  ;;  %v4801_v18 = vadd.f32 %v8412_v42, %v4800_v31  ;;  %6400 = vxpose.xlu0.b32.cont [6/16] (narrow) %v6399_v7, 8  ;;  %v5958_v63 = vpop.f32.mrb[30].mxu1  ;;  %v4731_v2 = vpop.f32.mrb[31].mxu0 }
 0x244   : > { %v6127_v37 = vadd.f32 %v6094_v29, %v5958_v63  ;;  %v2703_v26 = vpop.f32.mrb[31].mxu1  ;;  %v6417_v24 = vpack.i.bf16 %v6125_v5, %v8365_v55  ;;  %v4842_v52 = vmul.f32 %v6125_v5, %v6125_v5 }
 0x245   : > { %v4802_v35 = vadd.f32 %v6126_v59, %v4801_v18  ;;  %v4840_v6 = vmul.f32 %v6126_v59, %v6126_v59  ;;  %v4870_v19 = vadd.f32 %v4869_v54, %v4839_v36  ;;  %v6128_v41 = vadd.f32 %v4731_v2, %v2703_v26 }
 0x246   : > { %v6413_v23 = vpack.i.bf16 %v6126_v59, %v8369_v11  ;;  %v6419_v25 = vpack.i.bf16 %v6127_v37, %v8373_v10  ;;  %v4843_v45 = vmul.f32 %v6127_v37, %v6127_v37 }
 0x247   : > { %v4871_v61 = vadd.f32 %v4870_v19, %v4840_v6  ;;  %v4803_v22 = vadd.f32 %v6128_v41, %v4802_v35  ;;  %v4841_v3 = vmul.f32 %v6128_v41, %v6128_v41  ;;  %6402 = vxpose.xlu0.b32.cont [7/16] (narrow) %v6401_v38, 8  ;;  %v6415_v7 = vpack.i.bf16 %v6128_v41, %v8379_v34 }
 0x249   : > { %v4804_v51 = vadd.f32 %v6125_v5, %v4803_v22  ;;  %v4872_v55 = vadd.f32 %v4871_v61, %v4841_v3 }
 0x24b   : > { %v4805_v27 = vadd.f32 %v6127_v37, %v4804_v51  ;;  %v4873_v44 = vadd.f32 %v4872_v55, %v4842_v52  ;;  %6404 = vxpose.xlu0.b32.cont [8/16] (narrow) %v6403_v49, 8  ;;  %v4888_v49 = vld [vmem:[%s8301_s22] sm:$0x3] }
 0x24d   : > { %v4806_v11 = vrot.slane %v4805_v27, 4  ;;  %v4874_v10 = vadd.f32 %v4873_v44, %v4843_v45 }
 0x24f   : > { %v4807_v53 = vadd.f32 %v4806_v11, %v4805_v27  ;;  %v4875_v21 = vrot.slane %v4874_v10, 4  ;;  %6406 = vxpose.xlu0.b32.cont [9/16] (narrow) %v6405_v17, 8 }
 0x251   : > { %v4808_v1 = vrot.slane %v4807_v53, 2  ;;  %v4876_v39 = vadd.f32 %v4875_v21, %v4874_v10 }
 0x253   : > { %v4809_v34 = vadd.f32 %v4808_v1, %v4807_v53  ;;  %v4877_v38 = vrot.slane %v4876_v39, 2  ;;  %6408 = vxpose.xlu0.b32.cont [10/16] (narrow) %v6407_v4, 8 }
 0x255   : > { %v4810_v46 = vrot.slane %v4809_v34, 1  ;;  %v4878_v15 = vadd.f32 %v4877_v38, %v4876_v39 }
 0x257   : > { %v4879_v47 = vrot.slane %v4878_v15, 1  ;;  %6410 = vxpose.xlu0.b32.cont [11/16] (narrow) %v6409_v12, 8  ;;  %v4811_v28 = vadd.f32 %v4810_v46, %v4809_v34 }
 0x259   : > { %v4880_v0 = vadd.f32 %v4879_v47, %v4878_v15 }
 0x25b   : > { %v4882_v60 = vsel %vm4881_vm8, %v4811_v28, %v4880_v0  ;;  %6412 = vxpose.xlu0.b32.cont [12/16] (narrow) %v6411_v30, 8 }
 0x25c   : > { %v4889_v20 = vadd.f32 %v4888_v49, %v4882_v60 }
 0x25e   : > { %4890 = vst [vmem:[%s8301_s22] sm:$0x3] %v4889_v20 }
 0x25f   : > { %6414 = vxpose.xlu0.b32.cont [13/16] (narrow) %v6413_v23, 8 }
 0x263   : > { %6416 = vxpose.xlu0.b32.cont [14/16] (narrow) %v6415_v7, 8 }
 0x267   : > { %6418 = vxpose.xlu0.b32.cont [15/16] (narrow) %v6417_v24, 8 }
 0x26b   : > { %6420 = vxpose.xlu0.b32.end [16/16] (narrow) %v6419_v25, 8 }
 0x2af   : > { %v6421_v33 = vpop.trf.xlu0 }
 0x2b0   : > { %v6425_v57 = vunpack.i.h.bf16 %v6421_v33  ;;  %v6422_v8 = vunpack.i.l.bf16 %v6421_v33 }
 0x2b2   : > { %v5635_v12 = vpack.c.bf16 %v6425_v57, %v6422_v8 }
 0x2b4   : > { %4963 = vst [vmem:[%s199_s26] sm:$0xff] %v5635_v12 }
 0x2b5 PF: > { %s14_s14 = sadd.s32 1, %s6553_s14   ;;  %s8525_s12 = smov %s6549_s13 }
 0x2b6   : > { %p11_p5 = scmp.ge.s32.totalorder %s14_s14, 4   ;;  %s8526_s13 = smov %s8528_s15 }
 0x2b8   :  { %13 = sbr.rel (!%p11_p5) target bundleno = 2 (0x2), region = 85 }

</bundles_post_ra>
